<compile_context>
chip_gen: v7x
topology: tpu7x:2x2x1
jax: 0.10.0
libtpu: 0.0.40
codegen_flags: <defaults>
</compile_context>

<pallas_src>
import functools

import jax
import jax.numpy as jnp
import numpy as np
from jax.experimental import pallas as pl
from jax.experimental.pallas import tpu as pltpu

BN_EPS = 1e-5


def _round_up(n, m):
    return (n + m - 1) // m * m


# ----------------------------------------------------------------------------
# In-kernel helper: stage the 9 shifted taps of a 3x3 / stride-1 / pad-1 conv
# into a VMEM slab so the conv becomes ONE (M, 9C) @ (9C, Cout) MXU matmul.
# ----------------------------------------------------------------------------
def _stage_conv3x3_taps(x4, slab_ref, mm_dtype):
    """x4: (nb, h, w, c) activation; writes tap (ky,kx) into slab_ref[:, (3ky+kx)*c : ...].

    H (+-1) shifts: major-dim slice + zero row (alignment-free).
    W (+-1) shifts: XLU roll on the flattened (M, c) array; the source column that only
                    feeds out-of-range outputs is zeroed before the roll, so the wrapped
                    boundary values never leak in.
    All slab column writes land at multiples of c (lane-aligned when c % 128 == 0).
    """
    x4 = x4.astype(jnp.float32)                    # shifts / masks stay f32
    nb, h, w, c = x4.shape
    m = nb * h * w
    col = jax.lax.broadcasted_iota(jnp.int32, (nb, h, w, c), 2)   # W index (hoisted)
    zero_row = jnp.zeros_like(x4[:, :1])

    for ky, dy in enumerate((-1, 0, 1)):
        if dy == -1:                               # tap reads row y-1
            xy = jnp.concatenate([zero_row, x4[:, :-1]], axis=1)
        elif dy == 0:
            xy = x4
        else:                                      # tap reads row y+1
            xy = jnp.concatenate([x4[:, 1:], zero_row], axis=1)
        for kx, dx in enumerate((-1, 0, 1)):
            if dx == 0:
                tap = xy.reshape(m, c)
            else:
                keep = (col != 0) if dx == 1 else (col != (w - 1))
                src = jnp.where(keep, xy, 0.0).reshape(m, c)
                tap = pltpu.roll(src, shift=(-dx) % m, axis=0)
            j = (ky * 3 + kx) * c
            slab_ref[:, j:j + c] = tap.astype(mm_dtype)


# ----------------------------------------------------------------------------
# Pallas kernel: fused BasicBlock forward for one batch tile of nb images.
# ----------------------------------------------------------------------------
def _basic_block_kernel(*refs, mode, has_downsample, use_bf16):
    if mode == "patches":
        if has_downsample:
            (p1_ref, xs_ref, w1_ref, s1_ref, b1_ref, w2_ref, s2_ref, b2_ref,
             wd_ref, sd_ref, bd_ref, o_ref, slab2_ref) = refs
        else:
            (p1_ref, xs_ref, w1_ref, s1_ref, b1_ref, w2_ref, s2_ref, b2_ref,
             o_ref, slab2_ref) = refs
        res_src_ref = xs_ref
    else:  # "direct": stride-1/pad-1/dil-1 conv1 built in-kernel from x (no im2col DMA)
        if has_downsample:
            (x_ref, w1_ref, s1_ref, b1_ref, w2_ref, s2_ref, b2_ref,
             wd_ref, sd_ref, bd_ref, o_ref, slab1_ref, slab2_ref) = refs
        else:
            (x_ref, w1_ref, s1_ref, b1_ref, w2_ref, s2_ref, b2_ref,
             o_ref, slab1_ref, slab2_ref) = refs
        res_src_ref = x_ref

    mm_dtype = jnp.bfloat16 if use_bf16 else jnp.float32
    nb, h_out, w_out, c_mid = o_ref.shape
    m = nb * h_out * w_out

    # ---- conv1 + BN1 + ReLU : one lane-dense MXU matmul ------------------------------
    if mode == "patches":
        a1 = p1_ref[...].reshape(m, p1_ref.shape[-1])      # im2col slab, K padded to 128x
        h1 = jnp.dot(a1, w1_ref[...], preferred_element_type=jnp.float32)
    else:
        cin = x_ref.shape[-1]
        k1 = slab1_ref.shape[-1]
        if k1 > 9 * cin:                                    # zero K-pad lanes (tiny)
            slab1_ref[:, 9 * cin:] = jnp.zeros((m, k1 - 9 * cin), mm_dtype)
        _stage_conv3x3_taps(x_ref[...], slab1_ref, mm_dtype)
        h1 = jnp.dot(slab1_ref[...], w1_ref[...], preferred_element_type=jnp.float32)
    h1 = jnp.maximum(h1 * s1_ref[...] + b1_ref[...], 0.0)   # BN1 + ReLU in f32

    # ---- conv2 + BN2 : stage 9-tap slab once, then ONE long-K matmul ------------------
    k2 = slab2_ref.shape[-1]
    if k2 > 9 * c_mid:
        slab2_ref[:, 9 * c_mid:] = jnp.zeros((m, k2 - 9 * c_mid), mm_dtype)
    _stage_conv3x3_taps(h1.reshape(nb, h_out, w_out, c_mid), slab2_ref, mm_dtype)
    h2 = jnp.dot(slab2_ref[...], w2_ref[...], preferred_element_type=jnp.float32)
    h2 = h2 * s2_ref[...] + b2_ref[...]

    # ---- residual path: 1x1 conv + BN, or identity ------------------------------------
    if has_downsample:
        xs = res_src_ref[...].reshape(m, res_src_ref.shape[-1]).astype(mm_dtype)
        res = jnp.dot(xs, wd_ref[...], preferred_element_type=jnp.float32)
        res = res * sd_ref[...] + bd_ref[...]
    else:
        res = res_src_ref[...].reshape(m, c_mid).astype(jnp.float32)

    out = jnp.maximum(h2 + res, 0.0)
    o_ref[...] = out.reshape(nb, h_out, w_out, c_mid).astype(o_ref.dtype)


# ----------------------------------------------------------------------------
# Wrapper glue (XLA): im2col for strided/dilated conv1, BN folding, layout prep.
# ----------------------------------------------------------------------------
def _extract_patches_nhwc(x, ksize, stride, pad, dil):
    """x (B,H,W,C) -> ((B,H_out,W_out,k*k*C) patches [tap-major, C-minor], H_out, W_out)."""
    B, H, W, C = x.shape
    h_out = (H + 2 * pad - dil * (ksize - 1) - 1) // stride + 1
    w_out = (W + 2 * pad - dil * (ksize - 1) - 1) // stride + 1
    xp = jnp.pad(x, ((0, 0), (pad, pad), (pad, pad), (0, 0)))
    taps = []
    for ky in range(ksize):
        for kx in range(ksize):
            y0, x0 = ky * dil, kx * dil
            taps.append(xp[:, y0:y0 + stride * (h_out - 1) + 1:stride,
                              x0:x0 + stride * (w_out - 1) + 1:stride, :])
    return jnp.concatenate(taps, axis=-1), h_out, w_out


def _fold_bn(bn):
    scale = bn['gamma'] / jnp.sqrt(bn['var'] + BN_EPS)
    bias = bn['beta'] - bn['mean'] * scale
    return scale[None, :].astype(jnp.float32), bias[None, :].astype(jnp.float32)


def _pick_batch_tile(batch, hw, target_rows=256):
    """Images per grid step: fill the MXU (>=256 rows) and keep >=2 grid steps if possible."""
    divisors = [d for d in range(1, batch + 1) if batch % d == 0]
    for d in divisors:
        if d * hw >= target_rows and batch // d >= 2:
            return d
    for d in divisors:
        if d * hw >= target_rows:
            return d
    return batch


@functools.partial(jax.jit, static_argnames=("stride", "padding", "dilation",
                                             "has_downsample", "use_bf16"))
def basic_block_forward(params, x, *, stride=1, padding=1, dilation=1,
                        has_downsample=True, use_bf16=True):
    """x (B, Cin, H, W) NCHW -> (B, planes, H_out, W_out) NCHW (matches PyTorch)."""
    B, Cin, H, W = x.shape
    c_mid = params['w1'].shape[0]
    mm_dtype = jnp.bfloat16 if use_bf16 else jnp.float32
    x_nhwc = jnp.transpose(x, (0, 2, 3, 1))

    direct = (stride == 1 and padding == 1 and dilation == 1)   # conv1 built in-kernel

    # ---- weights / BN (tap-major rows, Cout on lanes; K zero-padded to a 128 multiple) ----
    k1 = 9 * Cin
    k1p = _round_up(k1, 128)
    w1m = jnp.transpose(params['w1'], (2, 3, 1, 0)).reshape(k1, c_mid)
    w1m = jnp.pad(w1m, ((0, k1p - k1), (0, 0))).astype(mm_dtype)
    k2 = 9 * c_mid
    k2p = _round_up(k2, 128)
    w2m = jnp.transpose(params['w2'], (2, 3, 1, 0)).reshape(k2, c_mid)
    w2m = jnp.pad(w2m, ((0, k2p - k2), (0, 0))).astype(mm_dtype)
    s1, b1 = _fold_bn(params['bn1'])
    s2, b2 = _fold_bn(params['bn2'])

    if direct:
        h_out, w_out = H, W
    else:
        p1, h_out, w_out = _extract_patches_nhwc(x_nhwc, 3, stride, padding, dilation)
        p1 = jnp.pad(p1, ((0, 0), (0, 0), (0, 0), (0, k1p - k1))).astype(mm_dtype)

    assert w_out % 8 == 0, "kernel assumes W_out % 8 == 0 (free reshapes / aligned rolls)"
    nb = _pick_batch_tile(B, h_out * w_out)
    m_blk = nb * h_out * w_out
    grid = (B // nb,)

    weight_args = (w1m, s1, b1, w2m, s2, b2)
    weight_specs = [
        pl.BlockSpec((k1p, c_mid), lambda b: (0, 0)),
        pl.BlockSpec((1, c_mid), lambda b: (0, 0)),
        pl.BlockSpec((1, c_mid), lambda b: (0, 0)),
        pl.BlockSpec((k2p, c_mid), lambda b: (0, 0)),
        pl.BlockSpec((1, c_mid), lambda b: (0, 0)),
        pl.BlockSpec((1, c_mid), lambda b: (0, 0)),
    ]

    if has_downsample:
        wdm = params['wd'][:, :, 0, 0].T.astype(mm_dtype)          # (Cin, Cmid)
        sd, bd = _fold_bn(params['bnd'])
        ds_args = (wdm, sd, bd)
        ds_specs = [
            pl.BlockSpec((Cin, c_mid), lambda b: (0, 0)),
            pl.BlockSpec((1, c_mid), lambda b: (0, 0)),
            pl.BlockSpec((1, c_mid), lambda b: (0, 0)),
        ]
    else:
        assert Cin == c_mid and h_out == H and w_out == W, \
            "identity residual needs matching shapes"
        ds_args, ds_specs = (), []

    scratch = [pltpu.VMEM((m_blk, k2p), mm_dtype)]                 # conv2 tap slab
    if direct:
        # x feeds conv1 (and residual / 1x1 downsample). Cast to bf16 only when it is
        # purely a matmul operand; keep f32 when it is the identity residual.
        x_in = x_nhwc.astype(mm_dtype) if has_downsample else x_nhwc
        args = (x_in,) + weight_args + ds_args
        in_specs = ([pl.BlockSpec((nb, H, W, Cin), lambda b: (b, 0, 0, 0))]
                    + weight_specs + ds_specs)
        scratch = [pltpu.VMEM((m_blk, k1p), mm_dtype)] + scratch   # conv1 tap slab
        mode = "direct"
    else:
        if has_downsample:
            xs = x_nhwc[:, ::stride, ::stride, :][:, :h_out, :w_out, :].astype(mm_dtype)
        else:
            xs = x_nhwc                                            # identity residual (f32)
        args = (p1, xs) + weight_args + ds_args
        in_specs = ([pl.BlockSpec((nb, h_out, w_out, k1p), lambda b: (b, 0, 0, 0)),
                     pl.BlockSpec((nb, h_out, w_out, xs.shape[-1]), lambda b: (b, 0, 0, 0))]
                    + weight_specs + ds_specs)
        mode = "patches"

    kernel = functools.partial(_basic_block_kernel, mode=mode,
                               has_downsample=has_downsample, use_bf16=use_bf16)

    out_nhwc = pl.pallas_call(
        kernel,
        out_shape=jax.ShapeDtypeStruct((B, h_out, w_out, c_mid), x.dtype),
        grid=grid,
        in_specs=in_specs,
        out_specs=pl.BlockSpec((nb, h_out, w_out, c_mid), lambda b: (b, 0, 0, 0)),
        scratch_shapes=scratch,
        compiler_params=pltpu.CompilerParams(
            dimension_semantics=("parallel",)),    # shard batch tiles over TCs (v7x)
    )(*args)

    return jnp.transpose(out_nhwc, (0, 3, 1, 2))


# ----------------------------------------------------------------------------
# Parameters (PyTorch layouts) and pure-JAX reference.
# ----------------------------------------------------------------------------
def init_basic_block_params(key, inplanes, planes, has_downsample=True):
    def bn_init(k, c):
        k1, k2, k3, k4 = jax.random.split(k, 4)
        return {'gamma': jax.random.uniform(k1, (c,), jnp.float32, 0.8, 1.2),
                'beta': 0.05 * jax.random.normal(k2, (c,), jnp.float32),
                'mean': 0.05 * jax.random.normal(k3, (c,), jnp.float32),
                'var': jax.random.uniform(k4, (c,), jnp.float32, 0.8, 1.2)}

    ks = jax.random.split(key, 6)
    params = {
        'w1': jax.random.normal(ks[0], (planes, inplanes, 3, 3), jnp.float32) / np.sqrt(9 * inplanes),
        'bn1': bn_init(ks[1], planes),
        'w2': jax.random.normal(ks[2], (planes, planes, 3, 3), jnp.float32) / np.sqrt(9 * planes),
        'bn2': bn_init(ks[3], planes),
    }
    if has_downsample:
        params['wd'] = jax.random.normal(ks[4], (planes, inplanes, 1, 1), jnp.float32) / np.sqrt(inplanes)
        params['bnd'] = bn_init(ks[5], planes)
    return params


def _conv2d_nchw(x, w, stride, padding, dilation=1):
    return jax.lax.conv_general_dilated(
        x, w, window_strides=(stride, stride),
        padding=((padding, padding), (padding, padding)),
        rhs_dilation=(dilation, dilation),
        dimension_numbers=('NCHW', 'OIHW', 'NCHW'),
        precision=jax.lax.Precision.HIGHEST)


def _bn_nchw(x, bn):
    scale = bn['gamma'] / jnp.sqrt(bn['var'] + BN_EPS)
    bias = bn['beta'] - bn['mean'] * scale
    return x * scale[None, :, None, None] + bias[None, :, None, None]


def basic_block_ref(params, x, *, stride=1, padding=1, dilation=1, has_downsample=True):
    out = jax.nn.relu(_bn_nchw(_conv2d_nchw(x, params['w1'], stride, padding, dilation),
                               params['bn1']))
    out = _bn_nchw(_conv2d_nchw(out, params['w2'], 1, 1, 1), params['bn2'])
    res = _bn_nchw(_conv2d_nchw(x, params['wd'], stride, 0, 1), params['bnd']) \
        if has_downsample else x
    return jax.nn.relu(out + res)


# ----------------------------------------------------------------------------
if __name__ == "__main__":
    key = jax.random.PRNGKey(0)

    # --- config A: stride-2 block, conv downsample (im2col path; lane-dense planes=128) ---
    B, Cin, planes, H, W = 8, 64, 128, 16, 16
    kp, kx, key = jax.random.split(key, 3)
    params_a = init_basic_block_params(kp, Cin, planes, has_downsample=True)
    x_a = jax.random.normal(kx, (B, Cin, H, W), jnp.float32)

    ref_a = jax.block_until_ready(basic_block_ref(params_a, x_a, stride=2, has_downsample=True))

    out_f32 = jax.block_until_ready(
        basic_block_forward(params_a, x_a, stride=2, has_downsample=True, use_bf16=False))
    assert out_f32.shape == (B, planes, H // 2, W // 2)
    np.testing.assert_allclose(np.asarray(out_f32), np.asarray(ref_a), rtol=1e-3, atol=1e-3)

    out_bf16 = jax.block_until_ready(
        basic_block_forward(params_a, x_a, stride=2, has_downsample=True, use_bf16=True))
    # bf16 MXU operands with f32 accumulation -> looser tolerance is expected here.
    np.testing.assert_allclose(np.asarray(out_bf16), np.asarray(ref_a), rtol=5e-2, atol=5e-2)

    # --- config B: stride-1 block, identity residual (in-kernel conv1, no im2col) ---
    B2, C2, H2, W2 = 2, 128, 16, 16
    kp, kx, key = jax.random.split(key, 3)
    params_b = init_basic_block_params(kp, C2, C2, has_downsample=False)
    x_b = jax.random.normal(kx, (B2, C2, H2, W2), jnp.float32)

    ref_b = jax.block_until_ready(basic_block_ref(params_b, x_b, stride=1, has_downsample=False))
    out_b = jax.block_until_ready(
        basic_block_forward(params_b, x_b, stride=1, has_downsample=False, use_bf16=False))
    assert out_b.shape == (B2, C2, H2, W2)
    np.testing.assert_allclose(np.asarray(out_b), np.asarray(ref_b), rtol=1e-3, atol=1e-3)

    out_b16 = jax.block_until_ready(
        basic_block_forward(params_b, x_b, stride=1, has_downsample=False, use_bf16=True))
    np.testing.assert_allclose(np.asarray(out_b16), np.asarray(ref_b), rtol=5e-2, atol=5e-2)

    print("KERNEL_OK")
</pallas_src>

<mosaic_0001>
module attributes {stable_mosaic.version = 11 : i64} {
  func.func @_basic_block_kernel(%arg0: i32, %arg1: memref<4x8x8x640xf32, #tpu.memory_space<vmem>>, %arg2: memref<4x8x8x64xf32, #tpu.memory_space<vmem>>, %arg3: memref<640x128xf32, #tpu.memory_space<vmem>>, %arg4: memref<1x128xf32, #tpu.memory_space<vmem>>, %arg5: memref<1x128xf32, #tpu.memory_space<vmem>>, %arg6: memref<1152x128xf32, #tpu.memory_space<vmem>>, %arg7: memref<1x128xf32, #tpu.memory_space<vmem>>, %arg8: memref<1x128xf32, #tpu.memory_space<vmem>>, %arg9: memref<64x128xf32, #tpu.memory_space<vmem>>, %arg10: memref<1x128xf32, #tpu.memory_space<vmem>>, %arg11: memref<1x128xf32, #tpu.memory_space<vmem>>, %arg12: memref<4x8x8x128xf32, #tpu.memory_space<vmem>>, %arg13: memref<256x1152xf32, #tpu.memory_space<vmem>>) attributes {dimension_semantics = [#tpu.dimension_semantics<parallel>], iteration_bounds = array<i64: 2>, scalar_prefetch = 0 : i64, scratch_operands = 1 : i64, tpu.core_type = #tpu.core_type<tc>, window_params = [{transform_indices = @transform_0, window_bounds = array<i64: 4, 8, 8, 640>}, {transform_indices = @transform_1, window_bounds = array<i64: 4, 8, 8, 64>}, {pipeline_mode = #tpu.pipeline_mode<synchronous>, transform_indices = @transform_2, window_bounds = array<i64: 640, 128>}, {pipeline_mode = #tpu.pipeline_mode<synchronous>, transform_indices = @transform_3, window_bounds = array<i64: 1, 128>}, {pipeline_mode = #tpu.pipeline_mode<synchronous>, transform_indices = @transform_4, window_bounds = array<i64: 1, 128>}, {pipeline_mode = #tpu.pipeline_mode<synchronous>, transform_indices = @transform_5, window_bounds = array<i64: 1152, 128>}, {pipeline_mode = #tpu.pipeline_mode<synchronous>, transform_indices = @transform_6, window_bounds = array<i64: 1, 128>}, {pipeline_mode = #tpu.pipeline_mode<synchronous>, transform_indices = @transform_7, window_bounds = array<i64: 1, 128>}, {pipeline_mode = #tpu.pipeline_mode<synchronous>, transform_indices = @transform_8, window_bounds = array<i64: 64, 128>}, {pipeline_mode = #tpu.pipeline_mode<synchronous>, transform_indices = @transform_9, window_bounds = array<i64: 1, 128>}, {pipeline_mode = #tpu.pipeline_mode<synchronous>, transform_indices = @transform_10, window_bounds = array<i64: 1, 128>}, {transform_indices = @transform_11, window_bounds = array<i64: 4, 8, 8, 128>}]} {
    %c0 = arith.constant 0 : index
    %c0_0 = arith.constant 0 : index
    %c0_1 = arith.constant 0 : index
    %c0_2 = arith.constant 0 : index
    %0 = vector.load %arg1[%c0, %c0_0, %c0_1, %c0_2] : memref<4x8x8x640xf32, #tpu.memory_space<vmem>>, vector<4x8x8x640xf32>
    %1 = vector.shape_cast %0 : vector<4x8x8x640xf32> to vector<256x640xf32>
    %c0_3 = arith.constant 0 : index
    %c0_4 = arith.constant 0 : index
    %2 = vector.load %arg3[%c0_3, %c0_4] : memref<640x128xf32, #tpu.memory_space<vmem>>, vector<640x128xf32>
    %cst = arith.constant dense<0.000000e+00> : vector<256x128xf32>
    %3 = tpu.matmul %1, %2, %cst {dimension_numbers = #tpu.dot_dimension_numbers<[1], [0], [0], [1], [0, 0, 1, 1], [], []>} : vector<256x640xf32>, vector<640x128xf32>, vector<256x128xf32> -> vector<256x128xf32>
    %c0_5 = arith.constant 0 : index
    %c0_6 = arith.constant 0 : index
    %4 = vector.load %arg4[%c0_5, %c0_6] : memref<1x128xf32, #tpu.memory_space<vmem>>, vector<1x128xf32>
    %5 = vector.broadcast %4 : vector<1x128xf32> to vector<256x128xf32>
    %6 = arith.mulf %3, %5 : vector<256x128xf32>
    %c0_7 = arith.constant 0 : index
    %c0_8 = arith.constant 0 : index
    %7 = vector.load %arg5[%c0_7, %c0_8] : memref<1x128xf32, #tpu.memory_space<vmem>>, vector<1x128xf32>
    %8 = vector.broadcast %7 : vector<1x128xf32> to vector<256x128xf32>
    %9 = arith.addf %6, %8 : vector<256x128xf32>
    %cst_9 = arith.constant 0.000000e+00 : f32
    %10 = vector.broadcast %cst_9 : f32 to vector<256x128xf32>
    %11 = arith.maximumf %9, %10 : vector<256x128xf32>
    %12 = vector.shape_cast %11 : vector<256x128xf32> to vector<4x8x8x128xf32>
    %13 = tpu.iota {dimensions = array<i32: 2>} : vector<4x8x8x128xi32>
    %cst_10 = arith.constant 0.000000e+00 : f32
    %14 = vector.broadcast %cst_10 : f32 to vector<4x1x8x128xf32>
    %15 = vector.extract_strided_slice %12 {offsets = [0, 0, 0, 0], sizes = [4, 7, 8, 128], strides = [1, 1, 1, 1]} : vector<4x8x8x128xf32> to vector<4x7x8x128xf32>
    %16 = tpu.concatenate %14, %15 in 1 : vector<4x1x8x128xf32>, vector<4x7x8x128xf32> -> vector<4x8x8x128xf32>
    %c7_i32 = arith.constant 7 : i32
    %17 = vector.broadcast %c7_i32 : i32 to vector<4x8x8x128xi32>
    %18 = arith.cmpi ne, %13, %17 : vector<4x8x8x128xi32>
    %cst_11 = arith.constant 0.000000e+00 : f32
    %19 = vector.broadcast %cst_11 : f32 to vector<4x8x8x128xf32>
    %20 = arith.select %18, %16, %19 : vector<4x8x8x128xi1>, vector<4x8x8x128xf32>
    %21 = vector.shape_cast %20 : vector<4x8x8x128xf32> to vector<256x128xf32>
    %c1_i32 = arith.constant 1 : i32
    %22 = tpu.dynamic_rotate %21 by %c1_i32 dim 0 : vector<256x128xf32>, i32 -> vector<256x128xf32>
    %c0_12 = arith.constant 0 : index
    %c0_13 = arith.constant 0 : index
    %23 = vector.load %arg13[%c0_12, %c0_13] : memref<256x1152xf32, #tpu.memory_space<vmem>>, vector<256x128xf32>
    tpu.vector_store %arg13[%c0_12, %c0_13], %22 {strides = array<i32>} : memref<256x1152xf32, #tpu.memory_space<vmem>>, vector<256x128xf32>,
    %24 = vector.shape_cast %16 : vector<4x8x8x128xf32> to vector<256x128xf32>
    %c0_14 = arith.constant 0 : index
    %c128 = arith.constant 128 : index
    %25 = vector.load %arg13[%c0_14, %c128] : memref<256x1152xf32, #tpu.memory_space<vmem>>, vector<256x128xf32>
    tpu.vector_store %arg13[%c0_14, %c128], %24 {strides = array<i32>} : memref<256x1152xf32, #tpu.memory_space<vmem>>, vector<256x128xf32>,
    %c0_i32 = arith.constant 0 : i32
    %26 = vector.broadcast %c0_i32 : i32 to vector<4x8x8x128xi32>
    %27 = arith.cmpi ne, %13, %26 : vector<4x8x8x128xi32>
    %cst_15 = arith.constant 0.000000e+00 : f32
    %28 = vector.broadcast %cst_15 : f32 to vector<4x8x8x128xf32>
    %29 = arith.select %27, %16, %28 : vector<4x8x8x128xi1>, vector<4x8x8x128xf32>
    %30 = vector.shape_cast %29 : vector<4x8x8x128xf32> to vector<256x128xf32>
    %c255_i32 = arith.constant 255 : i32
    %31 = tpu.dynamic_rotate %30 by %c255_i32 dim 0 : vector<256x128xf32>, i32 -> vector<256x128xf32>
    %c0_16 = arith.constant 0 : index
    %c256 = arith.constant 256 : index
    %32 = vector.load %arg13[%c0_16, %c256] : memref<256x1152xf32, #tpu.memory_space<vmem>>, vector<256x128xf32>
    tpu.vector_store %arg13[%c0_16, %c256], %31 {strides = array<i32>} : memref<256x1152xf32, #tpu.memory_space<vmem>>, vector<256x128xf32>,
    %c7_i32_17 = arith.constant 7 : i32
    %33 = vector.broadcast %c7_i32_17 : i32 to vector<4x8x8x128xi32>
    %34 = arith.cmpi ne, %13, %33 : vector<4x8x8x128xi32>
    %cst_18 = arith.constant 0.000000e+00 : f32
    %35 = vector.broadcast %cst_18 : f32 to vector<4x8x8x128xf32>
    %36 = arith.select %34, %12, %35 : vector<4x8x8x128xi1>, vector<4x8x8x128xf32>
    %37 = vector.shape_cast %36 : vector<4x8x8x128xf32> to vector<256x128xf32>
    %c1_i32_19 = arith.constant 1 : i32
    %38 = tpu.dynamic_rotate %37 by %c1_i32_19 dim 0 : vector<256x128xf32>, i32 -> vector<256x128xf32>
    %c0_20 = arith.constant 0 : index
    %c384 = arith.constant 384 : index
    %39 = vector.load %arg13[%c0_20, %c384] : memref<256x1152xf32, #tpu.memory_space<vmem>>, vector<256x128xf32>
    tpu.vector_store %arg13[%c0_20, %c384], %38 {strides = array<i32>} : memref<256x1152xf32, #tpu.memory_space<vmem>>, vector<256x128xf32>,
    %40 = vector.shape_cast %12 : vector<4x8x8x128xf32> to vector<256x128xf32>
    %c0_21 = arith.constant 0 : index
    %c512 = arith.constant 512 : index
    %41 = vector.load %arg13[%c0_21, %c512] : memref<256x1152xf32, #tpu.memory_space<vmem>>, vector<256x128xf32>
    tpu.vector_store %arg13[%c0_21, %c512], %40 {strides = array<i32>} : memref<256x1152xf32, #tpu.memory_space<vmem>>, vector<256x128xf32>,
    %c0_i32_22 = arith.constant 0 : i32
    %42 = vector.broadcast %c0_i32_22 : i32 to vector<4x8x8x128xi32>
    %43 = arith.cmpi ne, %13, %42 : vector<4x8x8x128xi32>
    %cst_23 = arith.constant 0.000000e+00 : f32
    %44 = vector.broadcast %cst_23 : f32 to vector<4x8x8x128xf32>
    %45 = arith.select %43, %12, %44 : vector<4x8x8x128xi1>, vector<4x8x8x128xf32>
    %46 = vector.shape_cast %45 : vector<4x8x8x128xf32> to vector<256x128xf32>
    %c255_i32_24 = arith.constant 255 : i32
    %47 = tpu.dynamic_rotate %46 by %c255_i32_24 dim 0 : vector<256x128xf32>, i32 -> vector<256x128xf32>
    %c0_25 = arith.constant 0 : index
    %c640 = arith.constant 640 : index
    %48 = vector.load %arg13[%c0_25, %c640] : memref<256x1152xf32, #tpu.memory_space<vmem>>, vector<256x128xf32>
    tpu.vector_store %arg13[%c0_25, %c640], %47 {strides = array<i32>} : memref<256x1152xf32, #tpu.memory_space<vmem>>, vector<256x128xf32>,
    %49 = vector.extract_strided_slice %12 {offsets = [0, 1, 0, 0], sizes = [4, 7, 8, 128], strides = [1, 1, 1, 1]} : vector<4x8x8x128xf32> to vector<4x7x8x128xf32>
    %50 = tpu.concatenate %49, %14 in 1 : vector<4x7x8x128xf32>, vector<4x1x8x128xf32> -> vector<4x8x8x128xf32>
    %c7_i32_26 = arith.constant 7 : i32
    %51 = vector.broadcast %c7_i32_26 : i32 to vector<4x8x8x128xi32>
    %52 = arith.cmpi ne, %13, %51 : vector<4x8x8x128xi32>
    %cst_27 = arith.constant 0.000000e+00 : f32
    %53 = vector.broadcast %cst_27 : f32 to vector<4x8x8x128xf32>
    %54 = arith.select %52, %50, %53 : vector<4x8x8x128xi1>, vector<4x8x8x128xf32>
    %55 = vector.shape_cast %54 : vector<4x8x8x128xf32> to vector<256x128xf32>
    %c1_i32_28 = arith.constant 1 : i32
    %56 = tpu.dynamic_rotate %55 by %c1_i32_28 dim 0 : vector<256x128xf32>, i32 -> vector<256x128xf32>
    %c0_29 = arith.constant 0 : index
    %c768 = arith.constant 768 : index
    %57 = vector.load %arg13[%c0_29, %c768] : memref<256x1152xf32, #tpu.memory_space<vmem>>, vector<256x128xf32>
    tpu.vector_store %arg13[%c0_29, %c768], %56 {strides = array<i32>} : memref<256x1152xf32, #tpu.memory_space<vmem>>, vector<256x128xf32>,
    %58 = vector.shape_cast %50 : vector<4x8x8x128xf32> to vector<256x128xf32>
    %c0_30 = arith.constant 0 : index
    %c896 = arith.constant 896 : index
    %59 = vector.load %arg13[%c0_30, %c896] : memref<256x1152xf32, #tpu.memory_space<vmem>>, vector<256x128xf32>
    tpu.vector_store %arg13[%c0_30, %c896], %58 {strides = array<i32>} : memref<256x1152xf32, #tpu.memory_space<vmem>>, vector<256x128xf32>,
    %c0_i32_31 = arith.constant 0 : i32
    %60 = vector.broadcast %c0_i32_31 : i32 to vector<4x8x8x128xi32>
    %61 = arith.cmpi ne, %13, %60 : vector<4x8x8x128xi32>
    %cst_32 = arith.constant 0.000000e+00 : f32
    %62 = vector.broadcast %cst_32 : f32 to vector<4x8x8x128xf32>
    %63 = arith.select %61, %50, %62 : vector<4x8x8x128xi1>, vector<4x8x8x128xf32>
    %64 = vector.shape_cast %63 : vector<4x8x8x128xf32> to vector<256x128xf32>
    %c255_i32_33 = arith.constant 255 : i32
    %65 = tpu.dynamic_rotate %64 by %c255_i32_33 dim 0 : vector<256x128xf32>, i32 -> vector<256x128xf32>
    %c0_34 = arith.constant 0 : index
    %c1024 = arith.constant 1024 : index
    %66 = vector.load %arg13[%c0_34, %c1024] : memref<256x1152xf32, #tpu.memory_space<vmem>>, vector<256x128xf32>
    tpu.vector_store %arg13[%c0_34, %c1024], %65 {strides = array<i32>} : memref<256x1152xf32, #tpu.memory_space<vmem>>, vector<256x128xf32>,
    %c0_35 = arith.constant 0 : index
    %c0_36 = arith.constant 0 : index
    %67 = vector.load %arg13[%c0_35, %c0_36] : memref<256x1152xf32, #tpu.memory_space<vmem>>, vector<256x1152xf32>
    %c0_37 = arith.constant 0 : index
    %c0_38 = arith.constant 0 : index
    %68 = vector.load %arg6[%c0_37, %c0_38] : memref<1152x128xf32, #tpu.memory_space<vmem>>, vector<1152x128xf32>
    %cst_39 = arith.constant dense<0.000000e+00> : vector<256x128xf32>
    %69 = tpu.matmul %67, %68, %cst_39 {dimension_numbers = #tpu.dot_dimension_numbers<[1], [0], [0], [1], [0, 0, 1, 1], [], []>} : vector<256x1152xf32>, vector<1152x128xf32>, vector<256x128xf32> -> vector<256x128xf32>
    %c0_40 = arith.constant 0 : index
    %c0_41 = arith.constant 0 : index
    %70 = vector.load %arg7[%c0_40, %c0_41] : memref<1x128xf32, #tpu.memory_space<vmem>>, vector<1x128xf32>
    %71 = vector.broadcast %70 : vector<1x128xf32> to vector<256x128xf32>
    %72 = arith.mulf %69, %71 : vector<256x128xf32>
    %c0_42 = arith.constant 0 : index
    %c0_43 = arith.constant 0 : index
    %73 = vector.load %arg8[%c0_42, %c0_43] : memref<1x128xf32, #tpu.memory_space<vmem>>, vector<1x128xf32>
    %74 = vector.broadcast %73 : vector<1x128xf32> to vector<256x128xf32>
    %75 = arith.addf %72, %74 : vector<256x128xf32>
    %c0_44 = arith.constant 0 : index
    %c0_45 = arith.constant 0 : index
    %c0_46 = arith.constant 0 : index
    %c0_47 = arith.constant 0 : index
    %76 = vector.load %arg2[%c0_44, %c0_45, %c0_46, %c0_47] : memref<4x8x8x64xf32, #tpu.memory_space<vmem>>, vector<4x8x8x64xf32>
    %77 = vector.shape_cast %76 : vector<4x8x8x64xf32> to vector<256x64xf32>
    %c0_48 = arith.constant 0 : index
    %c0_49 = arith.constant 0 : index
    %78 = vector.load %arg9[%c0_48, %c0_49] : memref<64x128xf32, #tpu.memory_space<vmem>>, vector<64x128xf32>
    %cst_50 = arith.constant dense<0.000000e+00> : vector<256x128xf32>
    %79 = tpu.matmul %77, %78, %cst_50 {dimension_numbers = #tpu.dot_dimension_numbers<[1], [0], [0], [1], [0, 0, 1, 1], [], []>} : vector<256x64xf32>, vector<64x128xf32>, vector<256x128xf32> -> vector<256x128xf32>
    %c0_51 = arith.constant 0 : index
    %c0_52 = arith.constant 0 : index
    %80 = vector.load %arg10[%c0_51, %c0_52] : memref<1x128xf32, #tpu.memory_space<vmem>>, vector<1x128xf32>
    %81 = vector.broadcast %80 : vector<1x128xf32> to vector<256x128xf32>
    %82 = arith.mulf %79, %81 : vector<256x128xf32>
    %c0_53 = arith.constant 0 : index
    %c0_54 = arith.constant 0 : index
    %83 = vector.load %arg11[%c0_53, %c0_54] : memref<1x128xf32, #tpu.memory_space<vmem>>, vector<1x128xf32>
    %84 = vector.broadcast %83 : vector<1x128xf32> to vector<256x128xf32>
    %85 = arith.addf %82, %84 : vector<256x128xf32>
    %86 = arith.addf %75, %85 : vector<256x128xf32>
    %cst_55 = arith.constant 0.000000e+00 : f32
    %87 = vector.broadcast %cst_55 : f32 to vector<256x128xf32>
    %88 = arith.maximumf %86, %87 : vector<256x128xf32>
    %89 = vector.shape_cast %88 : vector<256x128xf32> to vector<4x8x8x128xf32>
    %c0_56 = arith.constant 0 : index
    %c0_57 = arith.constant 0 : index
    %c0_58 = arith.constant 0 : index
    %c0_59 = arith.constant 0 : index
    %90 = vector.load %arg12[%c0_56, %c0_57, %c0_58, %c0_59] : memref<4x8x8x128xf32, #tpu.memory_space<vmem>>, vector<4x8x8x128xf32>
    tpu.vector_store %arg12[%c0_56, %c0_57, %c0_58, %c0_59], %89 {strides = array<i32>} : memref<4x8x8x128xf32, #tpu.memory_space<vmem>>, vector<4x8x8x128xf32>,
    return
  }
  func.func @transform_0(%arg0: i32) -> (i32, i32, i32, i32) {
    %c0_i32 = arith.constant 0 : i32
    %c0_i32_0 = arith.constant 0 : i32
    %c0_i32_1 = arith.constant 0 : i32
    %c0_i32_2 = arith.constant 0 : i32
    return %arg0, %c0_i32, %c0_i32_0, %c0_i32_1 : i32, i32, i32, i32
  }
  func.func @transform_1(%arg0: i32) -> (i32, i32, i32, i32) {
    %c0_i32 = arith.constant 0 : i32
    %c0_i32_0 = arith.constant 0 : i32
    %c0_i32_1 = arith.constant 0 : i32
    %c0_i32_2 = arith.constant 0 : i32
    return %arg0, %c0_i32, %c0_i32_0, %c0_i32_1 : i32, i32, i32, i32
  }
  func.func @transform_2(%arg0: i32) -> (i32, i32) {
    %c0_i32 = arith.constant 0 : i32
    %c0_i32_0 = arith.constant 0 : i32
    %c0_i32_1 = arith.constant 0 : i32
    return %c0_i32, %c0_i32_0 : i32, i32
  }
  func.func @transform_3(%arg0: i32) -> (i32, i32) {
    %c0_i32 = arith.constant 0 : i32
    %c0_i32_0 = arith.constant 0 : i32
    %c0_i32_1 = arith.constant 0 : i32
    return %c0_i32, %c0_i32_0 : i32, i32
  }
  func.func @transform_4(%arg0: i32) -> (i32, i32) {
    %c0_i32 = arith.constant 0 : i32
    %c0_i32_0 = arith.constant 0 : i32
    %c0_i32_1 = arith.constant 0 : i32
    return %c0_i32, %c0_i32_0 : i32, i32
  }
  func.func @transform_5(%arg0: i32) -> (i32, i32) {
    %c0_i32 = arith.constant 0 : i32
    %c0_i32_0 = arith.constant 0 : i32
    %c0_i32_1 = arith.constant 0 : i32
    return %c0_i32, %c0_i32_0 : i32, i32
  }
  func.func @transform_6(%arg0: i32) -> (i32, i32) {
    %c0_i32 = arith.constant 0 : i32
    %c0_i32_0 = arith.constant 0 : i32
    %c0_i32_1 = arith.constant 0 : i32
    return %c0_i32, %c0_i32_0 : i32, i32
  }
  func.func @transform_7(%arg0: i32) -> (i32, i32) {
    %c0_i32 = arith.constant 0 : i32
    %c0_i32_0 = arith.constant 0 : i32
    %c0_i32_1 = arith.constant 0 : i32
    return %c0_i32, %c0_i32_0 : i32, i32
  }
  func.func @transform_8(%arg0: i32) -> (i32, i32) {
    %c0_i32 = arith.constant 0 : i32
    %c0_i32_0 = arith.constant 0 : i32
    %c0_i32_1 = arith.constant 0 : i32
    return %c0_i32, %c0_i32_0 : i32, i32
  }
  func.func @transform_9(%arg0: i32) -> (i32, i32) {
    %c0_i32 = arith.constant 0 : i32
    %c0_i32_0 = arith.constant 0 : i32
    %c0_i32_1 = arith.constant 0 : i32
    return %c0_i32, %c0_i32_0 : i32, i32
  }
  func.func @transform_10(%arg0: i32) -> (i32, i32) {
    %c0_i32 = arith.constant 0 : i32
    %c0_i32_0 = arith.constant 0 : i32
    %c0_i32_1 = arith.constant 0 : i32
    return %c0_i32, %c0_i32_0 : i32, i32
  }
  func.func @transform_11(%arg0: i32) -> (i32, i32, i32, i32) {
    %c0_i32 = arith.constant 0 : i32
    %c0_i32_0 = arith.constant 0 : i32
    %c0_i32_1 = arith.constant 0 : i32
    %c0_i32_2 = arith.constant 0 : i32
    return %arg0, %c0_i32, %c0_i32_0, %c0_i32_1 : i32, i32, i32, i32
  }
}

</mosaic_0001>

<bundles_post_ra>
// kernel: basic_block_forward.1
= control target key start
LH: loop header
LB: loop body
LE: loop exit
PB: predicated region body
PF: predicated region fallthrough
CT: control target
= control target key end

     0   :  { %s8339_s0 = inlined_call_operand.vmem [shape: f32[8,8,8,640], index: 0, kind: input, shape index: {}]   ;;  %s8340_s1 = inlined_call_operand.vmem [shape: f32[8,8,8,64], index: 1, kind: input, shape index: {}]   ;;  %s8341_s2 = inlined_call_operand.vmem [shape: f32[640,128], index: 2, kind: input, shape index: {}]   ;;  %s8342_s3 = inlined_call_operand.vmem [shape: f32[1,128], index: 3, kind: input, shape index: {}]   ;;  %s8343_s4 = inlined_call_operand.vmem [shape: f32[1,128], index: 4, kind: input, shape index: {}]   ;;  %s8344_s5 = inlined_call_operand.vmem [shape: f32[1152,128], index: 5, kind: input, shape index: {}]   ;;  %s8345_s6 = inlined_call_operand.vmem [shape: f32[1,128], index: 6, kind: input, shape index: {}]   ;;  %s8346_s7 = inlined_call_operand.vmem [shape: f32[1,128], index: 7, kind: input, shape index: {}]   ;;  %s8347_s8 = inlined_call_operand.vmem [shape: f32[64,128], index: 8, kind: input, shape index: {}]   ;;  %s8348_s9 = inlined_call_operand.vmem [shape: f32[1,128], index: 9, kind: input, shape index: {}]   ;;  %s8349_s10 = inlined_call_operand.vmem [shape: f32[1,128], index: 10, kind: input, shape index: {}]   ;;  %s8350_s11 = inlined_call_operand.hbm [shape: f32[8,8,8,128], index: 11, kind: output, shape index: {}]  }
   0x1   :  { %8463 = sst [smem:[#allocation99_spill]] %s8339_s0 }
   0x2   :  { %16 = vsyncpa [#allocation4], 0 }
   0x3   :  { %18 = vsyncpa [#allocation4 + $0x1], 0  ;;  %s5495_s17 = smov 0   ;;  %s5497_s18 = smov 0  }
   0x4   :  { %s5499_s19 = smov 0   ;;  %s5501_s20 = smov 0  }
   0x5 LB: > { %s5516_s21 = sadd.s32 4294967295, %s5428_s20   ;;  %s4219_s22 = sadd.s32 4294967294, %s5428_s20   ;;  %s5428_s20 = sphi %s5501_s20, %s8730_s20   ;;  %s5424_s19 = sphi %s5499_s19, %s8729_s19   ;;  %s5420_s18 = sphi %s5497_s18, %s8728_s18   ;;  %s5416_s17 = sphi %s5495_s17, %s8727_s17  }
   0x6   : > { %s5520_s23 = sadd.s32 1, %s5428_s20   ;;  %s272_s24 = sadd.s32 1, %s5424_s19 }
   0x7   : > { %s269_s25 = ssub.s32 %s5428_s20, %s5520_s23  ;;  %p282_p0 = scmp.ne.s32.totalorder %s5424_s19, %s5420_s18 }
   0x8   : > { %p270_p1 = scmp.eq.s32.totalorder %s269_s25, 0  ;;  %p283_p2 = scmp.eq.s32.totalorder %s5516_s21, 1 }
   0x9   : > { %p288_p3 = scmp.ne.s32.totalorder %s5420_s18, %s5416_s17  ;;  %p289_p4 = scmp.eq.s32.totalorder %s4219_s22, 1 }
   0xa   : > { %s5531_s26 = scalar_select %p270_p1, %s5424_s19, %s272_s24  }
   0xb   : > { %p5533_p5 = por %p283_p2, %p282_p0  ;;  %p5537_p6 = por %p289_p4, %p288_p3 }
   0xc   : > { %8464 = sst [smem:[#allocation6_spill]] %s5531_s26  ;;  %p4222_p7 = scmp.ge.s32.totalorder %s5428_s20, 1 }
   0xd   : > { %p354_p8 = scmp.lt.s32.totalorder %s5428_s20, 3 }
   0xf   : > { %p355_p9 = pnand %p4222_p7, %p354_p8 }
  0x11   : > { %358 = sbr.rel (%p355_p9) target bundleno = 1226 (0x4ca), region = 64 }
  0x18   : > { %v576_v0 = vld [vmem:[%s8341_s2] sm:$0xff]  ;;  %v577_v1 = vld [vmem:[%s8341_s2 + $0x8] sm:$0xff]  ;;  %v578_v2 = vld [vmem:[%s8341_s2 + $0x10] sm:$0xff]  ;;  %s4224_s16 = sshll.u32 %s5516_s21, 2  ;;  %v8351_v3 = vmov 0.0|0.0   ;;  %s8467_s0 = sld [smem:[#allocation99_spill]] }
  0x19   : > { %4684 = vmatprep.subr.bf16.mxu0 %v8351_v3  ;;  %v4685_v4 = vpack.c.bf16 %v577_v1, %v576_v0  ;;  %v579_v5 = vld [vmem:[%s8341_s2 + $0x18] sm:$0xff]  ;;  %p402_p10 = scmp.lt.s32.totalorder %s4224_s16, 7  ;;  %v580_v7 = vld [vmem:[%s8341_s2 + $0x20] sm:$0xff]  ;;  %v581_v8 = vld [vmem:[%s8341_s2 + $0x28] sm:$0xff]  ;;  %vm3634_vm6 = vcmask 523264   ;;  %s4275_s29 = sshll.u32 %s5516_s21, 12 }
  0x1a   : > { %v4688_v6 = vpack.c.bf16 %v579_v5, %v578_v2  ;;  %v4691_v9 = vpack.c.bf16 %v581_v8, %v580_v7  ;;  %v582_v10 = vld [vmem:[%s8341_s2 + $0x30] sm:$0xff]  ;;  %v583_v11 = vld [vmem:[%s8341_s2 + $0x38] sm:$0xff]  ;;  %v584_v14 = vld [vmem:[%s8341_s2 + $0x40] sm:$0xff]  ;;  %s5432_s21 = smov [#allocation3]  }
  0x1b   : > { %4686 = vmatpush1.bf16.msra.mxu0 %v4685_v4  ;;  %s8732_s16 = smov (!%p402_p10, %s4224_s16), 7  ;;  %v4694_v13 = vpack.c.bf16 %v583_v11, %v582_v10  ;;  %v585_v15 = vld [vmem:[%s8341_s2 + $0x48] sm:$0xff]  ;;  %v586_v17 = vld [vmem:[%s8341_s2 + $0x50] sm:$0xff]  ;;  %v587_v18 = vld [vmem:[%s8341_s2 + $0x58] sm:$0xff]  ;;  %s5370_s14 = sshll.u32 %s5432_s21, 4  ;;  %s5371_s14 = int_to_ptr.vmem [resolvable:$false] %s5370_s14 }
  0x1c   : > { %4687 = vmatprep.subr.bf16.mxu0 %v8351_v3  ;;  %s5320_s13 = smul.u32 320, %s8732_s16  ;;  %v4697_v16 = vpack.c.bf16 %v585_v15, %v584_v14  ;;  %v4700_v19 = vpack.c.bf16 %v587_v18, %v586_v17  ;;  %v588_v20 = vld [vmem:[%s8341_s2 + $0x60] sm:$0xff]  ;;  %v589_v21 = vld [vmem:[%s8341_s2 + $0x68] sm:$0xff]  ;;  %v590_v23 = vld [vmem:[%s8341_s2 + $0x70] sm:$0xff]  ;;  %s4273_s26 = sshll.u32 %s8732_s16, 6 }
  0x1d   : > { %v4703_v22 = vpack.c.bf16 %v589_v21, %v588_v20  ;;  %v591_v24 = vld [vmem:[%s8341_s2 + $0x78] sm:$0xff]  ;;  %v592_v26 = vld [vmem:[%s8341_s2 + $0x80] sm:$0xff]  ;;  %v593_v27 = vld [vmem:[%s8341_s2 + $0x88] sm:$0xff]  ;;  %s7425_s25 = scalar_lea.vmem %s8340_s1, %s4273_s26  ;;  %s5372_s26 = scalar_lea.vmem %s5371_s14, 8192 }
  0x1e   : > { %s5570_s22 = scalar_lea.vmem %s8467_s0, %s5320_s13  ;;  %v4706_v25 = vpack.c.bf16 %v591_v24, %v590_v23  ;;  %v4709_v28 = vpack.c.bf16 %v593_v27, %v592_v26  ;;  %v594_v29 = vld [vmem:[%s8341_s2 + $0x90] sm:$0xff]  ;;  %v595_v30 = vld [vmem:[%s8341_s2 + $0x98] sm:$0xff]  ;;  %v640_v32 = vld [vmem:[%s8341_s2 + $0x200] sm:$0xff]  ;;  %s398_s13 = sand.u32 1, %s5420_s18  }
  0x1f   : > { %4689 = vmatpush1.bf16.msra.mxu0 %v4688_v6  ;;  %v417_v12 = vld [vmem:[%s5570_s22 + $0x8] sm:$0xff]  ;;  %v4712_v31 = vpack.c.bf16 %v595_v30, %v594_v29  ;;  %v596_v34 = vld [vmem:[%s8341_s2 + $0xa0] sm:$0xff]  ;;  %v642_v37 = vld [vmem:[%s8341_s2 + $0x210] sm:$0xff]  ;;  %s4223_s15 = sshll.u32 %s398_s13, 8  ;;  %s8291_s0 = scalar_lea.hbm %s8350_s11, %s4275_s29 }
  0x20   : > { %4690 = vmatprep.subr.bf16.mxu0 %v8351_v3  ;;  %720 = vmatprep.mubr.f32.mxu0 %v417_v12  ;;  %v641_v33 = vld [vmem:[%s8341_s2 + $0x208] sm:$0xff]  ;;  %v643_v38 = vld [vmem:[%s8341_s2 + $0x218] sm:$0xff]  ;;  %v644_v40 = vld [vmem:[%s8341_s2 + $0x220] sm:$0xff]  ;;  %s8044_s24 = scalar_lea.vmem [#allocation3], %s4223_s15  ;;  %s8298_s12 = scalar_lea.sflag [#allocation4], %s398_s13 }
  0x21   : > { %v597_v35 = vld [vmem:[%s8341_s2 + $0xa8] sm:$0xff]  ;;  %v4780_v36 = vpack.c.bf16 %v641_v33, %v640_v32  ;;  %v4784_v39 = vpack.c.bf16 %v643_v38, %v642_v37  ;;  %v598_v43 = vld [vmem:[%s8341_s2 + $0xb0] sm:$0xff]  ;;  %v599_v44 = vld [vmem:[%s8341_s2 + $0xb8] sm:$0xff] }
  0x22   : > { %v645_v41 = vld [vmem:[%s8341_s2 + $0x228] sm:$0xff]  ;;  %v4715_v42 = vpack.c.bf16 %v597_v35, %v596_v34  ;;  %v4718_v46 = vpack.c.bf16 %v599_v44, %v598_v43  ;;  %v646_v47 = vld [vmem:[%s8341_s2 + $0x230] sm:$0xff]  ;;  %v647_v48 = vld [vmem:[%s8341_s2 + $0x238] sm:$0xff] }
  0x23   : > { %4692 = vmatpush1.bf16.msra.mxu0 %v4691_v9  ;;  %4781 = vmatprep.subr.bf16.mxu1 %v4780_v36  ;;  %v4788_v45 = vpack.c.bf16 %v645_v41, %v644_v40  ;;  %v600_v49 = vld [vmem:[%s8341_s2 + $0xc0] sm:$0xff]  ;;  %v601_v50 = vld [vmem:[%s8341_s2 + $0xc8] sm:$0xff]  ;;  %v4792_v51 = vpack.c.bf16 %v647_v48, %v646_v47  ;;  %v602_v55 = vld [vmem:[%s8341_s2 + $0xd0] sm:$0xff] }
  0x24   : > { %4693 = vmatprep.subr.bf16.mxu0 %v8351_v3  ;;  %4783 = vmatpush3.bf16.msra.mxu1 %v4780_v36  ;;  %v648_v52 = vld [vmem:[%s8341_s2 + $0x240] sm:$0xff]  ;;  %v649_v53 = vld [vmem:[%s8341_s2 + $0x248] sm:$0xff]  ;;  %v4721_v54 = vpack.c.bf16 %v601_v50, %v600_v49  ;;  %v603_v56 = vld [vmem:[%s8341_s2 + $0xd8] sm:$0xff] }
  0x25   : > { %4785 = vmatprep.subr.bf16.mxu1 %v4784_v39  ;;  %v4796_v57 = vpack.c.bf16 %v649_v53, %v648_v52  ;;  %v4724_v58 = vpack.c.bf16 %v603_v56, %v602_v55  ;;  %v650_v59 = vld [vmem:[%s8341_s2 + $0x250] sm:$0xff]  ;;  %v651_v60 = vld [vmem:[%s8341_s2 + $0x258] sm:$0xff]  ;;  %v604_v61 = vld [vmem:[%s8341_s2 + $0xe0] sm:$0xff] }
  0x26   : > { %v605_v62 = vld [vmem:[%s8341_s2 + $0xe8] sm:$0xff]  ;;  %v4800_v63 = vpack.c.bf16 %v651_v60, %v650_v59  ;;  %v652_v0 = vld [vmem:[%s8341_s2 + $0x260] sm:$0xff]  ;;  %v606_v4 = vld [vmem:[%s8341_s2 + $0xf0] sm:$0xff] }
  0x27   : > { %4695 = vmatpush1.bf16.msra.mxu0 %v4694_v13  ;;  %v653_v1 = vld [vmem:[%s8341_s2 + $0x268] sm:$0xff]  ;;  %v4727_v2 = vpack.c.bf16 %v605_v62, %v604_v61  ;;  %v607_v5 = vld [vmem:[%s8341_s2 + $0xf8] sm:$0xff]  ;;  %v654_v8 = vld [vmem:[%s8341_s2 + $0x270] sm:$0xff] }
  0x28   : > { %4696 = vmatprep.subr.bf16.mxu0 %v8351_v3  ;;  %4787 = vmatpush3.bf16.msra.mxu1 %v4784_v39  ;;  %v4804_v6 = vpack.c.bf16 %v653_v1, %v652_v0  ;;  %v4730_v7 = vpack.c.bf16 %v607_v5, %v606_v4  ;;  %v655_v9 = vld [vmem:[%s8341_s2 + $0x278] sm:$0xff]  ;;  %v608_v10 = vld [vmem:[%s8341_s2 + $0x100] sm:$0xff]  ;;  %v609_v11 = vld [vmem:[%s8341_s2 + $0x108] sm:$0xff] }
  0x29   : > { %4789 = vmatprep.subr.bf16.mxu1 %v4788_v45  ;;  %v4808_v12 = vpack.c.bf16 %v655_v9, %v654_v8  ;;  %v420_v13 = vld [vmem:[%s5570_s22 + $0x20] sm:$0xff]  ;;  %v4733_v15 = vpack.c.bf16 %v609_v11, %v608_v10  ;;  %v610_v17 = vld [vmem:[%s8341_s2 + $0x110] sm:$0xff]  ;;  %v611_v18 = vld [vmem:[%s8341_s2 + $0x118] sm:$0xff] }
  0x2a   : > { %v416_v14 = vld [vmem:[%s5570_s22] sm:$0xff]  ;;  %4492 = vmatprep.mubr.f32.mxu1 %v420_v13  ;;  %v4736_v20 = vpack.c.bf16 %v611_v18, %v610_v17  ;;  %v427_v21 = vld [vmem:[%s5570_s22 + $0x58] sm:$0xff]  ;;  %v613_v23 = vld [vmem:[%s8341_s2 + $0x128] sm:$0xff] }
  0x2b   : > { %4698 = vmatpush1.bf16.msra.mxu0 %v4697_v16  ;;  %v422_v16 = vld [vmem:[%s5570_s22 + $0x30] sm:$0xff]  ;;  %v425_v24 = vld [vmem:[%s5570_s22 + $0x48] sm:$0xff]  ;;  %v615_v30 = vld [vmem:[%s8341_s2 + $0x138] sm:$0xff] }
  0x2c   : > { %4699 = vmatprep.subr.bf16.mxu0 %v8351_v3  ;;  %4791 = vmatpush3.bf16.msra.mxu1 %v4788_v45  ;;  %v426_v26 = vld [vmem:[%s5570_s22 + $0x50] sm:$0xff]  ;;  %v431_v32 = vld [vmem:[%s5570_s22 + $0x78] sm:$0xff]  ;;  %v437_v34 = vld [vmem:[%s5570_s22 + $0xa8] sm:$0xff] }
  0x2d   : > { %4793 = vmatprep.subr.bf16.mxu1 %v4792_v51  ;;  %v614_v29 = vld [vmem:[%s8341_s2 + $0x130] sm:$0xff]  ;;  %v616_v35 = vld [vmem:[%s8341_s2 + $0x140] sm:$0xff]  ;;  %v617_v36 = vld [vmem:[%s8341_s2 + $0x148] sm:$0xff] }
  0x2e   : > { %v4742_v33 = vpack.c.bf16 %v615_v30, %v614_v29  ;;  %v440_v37 = vld [vmem:[%s5570_s22 + $0xc0] sm:$0xff]  ;;  %v4745_v39 = vpack.c.bf16 %v617_v36, %v616_v35  ;;  %v445_v40 = vld [vmem:[%s5570_s22 + $0xe8] sm:$0xff]  ;;  %v442_v41 = vld [vmem:[%s5570_s22 + $0xd0] sm:$0xff] }
  0x2f   : > { %4701 = vmatpush1.bf16.msra.mxu0 %v4700_v19  ;;  %v421_v19 = vld [vmem:[%s5570_s22 + $0x28] sm:$0xff]  ;;  %v436_v38 = vld [vmem:[%s5570_s22 + $0xa0] sm:$0xff]  ;;  %v619_v43 = vld [vmem:[%s8341_s2 + $0x158] sm:$0xff] }
  0x30   : > { %4702 = vmatprep.subr.bf16.mxu0 %v8351_v3  ;;  %4795 = vmatpush3.bf16.msra.mxu1 %v4792_v51  ;;  %v441_v44 = vld [vmem:[%s5570_s22 + $0xc8] sm:$0xff]  ;;  %v620_v47 = vld [vmem:[%s8341_s2 + $0x160] sm:$0xff]  ;;  %v450_v49 = vld [vmem:[%s5570_s22 + $0x110] sm:$0xff] }
  0x31   : > { %4797 = vmatprep.subr.bf16.mxu1 %v4796_v57  ;;  %v621_v48 = vld [vmem:[%s8341_s2 + $0x168] sm:$0xff]  ;;  %v446_v50 = vld [vmem:[%s5570_s22 + $0xf0] sm:$0xff]  ;;  %v455_v52 = vld [vmem:[%s5570_s22 + $0x138] sm:$0xff] }
  0x32   : > { %v4751_v51 = vpack.c.bf16 %v621_v48, %v620_v47  ;;  %v452_v53 = vld [vmem:[%s5570_s22 + $0x120] sm:$0xff]  ;;  %v623_v55 = vld [vmem:[%s8341_s2 + $0x178] sm:$0xff]  ;;  %v625_v60 = vld [vmem:[%s8341_s2 + $0x188] sm:$0xff] }
  0x33   : > { %4704 = vmatpush1.bf16.msra.mxu0 %v4703_v22  ;;  %v612_v22 = vld [vmem:[%s8341_s2 + $0x120] sm:$0xff]  ;;  %v451_v56 = vld [vmem:[%s5570_s22 + $0x118] sm:$0xff]  ;;  %v465_v0 = vld [vmem:[%s5570_s22 + $0x188] sm:$0xff] }
  0x34   : > { %4705 = vmatprep.subr.bf16.mxu0 %v8351_v3  ;;  %4799 = vmatpush3.bf16.msra.mxu1 %v4796_v57  ;;  %v4739_v27 = vpack.c.bf16 %v613_v23, %v612_v22  ;;  %v624_v59 = vld [vmem:[%s8341_s2 + $0x180] sm:$0xff]  ;;  %v462_v1 = vld [vmem:[%s5570_s22 + $0x170] sm:$0xff]  ;;  %v627_v4 = vld [vmem:[%s8341_s2 + $0x198] sm:$0xff] }
  0x35   : > { %4801 = vmatprep.subr.bf16.mxu1 %v4800_v63  ;;  %v460_v61 = vld [vmem:[%s5570_s22 + $0x160] sm:$0xff]  ;;  %v461_v5 = vld [vmem:[%s5570_s22 + $0x168] sm:$0xff]  ;;  %v470_v10 = vld [vmem:[%s5570_s22 + $0x1b0] sm:$0xff] }
  0x36   : > { %v456_v62 = vld [vmem:[%s5570_s22 + $0x140] sm:$0xff]  ;;  %v629_v9 = vld [vmem:[%s8341_s2 + $0x1a8] sm:$0xff]  ;;  %v466_v11 = vld [vmem:[%s5570_s22 + $0x190] sm:$0xff] }
  0x37   : > { %4707 = vmatpush1.bf16.msra.mxu0 %v4706_v25  ;;  %v430_v25 = vld [vmem:[%s5570_s22 + $0x70] sm:$0xff]  ;;  %v628_v8 = vld [vmem:[%s8341_s2 + $0x1a0] sm:$0xff]  ;;  %v475_v13 = vld [vmem:[%s5570_s22 + $0x1d8] sm:$0xff] }
  0x38   : > { %4708 = vmatprep.subr.bf16.mxu0 %v8351_v3  ;;  %4803 = vmatpush3.bf16.msra.mxu1 %v4800_v63  ;;  %v4757_v63 = vpack.c.bf16 %v625_v60, %v624_v59  ;;  %v471_v17 = vld [vmem:[%s5570_s22 + $0x1b8] sm:$0xff]  ;;  %v480_v22 = vld [vmem:[%s5570_s22 + $0x200] sm:$0xff]  ;;  %v481_v29 = vld [vmem:[%s5570_s22 + $0x208] sm:$0xff] }
  0x39   : > { %4805 = vmatprep.subr.bf16.mxu1 %v4804_v6  ;;  %v476_v23 = vld [vmem:[%s5570_s22 + $0x1e0] sm:$0xff]  ;;  %v486_v35 = vld [vmem:[%s5570_s22 + $0x230] sm:$0xff]  ;;  %v501_v48 = vld [vmem:[%s5570_s22 + $0x2a8] sm:$0xff] }
  0x3a   : > { %v502_v47 = vld [vmem:[%s5570_s22 + $0x2b0] sm:$0xff]  ;;  %v521_v60 = vld [vmem:[%s5570_s22 + $0x348] sm:$0xff] }
  0x3b   : > { %4710 = vmatpush1.bf16.msra.mxu0 %v4709_v28  ;;  %v432_v28 = vld [vmem:[%s5570_s22 + $0x80] sm:$0xff]  ;;  %v522_v59 = vld [vmem:[%s5570_s22 + $0x350] sm:$0xff] }
  0x3c   : > { %4711 = vmatprep.subr.bf16.mxu0 %v8351_v3  ;;  %4807 = vmatpush3.bf16.msra.mxu1 %v4804_v6 }
  0x3d   : > { %4809 = vmatprep.subr.bf16.mxu1 %v4808_v12 }
  0x3f   : > { %4713 = vmatpush1.bf16.msra.mxu0 %v4712_v31  ;;  %v435_v31 = vld [vmem:[%s5570_s22 + $0x98] sm:$0xff] }
  0x40   : > { %4714 = vmatprep.subr.bf16.mxu0 %v8351_v3  ;;  %4811 = vmatpush3.bf16.msra.mxu1 %v4808_v12  ;;  %v4763_v12 = vpack.c.bf16 %v629_v9, %v628_v8  ;;  %v542_v8 = vld [vmem:[%s5570_s22 + $0x3f0] sm:$0xff]  ;;  %v541_v9 = vld [vmem:[%s5570_s22 + $0x3e8] sm:$0xff] }
  0x41   : > { %4812 = vmatprep.subr.bf16.mxu1 %v8351_v3 }
  0x43   : > { %4716 = vmatpush1.bf16.msra.mxu0 %v4715_v42  ;;  %4493 = vmatmul.mubr.f32.vlgmr.msra.gmra.mrb[0].mxu1 %v425_v24  ;;  %v618_v42 = vld [vmem:[%s8341_s2 + $0x150] sm:$0xff] }
  0x44   : > { %4717 = vmatprep.subr.bf16.mxu0 %v8351_v3  ;;  %4495 = vmatprep.mubr.f32.mxu1 %v430_v25  ;;  %v4748_v45 = vpack.c.bf16 %v619_v43, %v618_v42  ;;  %v485_v25 = vld [vmem:[%s5570_s22 + $0x228] sm:$0xff] }
  0x45   : > { %v497_v43 = vld [vmem:[%s5570_s22 + $0x288] sm:$0xff] }
  0x47   : > { %4719 = vmatpush1.bf16.msra.mxu0 %v4718_v46  ;;  %4496 = vmatmul.mubr.f32.gmra.mrb[2].mxu1 %v435_v31  ;;  %v447_v46 = vld [vmem:[%s5570_s22 + $0xf8] sm:$0xff] }
  0x48   : > { %4720 = vmatprep.subr.bf16.mxu0 %v8351_v3  ;;  %4498 = vmatprep.mubr.f32.mxu1 %v440_v37  ;;  %v487_v31 = vld [vmem:[%s5570_s22 + $0x238] sm:$0xff] }
  0x49   : > { %v495_v37 = vld [vmem:[%s5570_s22 + $0x278] sm:$0xff] }
  0x4b   : > { %4722 = vmatpush1.bf16.msra.mxu0 %v4721_v54  ;;  %4499 = vmatmul.mubr.f32.gmra.mrb[4].mxu1 %v445_v40  ;;  %v622_v54 = vld [vmem:[%s8341_s2 + $0x170] sm:$0xff]  ;;  %v639_v40 = vld [vmem:[%s8341_s2 + $0x1f8] sm:$0xff] }
  0x4c   : > { %4723 = vmatprep.subr.bf16.mxu0 %v8351_v3  ;;  %4501 = vmatprep.mubr.f32.mxu1 %v450_v49  ;;  %v4754_v57 = vpack.c.bf16 %v623_v55, %v622_v54  ;;  %v507_v49 = vld [vmem:[%s5570_s22 + $0x2d8] sm:$0xff]  ;;  %v517_v55 = vld [vmem:[%s5570_s22 + $0x328] sm:$0xff] }
  0x4d   : > { %v511_v54 = vld [vmem:[%s5570_s22 + $0x2f8] sm:$0xff] }
  0x4f   : > { %4725 = vmatpush1.bf16.msra.mxu0 %v4724_v58  ;;  %4502 = vmatmul.mubr.f32.gmra.mrb[6].mxu1 %v455_v52  ;;  %v457_v58 = vld [vmem:[%s5570_s22 + $0x148] sm:$0xff]  ;;  %v515_v52 = vld [vmem:[%s5570_s22 + $0x318] sm:$0xff] }
  0x50   : > { %4726 = vmatprep.subr.bf16.mxu0 %v8351_v3  ;;  %4504 = vmatprep.mubr.f32.mxu1 %v460_v61  ;;  %v527_v61 = vld [vmem:[%s5570_s22 + $0x378] sm:$0xff] }
  0x53   : > { %4728 = vmatpush1.bf16.msra.mxu0 %v4727_v2  ;;  %v626_v2 = vld [vmem:[%s8341_s2 + $0x190] sm:$0xff]  ;;  %4505 = vmatmul.mubr.f32.gmra.mrb[8].mxu1 %v465_v0  ;;  %v535_v0 = vld [vmem:[%s5570_s22 + $0x3b8] sm:$0xff] }
  0x54   : > { %4729 = vmatprep.subr.bf16.mxu0 %v8351_v3  ;;  %v4760_v6 = vpack.c.bf16 %v627_v4, %v626_v2  ;;  %4507 = vmatprep.mubr.f32.mxu1 %v470_v10  ;;  %v531_v2 = vld [vmem:[%s5570_s22 + $0x398] sm:$0xff]  ;;  %v537_v4 = vld [vmem:[%s5570_s22 + $0x3c8] sm:$0xff] }
  0x55   : > { %v547_v10 = vld [vmem:[%s5570_s22 + $0x418] sm:$0xff] }
  0x57   : > { %4731 = vmatpush1.bf16.msra.mxu0 %v4730_v7  ;;  %v467_v7 = vld [vmem:[%s5570_s22 + $0x198] sm:$0xff]  ;;  %4508 = vmatmul.mubr.f32.gmra.mrb[10].mxu1 %v475_v13 }
  0x58   : > { %4732 = vmatprep.subr.bf16.mxu0 %v8351_v3  ;;  %4510 = vmatprep.mubr.f32.mxu1 %v480_v22  ;;  %v555_v13 = vld [vmem:[%s5570_s22 + $0x458] sm:$0xff] }
  0x59   : > { %v567_v22 = vld [vmem:[%s5570_s22 + $0x4b8] sm:$0xff] }
  0x5a   : > { %721 = vmatmul.mubr.f32.vlgmr.msra.gmra.mrb[0].mxu0 %v416_v14  ;;  %v472_v14 = vld [vmem:[%s5570_s22 + $0x1c0] sm:$0xff] }
  0x5b   : > { %4734 = vmatpush1.bf16.msra.mxu0 %v4733_v15  ;;  %725 = vmatprep.mubr.f32.mxu0 %v422_v16  ;;  %v630_v15 = vld [vmem:[%s8341_s2 + $0x1b0] sm:$0xff]  ;;  %v631_v16 = vld [vmem:[%s8341_s2 + $0x1b8] sm:$0xff] }
  0x5c   : > { %4735 = vmatprep.subr.bf16.mxu0 %v8351_v3  ;;  %v4766_v18 = vpack.c.bf16 %v631_v16, %v630_v15  ;;  %4511 = vmatmul.mubr.f32.gmra.mrb[12].mxu1 %v485_v25  ;;  %v551_v15 = vld [vmem:[%s5570_s22 + $0x438] sm:$0xff]  ;;  %v557_v16 = vld [vmem:[%s5570_s22 + $0x468] sm:$0xff] }
  0x5d   : > { %v575_v25 = vld [vmem:[%s5570_s22 + $0x4f8] sm:$0xff] }
  0x5e   : > { %726 = vmatmul.mubr.f32.gmra.mrb[2].mxu0 %v421_v19  ;;  %v477_v19 = vld [vmem:[%s5570_s22 + $0x1e8] sm:$0xff] }
  0x5f   : > { %730 = vmatprep.mubr.f32.mxu0 %v427_v21  ;;  %4737 = vmatpush1.bf16.msra.mxu0 %v4736_v20  ;;  %v632_v20 = vld [vmem:[%s8341_s2 + $0x1c0] sm:$0xff]  ;;  %v633_v21 = vld [vmem:[%s8341_s2 + $0x1c8] sm:$0xff] }
  0x60   : > { %4738 = vmatprep.subr.bf16.mxu0 %v8351_v3  ;;  %v4769_v24 = vpack.c.bf16 %v633_v21, %v632_v20  ;;  %v562_v20 = vld [vmem:[%s5570_s22 + $0x490] sm:$0xff]  ;;  %v561_v21 = vld [vmem:[%s5570_s22 + $0x488] sm:$0xff] }
  0x62   : > { %731 = vmatmul.mubr.f32.gmra.mrb[4].mxu0 %v426_v26  ;;  %v482_v26 = vld [vmem:[%s5570_s22 + $0x210] sm:$0xff] }
  0x63   : > { %735 = vmatprep.mubr.f32.mxu0 %v432_v28  ;;  %4740 = vmatpush1.bf16.msra.mxu0 %v4739_v27  ;;  %v634_v27 = vld [vmem:[%s8341_s2 + $0x1d0] sm:$0xff]  ;;  %v635_v28 = vld [vmem:[%s8341_s2 + $0x1d8] sm:$0xff] }
  0x64   : > { %4741 = vmatprep.subr.bf16.mxu0 %v8351_v3  ;;  %v4772_v30 = vpack.c.bf16 %v635_v28, %v634_v27  ;;  %v571_v27 = vld [vmem:[%s5570_s22 + $0x4d8] sm:$0xff] }
  0x65   : > { %v419_v28 = vld [vmem:[%s5570_s22 + $0x18] sm:$0xff] }
  0x66   : > { %736 = vmatmul.mubr.f32.gmra.mrb[6].mxu0 %v431_v32  ;;  %v636_v32 = vld [vmem:[%s8341_s2 + $0x1e0] sm:$0xff] }
  0x67   : > { %740 = vmatprep.mubr.f32.mxu0 %v437_v34  ;;  %4743 = vmatpush1.bf16.msra.mxu0 %v4742_v33  ;;  %v637_v33 = vld [vmem:[%s8341_s2 + $0x1e8] sm:$0xff]  ;;  %v490_v34 = vld [vmem:[%s5570_s22 + $0x250] sm:$0xff] }
  0x68   : > { %4744 = vmatprep.subr.bf16.mxu0 %v8351_v3  ;;  %v4775_v36 = vpack.c.bf16 %v637_v33, %v636_v32  ;;  %4513 = vmatprep.mubr.f32.mxu1 %v490_v34  ;;  %v424_v33 = vld [vmem:[%s5570_s22 + $0x40] sm:$0xff]  ;;  %v2345_v34 = vld [vmem:[%s8344_s5 + $0x310] sm:$0xff] }
  0x69   : > { %4514 = vmatmul.mubr.f32.gmra.mrb[14].mxu1 %v495_v37 }
  0x6a   : > { %741 = vmatmul.mubr.f32.gmra.mrb[8].mxu0 %v436_v38  ;;  %v492_v38 = vld [vmem:[%s5570_s22 + $0x260] sm:$0xff] }
  0x6b   : > { %745 = vmatprep.mubr.f32.mxu0 %v442_v41  ;;  %4746 = vmatpush1.bf16.msra.mxu0 %v4745_v39  ;;  %v638_v39 = vld [vmem:[%s8341_s2 + $0x1f0] sm:$0xff]  ;;  %v491_v41 = vld [vmem:[%s5570_s22 + $0x258] sm:$0xff] }
  0x6c   : > { %4747 = vmatprep.subr.bf16.mxu0 %v8351_v3  ;;  %v4778_v42 = vpack.c.bf16 %v639_v40, %v638_v39  ;;  %v2347_v39 = vld [vmem:[%s8344_s5 + $0x320] sm:$0xff]  ;;  %v2348_v40 = vld [vmem:[%s8344_s5 + $0x328] sm:$0xff] }
  0x6e   : > { %746 = vmatmul.mubr.f32.gmra.mrb[10].mxu0 %v441_v44  ;;  %v500_v44 = vld [vmem:[%s5570_s22 + $0x2a0] sm:$0xff] }
  0x6f   : > { %750 = vmatprep.mubr.f32.mxu0 %v447_v46  ;;  %4749 = vmatpush1.bf16.msra.mxu0 %v4748_v45  ;;  %v496_v45 = vld [vmem:[%s5570_s22 + $0x280] sm:$0xff]  ;;  %v505_v46 = vld [vmem:[%s5570_s22 + $0x2c8] sm:$0xff] }
  0x70   : > { %4750 = vmatprep.subr.bf16.mxu0 %v8351_v3  ;;  %4516 = vmatprep.mubr.f32.mxu1 %v500_v44  ;;  %v2349_v44 = vld [vmem:[%s8344_s5 + $0x330] sm:$0xff] }
  0x71   : > { %4517 = vmatmul.mubr.f32.gmra.mrb[16].mxu1 %v505_v46  ;;  %v433_v46 = vld [vmem:[%s5570_s22 + $0x88] sm:$0xff] }
  0x72   : > { %751 = vmatmul.mubr.f32.gmra.mrb[12].mxu0 %v446_v50  ;;  %v510_v50 = vld [vmem:[%s5570_s22 + $0x2f0] sm:$0xff] }
  0x73   : > { %755 = vmatprep.mubr.f32.mxu0 %v452_v53  ;;  %4752 = vmatpush1.bf16.msra.mxu0 %v4751_v51  ;;  %v506_v51 = vld [vmem:[%s5570_s22 + $0x2d0] sm:$0xff]  ;;  %v512_v53 = vld [vmem:[%s5570_s22 + $0x300] sm:$0xff] }
  0x74   : > { %4753 = vmatprep.subr.bf16.mxu0 %v8351_v3  ;;  %4519 = vmatprep.mubr.f32.mxu1 %v510_v50  ;;  %v2352_v50 = vld [vmem:[%s8344_s5 + $0x348] sm:$0xff] }
  0x75   : > { %4520 = vmatmul.mubr.f32.gmra.mrb[18].mxu1 %v515_v52 }
  0x76   : > { %756 = vmatmul.mubr.f32.gmra.mrb[14].mxu0 %v451_v56  ;;  %v520_v56 = vld [vmem:[%s5570_s22 + $0x340] sm:$0xff] }
  0x77   : > { %760 = vmatprep.mubr.f32.mxu0 %v457_v58  ;;  %4755 = vmatpush1.bf16.msra.mxu0 %v4754_v57  ;;  %v516_v57 = vld [vmem:[%s5570_s22 + $0x320] sm:$0xff]  ;;  %v525_v58 = vld [vmem:[%s5570_s22 + $0x368] sm:$0xff] }
  0x78   : > { %4756 = vmatprep.subr.bf16.mxu0 %v8351_v3  ;;  %4522 = vmatprep.mubr.f32.mxu1 %v520_v56  ;;  %v443_v56 = vld [vmem:[%s5570_s22 + $0xd8] sm:$0xff] }
  0x79   : > { %4523 = vmatmul.mubr.f32.gmra.mrb[20].mxu1 %v525_v58  ;;  %v449_v58 = vld [vmem:[%s5570_s22 + $0x108] sm:$0xff] }
  0x7a   : > { %761 = vmatmul.mubr.f32.gmra.mrb[16].mxu0 %v456_v62  ;;  %v530_v62 = vld [vmem:[%s5570_s22 + $0x390] sm:$0xff] }
  0x7b   : > { %765 = vmatprep.mubr.f32.mxu0 %v462_v1  ;;  %4758 = vmatpush1.bf16.msra.mxu0 %v4757_v63  ;;  %v526_v63 = vld [vmem:[%s5570_s22 + $0x370] sm:$0xff]  ;;  %v532_v1 = vld [vmem:[%s5570_s22 + $0x3a0] sm:$0xff] }
  0x7c   : > { %4759 = vmatprep.subr.bf16.mxu0 %v8351_v3  ;;  %4525 = vmatprep.mubr.f32.mxu1 %v530_v62 }
  0x7d   : > { %4526 = vmatmul.mubr.f32.gmra.mrb[22].mxu1 %v535_v0  ;;  %v2357_v0 = vld [vmem:[%s8344_s5 + $0x370] sm:$0xff] }
  0x7e   : > { %766 = vmatmul.mubr.f32.gmra.mrb[18].mxu0 %v461_v5  ;;  %v540_v5 = vld [vmem:[%s5570_s22 + $0x3e0] sm:$0xff] }
  0x7f   : > { %770 = vmatprep.mubr.f32.mxu0 %v467_v7  ;;  %4761 = vmatpush1.bf16.msra.mxu0 %v4760_v6  ;;  %v536_v6 = vld [vmem:[%s5570_s22 + $0x3c0] sm:$0xff]  ;;  %v545_v7 = vld [vmem:[%s5570_s22 + $0x408] sm:$0xff] }
  0x80   : > { %4762 = vmatprep.subr.bf16.mxu0 %v8351_v3  ;;  %4528 = vmatprep.mubr.f32.mxu1 %v540_v5  ;;  %v459_v5 = vld [vmem:[%s5570_s22 + $0x158] sm:$0xff] }
  0x81   : > { %4529 = vmatmul.mubr.f32.gmra.mrb[24].mxu1 %v545_v7  ;;  %v2360_v7 = vld [vmem:[%s8344_s5 + $0x388] sm:$0xff] }
  0x82   : > { %771 = vmatmul.mubr.f32.gmra.mrb[20].mxu0 %v466_v11  ;;  %v550_v11 = vld [vmem:[%s5570_s22 + $0x430] sm:$0xff] }
  0x83   : > { %775 = vmatprep.mubr.f32.mxu0 %v472_v14  ;;  %4764 = vmatpush1.bf16.msra.mxu0 %v4763_v12  ;;  %v546_v12 = vld [vmem:[%s5570_s22 + $0x410] sm:$0xff]  ;;  %v552_v14 = vld [vmem:[%s5570_s22 + $0x440] sm:$0xff] }
  0x84   : > { %4765 = vmatprep.subr.bf16.mxu0 %v8351_v3  ;;  %4531 = vmatprep.mubr.f32.mxu1 %v550_v11  ;;  %v2361_v11 = vld [vmem:[%s8344_s5 + $0x390] sm:$0xff] }
  0x85   : > { %4532 = vmatmul.mubr.f32.gmra.mrb[26].mxu1 %v555_v13  ;;  %v463_v13 = vld [vmem:[%s5570_s22 + $0x178] sm:$0xff] }
  0x86   : > { %776 = vmatmul.mubr.f32.gmra.mrb[22].mxu0 %v471_v17  ;;  %v560_v17 = vld [vmem:[%s5570_s22 + $0x480] sm:$0xff] }
  0x87   : > { %780 = vmatprep.mubr.f32.mxu0 %v477_v19  ;;  %4767 = vmatpush1.bf16.msra.mxu0 %v4766_v18  ;;  %v556_v18 = vld [vmem:[%s5570_s22 + $0x460] sm:$0xff]  ;;  %v565_v19 = vld [vmem:[%s5570_s22 + $0x4a8] sm:$0xff] }
  0x88   : > { %4768 = vmatprep.subr.bf16.mxu0 %v8351_v3  ;;  %4534 = vmatprep.mubr.f32.mxu1 %v560_v17  ;;  %v2364_v17 = vld [vmem:[%s8344_s5 + $0x3a8] sm:$0xff] }
  0x89   : > { %4535 = vmatmul.mubr.f32.gmra.mrb[28].mxu1 %v565_v19 }
  0x8a   : > { %781 = vmatmul.mubr.f32.gmra.mrb[24].mxu0 %v476_v23  ;;  %v570_v23 = vld [vmem:[%s5570_s22 + $0x4d0] sm:$0xff] }
  0x8b   : > { %785 = vmatprep.mubr.f32.mxu0 %v482_v26  ;;  %4770 = vmatpush1.bf16.msra.mxu0 %v4769_v24  ;;  %v566_v24 = vld [vmem:[%s5570_s22 + $0x4b0] sm:$0xff]  ;;  %v572_v26 = vld [vmem:[%s5570_s22 + $0x4e0] sm:$0xff] }
  0x8c   : > { %4771 = vmatprep.subr.bf16.mxu0 %v8351_v3  ;;  %4537 = vmatprep.mubr.f32.mxu1 %v570_v23  ;;  %v473_v23 = vld [vmem:[%s5570_s22 + $0x1c8] sm:$0xff] }
  0x8d   : > { %4538 = vmatmul.mubr.f32.gmra.mrb[30].mxu1 %v575_v25  ;;  %v479_v25 = vld [vmem:[%s5570_s22 + $0x1f8] sm:$0xff] }
  0x8e   : > { %786 = vmatmul.mubr.f32.gmra.mrb[26].mxu0 %v481_v29  ;;  %v2343_v29 = vld [vmem:[%s8344_s5 + $0x300] sm:$0xff] }
  0x8f   : > { %790 = vmatprep.mubr.f32.mxu0 %v487_v31  ;;  %4773 = vmatpush1.bf16.msra.mxu0 %v4772_v30  ;;  %v2344_v30 = vld [vmem:[%s8344_s5 + $0x308] sm:$0xff]  ;;  %v418_v31 = vld [vmem:[%s5570_s22 + $0x10] sm:$0xff] }
  0x90   : > { %4774 = vmatprep.subr.bf16.mxu0 %v8351_v3  ;;  %v5930_v32 = vpack.c.bf16 %v2344_v30, %v2343_v29  ;;  %v489_v29 = vld [vmem:[%s5570_s22 + $0x248] sm:$0xff]  ;;  %v488_v30 = vld [vmem:[%s5570_s22 + $0x240] sm:$0xff] }
  0x92   : > { %791 = vmatmul.mubr.f32.gmra.mrb[28].mxu0 %v486_v35  ;;  %8468 = vst [vmem:[#allocation7_spill] sm:$0xff] %v5930_v32  ;;  %v2346_v35 = vld [vmem:[%s8344_s5 + $0x318] sm:$0xff] }
  0x93   : > { %795 = vmatprep.mubr.f32.mxu0 %v492_v38  ;;  %4776 = vmatpush1.bf16.msra.mxu0 %v4775_v36  ;;  %v423_v36 = vld [vmem:[%s5570_s22 + $0x38] sm:$0xff]  ;;  %v5941_v37 = vpack.c.bf16 %v2346_v35, %v2345_v34  ;;  %v429_v38 = vld [vmem:[%s5570_s22 + $0x68] sm:$0xff]  ;;  %v498_v35 = vld [vmem:[%s5570_s22 + $0x290] sm:$0xff] }
  0x94   : > { %4777 = vmatprep.subr.bf16.mxu0 %v8351_v3  ;;  %v499_v34 = vld [vmem:[%s5570_s22 + $0x298] sm:$0xff] }
  0x95   : > { %8469 = vst [vmem:[#allocation8_spill] sm:$0xff] %v5941_v37 }
  0x96   : > { %796 = vmatmul.mubr.f32.gmra.mrb[30].mxu0 %v491_v41  ;;  %v428_v41 = vld [vmem:[%s5570_s22 + $0x60] sm:$0xff] }
  0x97   : > { %800 = vmatprep.mubr.f32.mxu0 %v497_v43  ;;  %4779 = vmatpush1.bf16.msra.mxu0 %v4778_v42  ;;  %v5953_v42 = vpack.c.bf16 %v2348_v40, %v2347_v39  ;;  %v434_v43 = vld [vmem:[%s5570_s22 + $0x90] sm:$0xff]  ;;  %v509_v39 = vld [vmem:[%s5570_s22 + $0x2e8] sm:$0xff]  ;;  %v508_v40 = vld [vmem:[%s5570_s22 + $0x2e0] sm:$0xff] }
  0x98   : > { %4956 = vmatprep.subr.bf16.mxu0 %v8351_v3 }
  0x99   : > { %8470 = vst [vmem:[#allocation9_spill] sm:$0xff] %v5953_v42 }
  0x9a   : > { %801 = vmatmul.mubr.f32.gmra.mrb[32].mxu0 %v496_v45  ;;  %v2350_v45 = vld [vmem:[%s8344_s5 + $0x338] sm:$0xff] }
  0x9b   : > { %805 = vmatprep.mubr.f32.mxu0 %v502_v47  ;;  %v5965_v47 = vpack.c.bf16 %v2350_v45, %v2349_v44  ;;  %v519_v44 = vld [vmem:[%s5570_s22 + $0x338] sm:$0xff]  ;;  %v518_v45 = vld [vmem:[%s5570_s22 + $0x330] sm:$0xff] }
  0x9d   : > { %8471 = vst [vmem:[#allocation10_spill] sm:$0xff] %v5965_v47 }
  0x9e   : > { %806 = vmatmul.mubr.f32.gmra.mrb[34].mxu0 %v501_v48  ;;  %v439_v48 = vld [vmem:[%s5570_s22 + $0xb8] sm:$0xff] }
  0x9f   : > { %810 = vmatprep.mubr.f32.mxu0 %v507_v49  ;;  %v2351_v49 = vld [vmem:[%s8344_s5 + $0x340] sm:$0xff] }
  0xa0   : > { %v5977_v52 = vpack.c.bf16 %v2352_v50, %v2351_v49  ;;  %v2367_v49 = vld [vmem:[%s8344_s5 + $0x3c0] sm:$0xff]  ;;  %v2368_v50 = vld [vmem:[%s8344_s5 + $0x3c8] sm:$0xff] }
  0xa2   : > { %811 = vmatmul.mubr.f32.gmra.mrb[36].mxu0 %v506_v51  ;;  %v438_v51 = vld [vmem:[%s5570_s22 + $0xb0] sm:$0xff]  ;;  %8472 = vst [vmem:[#allocation11_spill] sm:$0xff] %v5977_v52 }
  0xa3   : > { %815 = vmatprep.mubr.f32.mxu0 %v512_v53  ;;  %v444_v53 = vld [vmem:[%s5570_s22 + $0xe0] sm:$0xff] }
  0xa6   : > { %816 = vmatmul.mubr.f32.gmra.mrb[38].mxu0 %v511_v54  ;;  %v2353_v54 = vld [vmem:[%s8344_s5 + $0x350] sm:$0xff] }
  0xa7   : > { %820 = vmatprep.mubr.f32.mxu0 %v517_v55  ;;  %v2354_v55 = vld [vmem:[%s8344_s5 + $0x358] sm:$0xff] }
  0xaa   : > { %821 = vmatmul.mubr.f32.gmra.mrb[40].mxu0 %v516_v57  ;;  %v5989_v57 = vpack.c.bf16 %v2354_v55, %v2353_v54  ;;  %v528_v54 = vld [vmem:[%s5570_s22 + $0x380] sm:$0xff]  ;;  %v2369_v55 = vld [vmem:[%s8344_s5 + $0x3d0] sm:$0xff] }
  0xab   : > { %825 = vmatprep.mubr.f32.mxu0 %v522_v59  ;;  %v2355_v59 = vld [vmem:[%s8344_s5 + $0x360] sm:$0xff] }
  0xac   : > { %8473 = vst [vmem:[#allocation12_spill] sm:$0xff] %v5989_v57 }
  0xae   : > { %826 = vmatmul.mubr.f32.gmra.mrb[42].mxu0 %v521_v60  ;;  %v2356_v60 = vld [vmem:[%s8344_s5 + $0x368] sm:$0xff] }
  0xaf   : > { %830 = vmatprep.mubr.f32.mxu0 %v527_v61  ;;  %v448_v61 = vld [vmem:[%s5570_s22 + $0x100] sm:$0xff]  ;;  %v6001_v62 = vpack.c.bf16 %v2356_v60, %v2355_v59  ;;  %v533_v60 = vld [vmem:[%s5570_s22 + $0x3a8] sm:$0xff] }
  0xb1   : > { %8474 = vst [vmem:[#allocation13_spill] sm:$0xff] %v6001_v62 }
  0xb2   : > { %831 = vmatmul.mubr.f32.gmra.mrb[44].mxu0 %v526_v63  ;;  %v454_v63 = vld [vmem:[%s5570_s22 + $0x130] sm:$0xff] }
  0xb3   : > { %835 = vmatprep.mubr.f32.mxu0 %v532_v1  ;;  %v2358_v1 = vld [vmem:[%s8344_s5 + $0x378] sm:$0xff] }
  0xb6   : > { %836 = vmatmul.mubr.f32.gmra.mrb[46].mxu0 %v531_v2  ;;  %v453_v2 = vld [vmem:[%s5570_s22 + $0x128] sm:$0xff] }
  0xb7   : > { %840 = vmatprep.mubr.f32.mxu0 %v537_v4  ;;  %v6013_v4 = vpack.c.bf16 %v2358_v1, %v2357_v0  ;;  %v2372_v0 = vld [vmem:[%s8344_s5 + $0x3e8] sm:$0xff]  ;;  %v539_v1 = vld [vmem:[%s5570_s22 + $0x3d8] sm:$0xff] }
  0xb9   : > { %8475 = vst [vmem:[#allocation14_spill] sm:$0xff] %v6013_v4 }
  0xba   : > { %841 = vmatmul.mubr.f32.gmra.mrb[48].mxu0 %v536_v6  ;;  %v2359_v6 = vld [vmem:[%s8344_s5 + $0x380] sm:$0xff] }
  0xbb   : > { %845 = vmatprep.mubr.f32.mxu0 %v542_v8  ;;  %v458_v8 = vld [vmem:[%s5570_s22 + $0x150] sm:$0xff] }
  0xbe   : > { %846 = vmatmul.mubr.f32.gmra.mrb[50].mxu0 %v541_v9  ;;  %v6025_v9 = vpack.c.bf16 %v2360_v7, %v2359_v6  ;;  %v538_v6 = vld [vmem:[%s5570_s22 + $0x3d0] sm:$0xff] }
  0xbf   : > { %850 = vmatprep.mubr.f32.mxu0 %v547_v10  ;;  %v464_v10 = vld [vmem:[%s5570_s22 + $0x180] sm:$0xff] }
  0xc0   : > { %8476 = vst [vmem:[#allocation15_spill] sm:$0xff] %v6025_v9 }
  0xc2   : > { %851 = vmatmul.mubr.f32.gmra.mrb[52].mxu0 %v546_v12  ;;  %v2362_v12 = vld [vmem:[%s8344_s5 + $0x398] sm:$0xff] }
  0xc3   : > { %855 = vmatprep.mubr.f32.mxu0 %v552_v14  ;;  %v6037_v14 = vpack.c.bf16 %v2362_v12, %v2361_v11  ;;  %v544_v11 = vld [vmem:[%s5570_s22 + $0x400] sm:$0xff] }
  0xc5   : > { %8477 = vst [vmem:[#allocation16_spill] sm:$0xff] %v6037_v14 }
  0xc6   : > { %856 = vmatmul.mubr.f32.gmra.mrb[54].mxu0 %v551_v15  ;;  %v469_v15 = vld [vmem:[%s5570_s22 + $0x1a8] sm:$0xff] }
  0xc7   : > { %860 = vmatprep.mubr.f32.mxu0 %v557_v16  ;;  %v2363_v16 = vld [vmem:[%s8344_s5 + $0x3a0] sm:$0xff] }
  0xc8   : > { %v6049_v19 = vpack.c.bf16 %v2364_v17, %v2363_v16  ;;  %v549_v16 = vld [vmem:[%s5570_s22 + $0x428] sm:$0xff] }
  0xca   : > { %861 = vmatmul.mubr.f32.gmra.mrb[56].mxu0 %v556_v18  ;;  %v468_v18 = vld [vmem:[%s5570_s22 + $0x1a0] sm:$0xff]  ;;  %8478 = vst [vmem:[#allocation17_spill] sm:$0xff] %v6049_v19 }
  0xcb   : > { %865 = vmatprep.mubr.f32.mxu0 %v562_v20  ;;  %v474_v20 = vld [vmem:[%s5570_s22 + $0x1d0] sm:$0xff] }
  0xce   : > { %866 = vmatmul.mubr.f32.gmra.mrb[58].mxu0 %v561_v21  ;;  %v2365_v21 = vld [vmem:[%s8344_s5 + $0x3b0] sm:$0xff] }
  0xcf   : > { %870 = vmatprep.mubr.f32.mxu0 %v567_v22  ;;  %v2366_v22 = vld [vmem:[%s8344_s5 + $0x3b8] sm:$0xff] }
  0xd2   : > { %871 = vmatmul.mubr.f32.gmra.mrb[60].mxu0 %v566_v24  ;;  %v6061_v24 = vpack.c.bf16 %v2366_v22, %v2365_v21  ;;  %v554_v21 = vld [vmem:[%s5570_s22 + $0x450] sm:$0xff]  ;;  %v553_v22 = vld [vmem:[%s5570_s22 + $0x448] sm:$0xff] }
  0xd3   : > { %875 = vmatprep.mubr.f32.mxu0 %v572_v26  ;;  %v478_v26 = vld [vmem:[%s5570_s22 + $0x1f0] sm:$0xff] }
  0xd4   : > { %8479 = vst [vmem:[#allocation18_spill] sm:$0xff] %v6061_v24 }
  0xd6   : > { %876 = vmatmul.mubr.f32.gmra.mrb[62].mxu0 %v571_v27  ;;  %v484_v27 = vld [vmem:[%s5570_s22 + $0x220] sm:$0xff] }
  0xd7   : > { %945 = vmatprep.mubr.f32.mxu0 %v419_v28  ;;  %v483_v28 = vld [vmem:[%s5570_s22 + $0x218] sm:$0xff] }
  0xda   : > { %946 = vmatmul.mubr.f32.vlgmr.msra.gmra.mrb[0].mxu0 %v418_v31  ;;  %v494_v31 = vld [vmem:[%s5570_s22 + $0x270] sm:$0xff] }
  0xdb   : > { %950 = vmatprep.mubr.f32.mxu0 %v424_v33  ;;  %4958 = vmatpush1.bf16.msra.mxu0 %v5930_v32  ;;  %v493_v33 = vld [vmem:[%s5570_s22 + $0x268] sm:$0xff] }
  0xdc   : > { %4959 = vmatprep.subr.bf16.mxu0 %v8351_v3 }
  0xde   : > { %951 = vmatmul.mubr.f32.gmra.mrb[2].mxu0 %v423_v36  ;;  %v504_v36 = vld [vmem:[%s5570_s22 + $0x2c0] sm:$0xff] }
  0xdf   : > { %955 = vmatprep.mubr.f32.mxu0 %v429_v38  ;;  %4961 = vmatpush1.bf16.msra.mxu0 %v5941_v37  ;;  %v503_v38 = vld [vmem:[%s5570_s22 + $0x2b8] sm:$0xff] }
  0xe0   : > { %4962 = vmatprep.subr.bf16.mxu0 %v8351_v3 }
  0xe2   : > { %956 = vmatmul.mubr.f32.gmra.mrb[4].mxu0 %v428_v41  ;;  %v514_v41 = vld [vmem:[%s5570_s22 + $0x310] sm:$0xff] }
  0xe3   : > { %960 = vmatprep.mubr.f32.mxu0 %v434_v43  ;;  %4964 = vmatpush1.bf16.msra.mxu0 %v5953_v42  ;;  %v513_v43 = vld [vmem:[%s5570_s22 + $0x308] sm:$0xff] }
  0xe4   : > { %4965 = vmatprep.subr.bf16.mxu0 %v8351_v3 }
  0xe6   : > { %961 = vmatmul.mubr.f32.gmra.mrb[6].mxu0 %v433_v46  ;;  %v524_v46 = vld [vmem:[%s5570_s22 + $0x360] sm:$0xff] }
  0xe7   : > { %965 = vmatprep.mubr.f32.mxu0 %v439_v48  ;;  %4967 = vmatpush1.bf16.msra.mxu0 %v5965_v47  ;;  %v523_v48 = vld [vmem:[%s5570_s22 + $0x358] sm:$0xff] }
  0xe8   : > { %4968 = vmatprep.subr.bf16.mxu0 %v8351_v3 }
  0xea   : > { %966 = vmatmul.mubr.f32.gmra.mrb[8].mxu0 %v438_v51  ;;  %v529_v51 = vld [vmem:[%s5570_s22 + $0x388] sm:$0xff] }
  0xeb   : > { %970 = vmatprep.mubr.f32.mxu0 %v444_v53  ;;  %4970 = vmatpush1.bf16.msra.mxu0 %v5977_v52  ;;  %v6093_v53 = vpack.c.bf16 %v2368_v50, %v2367_v49 }
  0xec   : > { %4971 = vmatprep.subr.bf16.mxu0 %v8351_v3 }
  0xed   : > { %8480 = vst [vmem:[#allocation19_spill] sm:$0xff] %v6093_v53 }
  0xee   : > { %971 = vmatmul.mubr.f32.gmra.mrb[10].mxu0 %v443_v56  ;;  %v2370_v56 = vld [vmem:[%s8344_s5 + $0x3d8] sm:$0xff] }
  0xef   : > { %975 = vmatprep.mubr.f32.mxu0 %v449_v58  ;;  %4973 = vmatpush1.bf16.msra.mxu0 %v5989_v57  ;;  %v534_v58 = vld [vmem:[%s5570_s22 + $0x3b0] sm:$0xff]  ;;  %v6105_v59 = vpack.c.bf16 %v2370_v56, %v2369_v55  ;;  %v2248_v55 = vld [vmem:[%s8344_s5 + $0x8] sm:$0xff] }
  0xf0   : > { %4974 = vmatprep.subr.bf16.mxu0 %v8351_v3 }
  0xf1   : > { %8481 = vst [vmem:[#allocation20_spill] sm:$0xff] %v6105_v59 }
  0xf2   : > { %976 = vmatmul.mubr.f32.gmra.mrb[12].mxu0 %v448_v61 }
  0xf3   : > { %980 = vmatprep.mubr.f32.mxu0 %v454_v63  ;;  %4976 = vmatpush1.bf16.msra.mxu0 %v6001_v62  ;;  %v2371_v63 = vld [vmem:[%s8344_s5 + $0x3e0] sm:$0xff] }
  0xf4   : > { %4977 = vmatprep.subr.bf16.mxu0 %v8351_v3 }
  0xf6   : > { %981 = vmatmul.mubr.f32.gmra.mrb[14].mxu0 %v453_v2 }
  0xf7   : > { %985 = vmatprep.mubr.f32.mxu0 %v459_v5  ;;  %4979 = vmatpush1.bf16.msra.mxu0 %v6013_v4  ;;  %v6121_v5 = vpack.c.bf16 %v2372_v0, %v2371_v63 }
  0xf8   : > { %4980 = vmatprep.subr.bf16.mxu0 %v8351_v3 }
  0xf9   : > { %8482 = vst [vmem:[#allocation21_spill] sm:$0xff] %v6121_v5 }
  0xfa   : > { %986 = vmatmul.mubr.f32.gmra.mrb[16].mxu0 %v458_v8  ;;  %v2373_v8 = vld [vmem:[%s8344_s5 + $0x3f0] sm:$0xff] }
  0xfb   : > { %990 = vmatprep.mubr.f32.mxu0 %v464_v10  ;;  %4982 = vmatpush1.bf16.msra.mxu0 %v6025_v9  ;;  %v2374_v10 = vld [vmem:[%s8344_s5 + $0x3f8] sm:$0xff] }
  0xfc   : > { %4983 = vmatprep.subr.bf16.mxu0 %v8351_v3 }
  0xfe   : > { %991 = vmatmul.mubr.f32.gmra.mrb[18].mxu0 %v463_v13  ;;  %v6137_v13 = vpack.c.bf16 %v2374_v10, %v2373_v8  ;;  %v2252_v8 = vld [vmem:[%s8344_s5 + $0x28] sm:$0xff] }
  0xff   : > { %995 = vmatprep.mubr.f32.mxu0 %v469_v15  ;;  %4985 = vmatpush1.bf16.msra.mxu0 %v6037_v14  ;;  %v543_v15 = vld [vmem:[%s5570_s22 + $0x3f8] sm:$0xff] }
 0x100   : > { %4986 = vmatprep.subr.bf16.mxu0 %v8351_v3  ;;  %8483 = vst [vmem:[#allocation22_spill] sm:$0xff] %v6137_v13 }
 0x102   : > { %996 = vmatmul.mubr.f32.gmra.mrb[20].mxu0 %v468_v18 }
 0x103   : > { %1000 = vmatprep.mubr.f32.mxu0 %v474_v20  ;;  %4988 = vmatpush1.bf16.msra.mxu0 %v6049_v19  ;;  %v548_v20 = vld [vmem:[%s5570_s22 + $0x420] sm:$0xff] }
 0x104   : > { %4989 = vmatprep.subr.bf16.mxu0 %v8351_v3 }
 0x106   : > { %1001 = vmatmul.mubr.f32.gmra.mrb[22].mxu0 %v473_v23  ;;  %v559_v23 = vld [vmem:[%s5570_s22 + $0x478] sm:$0xff] }
 0x107   : > { %1005 = vmatprep.mubr.f32.mxu0 %v479_v25  ;;  %4991 = vmatpush1.bf16.msra.mxu0 %v6061_v24 }
 0x108   : > { %4992 = vmatprep.subr.bf16.mxu0 %v8351_v3 }
 0x10a   : > { %1006 = vmatmul.mubr.f32.gmra.mrb[24].mxu0 %v478_v26 }
 0x10b   : > { %1010 = vmatprep.mubr.f32.mxu0 %v484_v27  ;;  %4994 = vmatpush1.bf16.msra.mxu0 %v6093_v53  ;;  %v558_v27 = vld [vmem:[%s5570_s22 + $0x470] sm:$0xff] }
 0x10c   : > { %4995 = vmatprep.subr.bf16.mxu0 %v8351_v3 }
 0x10e   : > { %1011 = vmatmul.mubr.f32.gmra.mrb[26].mxu0 %v483_v28  ;;  %v564_v28 = vld [vmem:[%s5570_s22 + $0x4a0] sm:$0xff] }
 0x10f   : > { %1015 = vmatprep.mubr.f32.mxu0 %v489_v29  ;;  %4997 = vmatpush1.bf16.msra.mxu0 %v6105_v59  ;;  %v563_v29 = vld [vmem:[%s5570_s22 + $0x498] sm:$0xff] }
 0x110   : > { %4998 = vmatprep.subr.bf16.mxu0 %v8351_v3 }
 0x112   : > { %1016 = vmatmul.mubr.f32.gmra.mrb[28].mxu0 %v488_v30  ;;  %v569_v30 = vld [vmem:[%s5570_s22 + $0x4c8] sm:$0xff] }
 0x113   : > { %1020 = vmatprep.mubr.f32.mxu0 %v494_v31  ;;  %5000 = vmatpush1.bf16.msra.mxu0 %v6121_v5 }
 0x114   : > { %5001 = vmatprep.subr.bf16.mxu0 %v8351_v3 }
 0x116   : > { %1021 = vmatmul.mubr.f32.gmra.mrb[30].mxu0 %v493_v33  ;;  %v6108_v61 = vpop.f32.mrb[0].mxu1 }
 0x117   : > { %1025 = vmatprep.mubr.f32.mxu0 %v499_v34  ;;  %v6118_v2 = vpop.f32.mrb[1].mxu1  ;;  %5003 = vmatpush1.bf16.msra.mxu0 %v6137_v13  ;;  %v568_v34 = vld [vmem:[%s5570_s22 + $0x4c0] sm:$0xff] }
 0x11a   : > { %1026 = vmatmul.mubr.f32.gmra.mrb[32].mxu0 %v498_v35  ;;  %v6124_v7 = vpop.f32.mrb[2].mxu1  ;;  %v574_v35 = vld [vmem:[%s5570_s22 + $0x4f0] sm:$0xff] }
 0x11b   : > { %1030 = vmatprep.mubr.f32.mxu0 %v504_v36  ;;  %v6134_v12 = vpop.f32.mrb[3].mxu1  ;;  %v573_v36 = vld [vmem:[%s5570_s22 + $0x4e8] sm:$0xff] }
 0x11e   : > { %1031 = vmatmul.mubr.f32.gmra.mrb[34].mxu0 %v503_v38  ;;  %v6142_v17 = vpop.f32.mrb[4].mxu1 }
 0x11f   : > { %1035 = vmatprep.mubr.f32.mxu0 %v509_v39  ;;  %v6144_v18 = vpop.f32.mrb[5].mxu1 }
 0x122   : > { %1036 = vmatmul.mubr.f32.gmra.mrb[36].mxu0 %v508_v40  ;;  %v6150_v25 = vpop.f32.mrb[6].mxu1  ;;  %v8353_v40 = vmov 0.0  }
 0x123   : > { %1040 = vmatprep.mubr.f32.mxu0 %v514_v41  ;;  %v6152_v26 = vpop.f32.mrb[7].mxu1  ;;  %2455 = vmatprep.mubr.f32.mxu1 %v8353_v40 }
 0x126   : > { %1041 = vmatmul.mubr.f32.gmra.mrb[38].mxu0 %v513_v43  ;;  %v6158_v31 = vpop.f32.mrb[8].mxu1 }
 0x127   : > { %1045 = vmatprep.mubr.f32.mxu0 %v519_v44  ;;  %v6160_v33 = vpop.f32.mrb[9].mxu1 }
 0x12a   : > { %1046 = vmatmul.mubr.f32.gmra.mrb[40].mxu0 %v518_v45  ;;  %v6165_v38 = vpop.f32.mrb[10].mxu1 }
 0x12b   : > { %1050 = vmatprep.mubr.f32.mxu0 %v524_v46  ;;  %v6167_v39 = vpop.f32.mrb[11].mxu1  ;;  %v2375_v46 = vld [vmem:[%s8344_s5 + $0x400] sm:$0xff] }
 0x12e   : > { %1051 = vmatmul.mubr.f32.gmra.mrb[42].mxu0 %v523_v48  ;;  %v2376_v48 = vld [vmem:[%s8344_s5 + $0x408] sm:$0xff] }
 0x12f   : > { %1055 = vmatprep.mubr.f32.mxu0 %v529_v51  ;;  %v6170_v41 = vpop.f32.mrb[12].mxu1  ;;  %v6186_v50 = vpack.c.bf16 %v2376_v48, %v2375_v46  ;;  %v2260_v46 = vld [vmem:[%s8344_s5 + $0x68] sm:$0xff] }
 0x130   : > { %v6172_v43 = vpop.f32.mrb[13].mxu1 }
 0x131   : > { %5005 = vmatprep.subr.bf16.mxu0 %v6186_v50 }
 0x132   : > { %1056 = vmatmul.mubr.f32.gmra.mrb[44].mxu0 %v528_v54  ;;  %v2247_v54 = vld [vmem:[%s8344_s5] sm:$0xff] }
 0x133   : > { %1060 = vmatprep.mubr.f32.mxu0 %v534_v58  ;;  %v4813_v56 = vpack.c.bf16 %v2248_v55, %v2247_v54  ;;  %v2249_v58 = vld [vmem:[%s8344_s5 + $0x10] sm:$0xff]  ;;  %v2262_v55 = vld [vmem:[%s8344_s5 + $0x78] sm:$0xff] }
 0x134   : > { %v2261_v54 = vld [vmem:[%s8344_s5 + $0x70] sm:$0xff] }
 0x135   : > { %4814 = vmatpush1.bf16.msra.mxu1 %v4813_v56 }
 0x136   : > { %1061 = vmatmul.mubr.f32.gmra.mrb[46].mxu0 %v533_v60  ;;  %4815 = vmatprep.subr.bf16.mxu1 %v8351_v3  ;;  %v2250_v60 = vld [vmem:[%s8344_s5 + $0x18] sm:$0xff] }
 0x137   : > { %1065 = vmatprep.mubr.f32.mxu0 %v539_v1  ;;  %v4816_v0 = vpack.c.bf16 %v2250_v60, %v2249_v58  ;;  %v4834_v58 = vpack.c.bf16 %v2262_v55, %v2261_v54  ;;  %v2271_v54 = vld [vmem:[%s8344_s5 + $0xc0] sm:$0xff]  ;;  %v2272_v55 = vld [vmem:[%s8344_s5 + $0xc8] sm:$0xff] }
 0x139   : > { %4817 = vmatpush1.bf16.msra.mxu1 %v4816_v0  ;;  %v2263_v0 = vld [vmem:[%s8344_s5 + $0x80] sm:$0xff] }
 0x13a   : > { %1066 = vmatmul.mubr.f32.gmra.mrb[48].mxu0 %v538_v6  ;;  %4818 = vmatprep.subr.bf16.mxu1 %v8351_v3  ;;  %v2251_v6 = vld [vmem:[%s8344_s5 + $0x20] sm:$0xff] }
 0x13b   : > { %1070 = vmatprep.mubr.f32.mxu0 %v544_v11  ;;  %v4819_v10 = vpack.c.bf16 %v2252_v8, %v2251_v6  ;;  %v2253_v11 = vld [vmem:[%s8344_s5 + $0x30] sm:$0xff]  ;;  %v2264_v6 = vld [vmem:[%s8344_s5 + $0x88] sm:$0xff] }
 0x13c   : > { %v6174_v44 = vpop.f32.mrb[14].mxu1  ;;  %v4837_v8 = vpack.c.bf16 %v2264_v6, %v2263_v0  ;;  %v2273_v6 = vld [vmem:[%s8344_s5 + $0xd0] sm:$0xff] }
 0x13d   : > { %v6176_v45 = vpop.f32.mrb[15].mxu1  ;;  %4820 = vmatpush1.bf16.msra.mxu1 %v4819_v10  ;;  %v2265_v10 = vld [vmem:[%s8344_s5 + $0x90] sm:$0xff] }
 0x13e   : > { %1071 = vmatmul.mubr.f32.gmra.mrb[50].mxu0 %v543_v15  ;;  %4821 = vmatprep.subr.bf16.mxu1 %v8351_v3  ;;  %v2254_v15 = vld [vmem:[%s8344_s5 + $0x38] sm:$0xff] }
 0x13f   : > { %1075 = vmatprep.mubr.f32.mxu0 %v549_v16 }
 0x142   : > { %1076 = vmatmul.mubr.f32.gmra.mrb[52].mxu0 %v548_v20  ;;  %v4822_v20 = vpack.c.bf16 %v2254_v15, %v2253_v11  ;;  %v2266_v11 = vld [vmem:[%s8344_s5 + $0x98] sm:$0xff] }
 0x143   : > { %1080 = vmatprep.mubr.f32.mxu0 %v554_v21 }
 0x144   : > { %v6184_v49 = vpop.f32.mrb[16].mxu1  ;;  %4823 = vmatpush1.bf16.msra.mxu1 %v4822_v20  ;;  %v4840_v20 = vpack.c.bf16 %v2266_v11, %v2265_v10 }
 0x145   : > { %v6188_v51 = vpop.f32.mrb[17].mxu1  ;;  %4824 = vmatprep.subr.bf16.mxu1 %v8351_v3 }
 0x146   : > { %1081 = vmatmul.mubr.f32.gmra.mrb[54].mxu0 %v553_v22  ;;  %v2255_v22 = vld [vmem:[%s8344_s5 + $0x40] sm:$0xff] }
 0x147   : > { %1085 = vmatprep.mubr.f32.mxu0 %v559_v23  ;;  %v2256_v23 = vld [vmem:[%s8344_s5 + $0x48] sm:$0xff] }
 0x148   : > { %v6204_v63 = vpop.f32.mrb[18].mxu1 }
 0x149   : > { %v6206_v1 = vpop.f32.mrb[19].mxu1 }
 0x14a   : > { %1086 = vmatmul.mubr.f32.gmra.mrb[56].mxu0 %v558_v27  ;;  %v4825_v27 = vpack.c.bf16 %v2256_v23, %v2255_v22  ;;  %v2267_v23 = vld [vmem:[%s8344_s5 + $0xa0] sm:$0xff] }
 0x14b   : > { %1090 = vmatprep.mubr.f32.mxu0 %v564_v28  ;;  %v2257_v28 = vld [vmem:[%s8344_s5 + $0x50] sm:$0xff] }
 0x14c   : > { %v6222_v16 = vpop.f32.mrb[20].mxu1  ;;  %4826 = vmatpush1.bf16.msra.mxu1 %v4825_v27  ;;  %v2268_v27 = vld [vmem:[%s8344_s5 + $0xa8] sm:$0xff] }
 0x14d   : > { %v6224_v21 = vpop.f32.mrb[21].mxu1  ;;  %4827 = vmatprep.subr.bf16.mxu1 %v8351_v3 }
 0x14e   : > { %1091 = vmatmul.mubr.f32.gmra.mrb[58].mxu0 %v563_v29  ;;  %v2258_v29 = vld [vmem:[%s8344_s5 + $0x58] sm:$0xff] }
 0x14f   : > { %1095 = vmatprep.mubr.f32.mxu0 %v569_v30 }
 0x150   : > { %v6240_v30 = vpop.f32.mrb[22].mxu1 }
 0x152   : > { %1096 = vmatmul.mubr.f32.gmra.mrb[60].mxu0 %v568_v34  ;;  %v4828_v34 = vpack.c.bf16 %v2258_v29, %v2257_v28  ;;  %v4843_v28 = vpack.c.bf16 %v2268_v27, %v2267_v23  ;;  %v2269_v29 = vld [vmem:[%s8344_s5 + $0xb0] sm:$0xff]  ;;  %v2276_v23 = vld [vmem:[%s8344_s5 + $0xe8] sm:$0xff] }
 0x153   : > { %1100 = vmatprep.mubr.f32.mxu0 %v574_v35  ;;  %v6242_v35 = vpop.f32.mrb[23].mxu1 }
 0x154   : > { %4829 = vmatpush1.bf16.msra.mxu1 %v4828_v34  ;;  %v6258_v56 = vpop.f32.mrb[24].mxu1  ;;  %v2270_v34 = vld [vmem:[%s8344_s5 + $0xb8] sm:$0xff] }
 0x155   : > { %4830 = vmatprep.subr.bf16.mxu1 %v8351_v3  ;;  %v6260_v60 = vpop.f32.mrb[25].mxu1 }
 0x156   : > { %1101 = vmatmul.mubr.f32.gmra.mrb[62].mxu0 %v573_v36  ;;  %v2259_v36 = vld [vmem:[%s8344_s5 + $0x60] sm:$0xff] }
 0x157   : > { %v4831_v48 = vpack.c.bf16 %v2260_v46, %v2259_v36  ;;  %v4846_v46 = vpack.c.bf16 %v2270_v34, %v2269_v29  ;;  %v2278_v29 = vld [vmem:[%s8344_s5 + $0xf8] sm:$0xff] }
 0x158   : > { %v6276_v15 = vpop.f32.mrb[26].mxu1 }
 0x159   : > { %4832 = vmatpush1.bf16.msra.mxu1 %v4831_v48  ;;  %v6278_v22 = vpop.f32.mrb[27].mxu1 }
 0x15a   : > { %4833 = vmatprep.subr.bf16.mxu1 %v8351_v3 }
 0x15c   : > { %v6294_v36 = vpop.f32.mrb[28].mxu1 }
 0x15d   : > { %4835 = vmatpush1.bf16.msra.mxu1 %v4834_v58  ;;  %v6296_v48 = vpop.f32.mrb[29].mxu1  ;;  %v4849_v58 = vpack.c.bf16 %v2272_v55, %v2271_v54 }
 0x15e   : > { %4836 = vmatprep.subr.bf16.mxu1 %v8351_v3 }
 0x160   : > { %v6305_v0 = vpop.f32.mrb[30].mxu1 }
 0x161   : > { %4838 = vmatpush1.bf16.msra.mxu1 %v4837_v8  ;;  %v2274_v8 = vld [vmem:[%s8344_s5 + $0xd8] sm:$0xff]  ;;  %v6314_v10 = vpop.f32.mrb[31].mxu1 }
 0x162   : > { %4839 = vmatprep.subr.bf16.mxu1 %v8351_v3  ;;  %v4852_v11 = vpack.c.bf16 %v2274_v8, %v2273_v6 }
 0x165   : > { %4841 = vmatpush1.bf16.msra.mxu1 %v4840_v20  ;;  %v2275_v20 = vld [vmem:[%s8344_s5 + $0xe0] sm:$0xff] }
 0x166   : > { %4842 = vmatprep.subr.bf16.mxu1 %v8351_v3  ;;  %v4855_v27 = vpack.c.bf16 %v2276_v23, %v2275_v20  ;;  %v6338_v20 = vld [vmem:[%s8342_s3] ss:$0 sm:$0xff] }
 0x169   : > { %4844 = vmatpush1.bf16.msra.mxu1 %v4843_v28  ;;  %v2277_v28 = vld [vmem:[%s8344_s5 + $0xf0] sm:$0xff] }
 0x16a   : > { %4845 = vmatprep.subr.bf16.mxu1 %v8351_v3  ;;  %v4858_v34 = vpack.c.bf16 %v2278_v29, %v2277_v28 }
 0x16d   : > { %4847 = vmatpush1.bf16.msra.mxu1 %v4846_v46 }
 0x16e   : > { %4848 = vmatprep.subr.bf16.mxu1 %v8351_v3 }
 0x171   : > { %4850 = vmatpush1.bf16.msra.mxu1 %v4849_v58  ;;  %v1441_v58 = vlaneseq }
 0x172   : > { %4851 = vmatprep.subr.bf16.mxu1 %v8351_v3 }
 0x175   : > { %4853 = vmatpush1.bf16.msra.mxu1 %v4852_v11 }
 0x176   : > { %4854 = vmatprep.subr.bf16.mxu1 %v8351_v3 }
 0x179   : > { %4856 = vmatpush1.bf16.msra.mxu1 %v4855_v27  ;;  %v6346_v27 = vshrl.u32 %v1441_v58, 7  ;;  %v2378_v58 = vld [vmem:[%s8344_s5 + $0x418] sm:$0xff] }
 0x17a   : > { %4857 = vmatprep.subr.bf16.mxu1 %v8351_v3 }
 0x17b   : > { %vm1500_vm0 = vcmp.lt.s32.totalorder %v6346_v27, 1  ;;  %vm1443_vm1 = vcmp.ne.s32.totalorder %v6346_v27, 7  ;;  %vm1597_vm3 = vcmp.ne.s32.totalorder %v6346_v27, 0  ;;  %vm1654_vm4 = vcmp.lt.s32.totalorder %v6346_v27, 7  ;;  %v8010_v27 = vld [vmem:[%s8349_s10] ss:$0 sm:$0xff] }
 0x17c   : > { %vm6369_vm2 = vmneg %vm1500_vm0 }
 0x17d   : > { %4859 = vmatpush1.bf16.msra.mxu1 %v4858_v34  ;;  %vm6778_vm5 = vmneg %vm1654_vm4 }
 0x17e   : > { %4860 = vmatprep.subr.bf16.mxu1 %v8351_v3 }
 0x1ad   : > { %v947_v46 = vpop.f32.mrb[0].mxu0 }
 0x1ae   : > { %v6331_v54 = vadd.f32 %v6118_v2, %v947_v46  ;;  %v949_v55 = vpop.f32.mrb[1].mxu0  ;;  %v6344_v2 = vld [vmem:[%s8343_s4] ss:$0 sm:$0xff] }
 0x1b1   : > { %v952_v6 = vpop.f32.mrb[2].mxu0 }
 0x1b2   : > { %v1178_v8 = vadd.f32 %v6108_v61, %v952_v6  ;;  %v954_v11 = vpop.f32.mrb[3].mxu0  ;;  %v2377_v6 = vld [vmem:[%s8344_s5 + $0x410] sm:$0xff] }
 0x1b4   : > { %v1339_v23 = vmul.f32 %v6338_v20, %v1178_v8 }
 0x1b5   : > { %v957_v28 = vpop.f32.mrb[4].mxu0 }
 0x1b6   : > { %v1378_v29 = vadd.f32 %v6344_v2, %v1339_v23  ;;  %v1183_v61 = vadd.f32 %v6134_v12, %v957_v28  ;;  %v959_v34 = vpop.f32.mrb[5].mxu0 }
 0x1b7   : > { %v5008_v34 = vpack.c.bf16 %v2378_v58, %v2377_v6 }
 0x1b8   : > { %v6351_v46 = vmax.f32 %v1378_v29, 0.0  ;;  %v1340_v55 = vmul.f32 %v6338_v20, %v1183_v61  ;;  %v8485_v29 = vmov 0 }
 0x1b9   : > { %v962_v8 = vpop.f32.mrb[6].mxu0  ;;  %v8486_v29 = vsel %vm6369_vm2, 4294967295, %v8485_v29 }
 0x1ba   : > { %8484 = vst [vmem:[#allocation23_spill] sm:$0xff] %v6351_v46  ;;  %v1445_v12 = vsel %vm1443_vm1, %v6351_v46, 0.0  ;;  %v1379_v11 = vadd.f32 %v6344_v2, %v1340_v55  ;;  %v1188_v23 = vadd.f32 %v6124_v7, %v962_v8  ;;  %v964_v28 = vpop.f32.mrb[7].mxu0  ;;  %3130 = vmatprep.mubr.f32.mxu0 %v6351_v46  ;;  %8487 = vst [vmem:[#allocation24_spill] sm:$0xff] %v8486_v29  ;;  %v2379_v7 = vld [vmem:[%s8344_s5 + $0x420] sm:$0xff]  ;;  %v2380_v55 = vld [vmem:[%s8344_s5 + $0x428] sm:$0xff] }
 0x1bb   : > { %v6373_v61 = vrot.slane %v1445_v12, 7  ;;  %v5012_v5 = vpack.c.bf16 %v2380_v55, %v2379_v7 }
 0x1bc   : > { %v6375_v3 = vmax.f32 %v1379_v11, 0.0  ;;  %v1341_v40 = vmul.f32 %v6338_v20, %v1188_v23 }
 0x1bd   : > { %v967_v13 = vpop.f32.mrb[8].mxu0  ;;  %4301 = vmatmul.mubr.msk.f32.vlgmr.msra.gmra.mrb[64].mxu0 %vm6369_vm2, %v6373_v61 }
 0x1be   : > { %8488 = vst [vmem:[#allocation25_spill] sm:$0xff] %v6375_v3  ;;  %v1380_v8 = vadd.f32 %v6344_v2, %v1341_v40  ;;  %v1193_v6 = vadd.f32 %v6144_v18, %v967_v13  ;;  %v969_v58 = vpop.f32.mrb[9].mxu0  ;;  %3135 = vmatprep.mubr.f32.mxu0 %v6375_v3  ;;  %v1446_v12 = vsel %vm1443_vm1, %v6375_v3, 0.0  ;;  %5007 = vmatpush3.bf16.msra.mxu0 %v6186_v50  ;;  %v2381_v18 = vld [vmem:[%s8344_s5 + $0x430] sm:$0xff]  ;;  %v2382_v40 = vld [vmem:[%s8344_s5 + $0x438] sm:$0xff] }
 0x1bf   : > { %v1474_v11 = vrot.slane %v1446_v12, 7  ;;  %5009 = vmatprep.subr.bf16.mxu0 %v5008_v34  ;;  %v5016_v53 = vpack.c.bf16 %v2382_v40, %v2381_v18 }
 0x1c0   : > { %v6394_v23 = vmax.f32 %v1380_v8, 0.0  ;;  %v1342_v28 = vmul.f32 %v6338_v20, %v1193_v6 }
 0x1c1   : > { %v972_v59 = vpop.f32.mrb[10].mxu0  ;;  %v6400_v13 = vsel %vm1500_vm0, %v6373_v61, %v1474_v11 }
 0x1c2   : > { %v1381_v50 = vadd.f32 %v6344_v2, %v1342_v28  ;;  %v1198_v8 = vadd.f32 %v6142_v17, %v972_v59  ;;  %v974_v6 = vpop.f32.mrb[11].mxu0  ;;  %3136 = vmatmul.mubr.f32.gmra.mrb[66].mxu0 %v6400_v13  ;;  %v1447_v7 = vsel %vm1443_vm1, %v6394_v23, 0.0  ;;  %v2383_v17 = vld [vmem:[%s8344_s5 + $0x440] sm:$0xff] }
 0x1c3   : > { %3140 = vmatprep.mubr.f32.mxu0 %v6394_v23  ;;  %v1475_v55 = vrot.slane %v1447_v7, 7  ;;  %5011 = vmatpush3.bf16.msra.mxu0 %v5008_v34  ;;  %v2384_v6 = vld [vmem:[%s8344_s5 + $0x448] sm:$0xff] }
 0x1c4   : > { %v6415_v58 = vmax.f32 %v1381_v50, 0.0  ;;  %v1343_v12 = vmul.f32 %v6338_v20, %v1198_v8  ;;  %5013 = vmatprep.subr.bf16.mxu0 %v5012_v5  ;;  %v5020_v24 = vpack.c.bf16 %v2384_v6, %v2383_v17 }
 0x1c5   : > { %v977_v28 = vpop.f32.mrb[12].mxu0  ;;  %v6420_v59 = vsel %vm1500_vm0, %v1474_v11, %v1475_v55 }
 0x1c6   : > { %v1382_v34 = vadd.f32 %v6344_v2, %v1343_v12  ;;  %v1203_v50 = vadd.f32 %v6152_v26, %v977_v28  ;;  %v979_v8 = vpop.f32.mrb[13].mxu0  ;;  %3141 = vmatmul.mubr.f32.gmra.mrb[68].mxu0 %v6420_v59  ;;  %v1448_v11 = vsel %vm1443_vm1, %v6415_v58, 0.0  ;;  %v2385_v28 = vld [vmem:[%s8344_s5 + $0x450] sm:$0xff] }
 0x1c7   : > { %3145 = vmatprep.mubr.f32.mxu0 %v6415_v58  ;;  %v1476_v18 = vrot.slane %v1448_v11, 7  ;;  %5015 = vmatpush3.bf16.msra.mxu0 %v5012_v5  ;;  %v2386_v8 = vld [vmem:[%s8344_s5 + $0x458] sm:$0xff] }
 0x1c8   : > { %v6435_v40 = vmax.f32 %v1382_v34, 0.0  ;;  %v1344_v7 = vmul.f32 %v6338_v20, %v1203_v50  ;;  %5017 = vmatprep.subr.bf16.mxu0 %v5016_v53  ;;  %v5024_v19 = vpack.c.bf16 %v2386_v8, %v2385_v28 }
 0x1c9   : > { %v982_v12 = vpop.f32.mrb[14].mxu0  ;;  %v6440_v26 = vsel %vm1500_vm0, %v1475_v55, %v1476_v18 }
 0x1ca   : > { %v1383_v5 = vadd.f32 %v6344_v2, %v1344_v7  ;;  %v1208_v34 = vadd.f32 %v6150_v25, %v982_v12  ;;  %v984_v50 = vpop.f32.mrb[15].mxu0  ;;  %3146 = vmatmul.mubr.f32.gmra.mrb[70].mxu0 %v6440_v26  ;;  %v1449_v55 = vsel %vm1443_vm1, %v6435_v40, 0.0  ;;  %v2387_v12 = vld [vmem:[%s8344_s5 + $0x460] sm:$0xff] }
 0x1cb   : > { %3150 = vmatprep.mubr.f32.mxu0 %v6435_v40  ;;  %v1477_v17 = vrot.slane %v1449_v55, 7  ;;  %5019 = vmatpush3.bf16.msra.mxu0 %v5016_v53  ;;  %v2388_v50 = vld [vmem:[%s8344_s5 + $0x468] sm:$0xff] }
 0x1cc   : > { %v6455_v6 = vmax.f32 %v1383_v5, 0.0  ;;  %v1345_v11 = vmul.f32 %v6338_v20, %v1208_v34  ;;  %5021 = vmatprep.subr.bf16.mxu0 %v5020_v24  ;;  %v5028_v55 = vpack.c.bf16 %v2388_v50, %v2387_v12 }
 0x1cd   : > { %v987_v7 = vpop.f32.mrb[16].mxu0  ;;  %v6460_v25 = vsel %vm1500_vm0, %v1476_v18, %v1477_v17 }
 0x1ce   : > { %v1384_v53 = vadd.f32 %v6344_v2, %v1345_v11  ;;  %v6470_v5 = vadd.f32 %v6160_v33, %v987_v7  ;;  %v989_v34 = vpop.f32.mrb[17].mxu0  ;;  %3151 = vmatmul.mubr.f32.gmra.mrb[72].mxu0 %v6460_v25  ;;  %v1450_v18 = vsel %vm1443_vm1, %v6455_v6, 0.0  ;;  %v2389_v7 = vld [vmem:[%s8344_s5 + $0x470] sm:$0xff] }
 0x1cf   : > { %3155 = vmatprep.mubr.f32.mxu0 %v6455_v6  ;;  %v6477_v28 = vrot.slane %v1450_v18, 7  ;;  %5023 = vmatpush3.bf16.msra.mxu0 %v5020_v24  ;;  %v2390_v34 = vld [vmem:[%s8344_s5 + $0x478] sm:$0xff] }
 0x1d0   : > { %v6479_v8 = vmax.f32 %v1384_v53, 0.0  ;;  %5025 = vmatprep.subr.bf16.mxu0 %v5024_v19  ;;  %v5032_v18 = vpack.c.bf16 %v2390_v34, %v2389_v7 }
 0x1d1   : > { %v992_v11 = vpop.f32.mrb[18].mxu0  ;;  %v6484_v33 = vsel %vm1500_vm0, %v1477_v17, %v6477_v28 }
 0x1d2   : > { %8489 = vst [vmem:[#allocation26_spill] sm:$0xff] %v6479_v8  ;;  %v1218_v24 = vadd.f32 %v6158_v31, %v992_v11  ;;  %v994_v53 = vpop.f32.mrb[19].mxu0  ;;  %3156 = vmatmul.mubr.f32.gmra.mrb[74].mxu0 %v6484_v33  ;;  %v1719_v12 = vsel %vm1443_vm1, %v6479_v8, 0.0 }
 0x1d3   : > { %3160 = vmatprep.mubr.f32.mxu0 %v6479_v8  ;;  %v6498_v17 = vrot.slane %v1719_v12, 7  ;;  %5027 = vmatpush3.bf16.msra.mxu0 %v5024_v19  ;;  %v8492_v12 = vmov 0.0  }
 0x1d4   : > { %v1347_v50 = vmul.f32 %v6338_v20, %v1218_v24  ;;  %5029 = vmatprep.subr.bf16.mxu0 %v5028_v55 }
 0x1d5   : > { %8490 = vst [vmem:[#allocation27_spill] sm:$0xff] %v6498_v17  ;;  %v997_v14 = vpop.f32.mrb[20].mxu0  ;;  %v6505_v31 = vsel %vm1500_vm0, %v6477_v28, %v6498_v17 }
 0x1d6   : > { %8491 = vst [vmem:[#allocation28_spill] sm:$0xff] %v6505_v31  ;;  %v1386_v11 = vadd.f32 %v6344_v2, %v1347_v50  ;;  %v1223_v53 = vadd.f32 %v6167_v39, %v997_v14  ;;  %v999_v9 = vpop.f32.mrb[21].mxu0  ;;  %3161 = vmatmul.mubr.f32.gmra.mrb[76].mxu0 %v6505_v31 }
 0x1d7   : > { %3165 = vmatprep.mubr.f32.mxu0 %v8492_v12  ;;  %5031 = vmatpush3.bf16.msra.mxu0 %v5028_v55 }
 0x1d8   : > { %v6511_v19 = vmax.f32 %v1386_v11, 0.0  ;;  %v1348_v7 = vmul.f32 %v6338_v20, %v1223_v53  ;;  %5033 = vmatprep.subr.bf16.mxu0 %v5032_v18 }
 0x1d9   : > { %v1002_v34 = vpop.f32.mrb[22].mxu0 }
 0x1da   : > { %v1387_v24 = vadd.f32 %v6344_v2, %v1348_v7  ;;  %v1228_v4 = vadd.f32 %v6165_v38, %v1002_v34  ;;  %v1004_v62 = vpop.f32.mrb[23].mxu0  ;;  %4302 = vmatmul.mubr.msk.f32.gmra.mrb[78].mxu0 %vm1500_vm0, %v6498_v17  ;;  %v1452_v9 = vsel %vm1443_vm1, %v6511_v19, 0.0 }
 0x1db   : > { %3170 = vmatprep.mubr.f32.mxu0 %v6511_v19  ;;  %v6523_v14 = vrot.slane %v1452_v9, 7  ;;  %5035 = vmatpush3.bf16.msra.mxu0 %v5032_v18 }
 0x1dc   : > { %v6525_v39 = vmax.f32 %v1387_v24, 0.0  ;;  %v1349_v55 = vmul.f32 %v6338_v20, %v1228_v4 }
 0x1dd   : > { %v1007_v50 = vpop.f32.mrb[24].mxu0 }
 0x1de   : > { %v1388_v62 = vadd.f32 %v6344_v2, %v1349_v55  ;;  %v1233_v38 = vadd.f32 %v6172_v43, %v1007_v50  ;;  %v1009_v11 = vpop.f32.mrb[25].mxu0  ;;  %4304 = vmatmul.mubr.msk.f32.gmra.mrb[80].mxu0 %vm6369_vm2, %v6523_v14  ;;  %v1453_v53 = vsel %vm1443_vm1, %v6525_v39, 0.0 }
 0x1df   : > { %3175 = vmatprep.mubr.f32.mxu0 %v6525_v39  ;;  %v1481_v18 = vrot.slane %v1453_v53, 7 }
 0x1e0   : > { %v6537_v7 = vmax.f32 %v1388_v62, 0.0  ;;  %v1350_v4 = vmul.f32 %v6338_v20, %v1233_v38 }
 0x1e1   : > { %v1012_v34 = vpop.f32.mrb[26].mxu0  ;;  %v6543_v43 = vsel %vm1500_vm0, %v6523_v14, %v1481_v18 }
 0x1e2   : > { %8493 = vst [vmem:[#allocation29_spill] sm:$0xff] %v6537_v7  ;;  %v1389_v24 = vadd.f32 %v6344_v2, %v1350_v4  ;;  %v1238_v9 = vadd.f32 %v6170_v41, %v1012_v34  ;;  %v1014_v55 = vpop.f32.mrb[27].mxu0  ;;  %3176 = vmatmul.mubr.f32.gmra.mrb[82].mxu0 %v6543_v43  ;;  %v1454_v50 = vsel %vm1443_vm1, %v6537_v7, 0.0 }
 0x1e3   : > { %3180 = vmatprep.mubr.f32.mxu0 %v6537_v7  ;;  %v1482_v62 = vrot.slane %v1454_v50, 7 }
 0x1e4   : > { %v6552_v38 = vmax.f32 %v1389_v24, 0.0  ;;  %v1351_v11 = vmul.f32 %v6338_v20, %v1238_v9 }
 0x1e5   : > { %v1017_v53 = vpop.f32.mrb[28].mxu0  ;;  %v6557_v4 = vsel %vm1500_vm0, %v1481_v18, %v1482_v62 }
 0x1e6   : > { %8494 = vst [vmem:[#allocation30_spill] sm:$0xff] %v6552_v38  ;;  %v1390_v41 = vadd.f32 %v6344_v2, %v1351_v11  ;;  %v1243_v34 = vadd.f32 %v6176_v45, %v1017_v53  ;;  %v1019_v55 = vpop.f32.mrb[29].mxu0  ;;  %3181 = vmatmul.mubr.f32.gmra.mrb[84].mxu0 %v6557_v4  ;;  %v1455_v50 = vsel %vm1443_vm1, %v6552_v38, 0.0 }
 0x1e7   : > { %3185 = vmatprep.mubr.f32.mxu0 %v6552_v38  ;;  %v1483_v24 = vrot.slane %v1455_v50, 7 }
 0x1e8   : > { %v6566_v9 = vmax.f32 %v1390_v41, 0.0  ;;  %v1352_v57 = vmul.f32 %v6338_v20, %v1243_v34 }
 0x1e9   : > { %v1022_v18 = vpop.f32.mrb[30].mxu0  ;;  %v6571_v11 = vsel %vm1500_vm0, %v1482_v62, %v1483_v24 }
 0x1ea   : > { %8495 = vst [vmem:[#allocation31_spill] sm:$0xff] %v6566_v9  ;;  %v1391_v45 = vadd.f32 %v6344_v2, %v1352_v57  ;;  %v1248_v53 = vadd.f32 %v6174_v44, %v1022_v18  ;;  %v1024_v55 = vpop.f32.mrb[31].mxu0  ;;  %3186 = vmatmul.mubr.f32.gmra.mrb[86].mxu0 %v6571_v11  ;;  %v1456_v50 = vsel %vm1443_vm1, %v6566_v9, 0.0 }
 0x1eb   : > { %3190 = vmatprep.mubr.f32.mxu0 %v6566_v9  ;;  %v1484_v41 = vrot.slane %v1456_v50, 7 }
 0x1ec   : > { %v6580_v34 = vmax.f32 %v1391_v45, 0.0  ;;  %v1353_v52 = vmul.f32 %v6338_v20, %v1248_v53 }
 0x1ed   : > { %v1027_v62 = vpop.f32.mrb[32].mxu0  ;;  %v6585_v57 = vsel %vm1500_vm0, %v1483_v24, %v1484_v41 }
 0x1ee   : > { %8496 = vst [vmem:[#allocation32_spill] sm:$0xff] %v6580_v34  ;;  %v1392_v44 = vadd.f32 %v6344_v2, %v1353_v52  ;;  %v6589_v18 = vadd.f32 %v6188_v51, %v1027_v62  ;;  %v1029_v55 = vpop.f32.mrb[33].mxu0  ;;  %3191 = vmatmul.mubr.f32.gmra.mrb[88].mxu0 %v6585_v57  ;;  %v1457_v45 = vsel %vm1443_vm1, %v6580_v34, 0.0 }
 0x1ef   : > { %3195 = vmatprep.mubr.f32.mxu0 %v6580_v34  ;;  %v6596_v53 = vrot.slane %v1457_v45, 7 }
 0x1f0   : > { %v6598_v50 = vmax.f32 %v1392_v44, 0.0 }
 0x1f1   : > { %8497 = vst [vmem:[#allocation33_spill] sm:$0xff] %v6596_v53  ;;  %v1032_v24 = vpop.f32.mrb[34].mxu0  ;;  %v6603_v52 = vsel %vm1500_vm0, %v1484_v41, %v6596_v53 }
 0x1f2   : > { %8498 = vst [vmem:[#allocation34_spill] sm:$0xff] %v6598_v50  ;;  %v1258_v51 = vadd.f32 %v6184_v49, %v1032_v24  ;;  %v1034_v62 = vpop.f32.mrb[35].mxu0  ;;  %3196 = vmatmul.mubr.f32.gmra.mrb[90].mxu0 %v6603_v52  ;;  %v1720_v55 = vsel %vm1443_vm1, %v6598_v50, 0.0 }
 0x1f3   : > { %3200 = vmatprep.mubr.f32.mxu0 %v6598_v50  ;;  %v6611_v45 = vrot.slane %v1720_v55, 7 }
 0x1f4   : > { %v1355_v44 = vmul.f32 %v6338_v20, %v1258_v51 }
 0x1f5   : > { %8499 = vst [vmem:[#allocation35_spill] sm:$0xff] %v6611_v45  ;;  %v1037_v47 = vpop.f32.mrb[36].mxu0  ;;  %v6618_v41 = vsel %vm1500_vm0, %v6596_v53, %v6611_v45 }
 0x1f6   : > { %8500 = vst [vmem:[#allocation36_spill] sm:$0xff] %v6618_v41  ;;  %v1394_v49 = vadd.f32 %v6344_v2, %v1355_v44  ;;  %v1263_v24 = vadd.f32 %v6206_v1, %v1037_v47  ;;  %v1039_v62 = vpop.f32.mrb[37].mxu0  ;;  %3201 = vmatmul.mubr.f32.gmra.mrb[92].mxu0 %v6618_v41 }
 0x1f7   : > { %3205 = vmatprep.mubr.f32.mxu0 %v8492_v12 }
 0x1f8   : > { %v6624_v55 = vmax.f32 %v1394_v49, 0.0  ;;  %v1356_v51 = vmul.f32 %v6338_v20, %v1263_v24 }
 0x1f9   : > { %v1042_v42 = vpop.f32.mrb[38].mxu0 }
 0x1fa   : > { %8501 = vst [vmem:[#allocation37_spill] sm:$0xff] %v6624_v55  ;;  %v1395_v37 = vadd.f32 %v6344_v2, %v1356_v51  ;;  %v1268_v32 = vadd.f32 %v6204_v63, %v1042_v42  ;;  %v1044_v17 = vpop.f32.mrb[39].mxu0  ;;  %4305 = vmatmul.mubr.msk.f32.gmra.mrb[94].mxu0 %vm1500_vm0, %v6611_v45  ;;  %v1459_v47 = vsel %vm1443_vm1, %v6624_v55, 0.0 }
 0x1fb   : > { %3210 = vmatprep.mubr.f32.mxu0 %v6624_v55  ;;  %v6636_v1 = vrot.slane %v1459_v47, 7 }
 0x1fc   : > { %v6638_v44 = vmax.f32 %v1395_v37, 0.0  ;;  %v1357_v49 = vmul.f32 %v6338_v20, %v1268_v32 }
 0x1fd   : > { %8502 = vst [vmem:[#allocation38_spill] sm:$0xff] %v6636_v1  ;;  %v1047_v24 = vpop.f32.mrb[40].mxu0 }
 0x1fe   : > { %8503 = vst [vmem:[#allocation39_spill] sm:$0xff] %v6638_v44  ;;  %v1396_v42 = vadd.f32 %v6344_v2, %v1357_v49  ;;  %v1273_v63 = vadd.f32 %v6224_v21, %v1047_v24  ;;  %v1049_v17 = vpop.f32.mrb[41].mxu0  ;;  %4307 = vmatmul.mubr.msk.f32.gmra.mrb[96].mxu0 %vm6369_vm2, %v6636_v1  ;;  %v1460_v62 = vsel %vm1443_vm1, %v6638_v44, 0.0 }
 0x1ff   : > { %3215 = vmatprep.mubr.f32.mxu0 %v6638_v44  ;;  %v1488_v37 = vrot.slane %v1460_v62, 7  ;;  %v1600_v62 = vsel %vm1597_vm3, %v6375_v3, 0.0 }
 0x200   : > { %v6650_v51 = vmax.f32 %v1396_v42, 0.0  ;;  %v1358_v32 = vmul.f32 %v6338_v20, %v1273_v63 }
 0x201   : > { %v1052_v47 = vpop.f32.mrb[42].mxu0  ;;  %v6656_v21 = vsel %vm1500_vm0, %v6636_v1, %v1488_v37 }
 0x202   : > { %8504 = vst [vmem:[#allocation40_spill] sm:$0xff] %v6650_v51  ;;  %8505 = vst [vmem:[#allocation41_spill] sm:$0xff] %v6656_v21  ;;  %v1397_v49 = vadd.f32 %v6344_v2, %v1358_v32  ;;  %v6661_v24 = vadd.f32 %v6222_v16, %v1052_v47  ;;  %v1054_v17 = vpop.f32.mrb[43].mxu0  ;;  %3216 = vmatmul.mubr.f32.gmra.mrb[98].mxu0 %v6656_v21  ;;  %v1461_v42 = vsel %vm1443_vm1, %v6650_v51, 0.0  ;;  %v1599_v47 = vsel %vm1597_vm3, %v6351_v46, 0.0 }
 0x203   : > { %3220 = vmatprep.mubr.f32.mxu0 %v6650_v51  ;;  %v1489_v63 = vrot.slane %v1461_v42, 7  ;;  %v1628_v42 = vrot.slane %v1600_v62, 1 }
 0x204   : > { %v6671_v45 = vmax.f32 %v1397_v49, 0.0 }
 0x205   : > { %v1057_v32 = vpop.f32.mrb[44].mxu0  ;;  %v6675_v16 = vsel %vm1500_vm0, %v1488_v37, %v1489_v63  ;;  %v1601_v37 = vsel %vm1597_vm3, %v6394_v23, 0.0 }
 0x206   : > { %8506 = vst [vmem:[#allocation42_spill] sm:$0xff] %v6671_v45  ;;  %8507 = vst [vmem:[#allocation43_spill] sm:$0xff] %v6675_v16  ;;  %v6681_v17 = vadd.f32 %v6242_v35, %v1057_v32  ;;  %v1059_v41 = vpop.f32.mrb[45].mxu0  ;;  %3221 = vmatmul.mubr.f32.gmra.mrb[100].mxu0 %v6675_v16  ;;  %v6687_v49 = vsel %vm1443_vm1, %v6671_v45, 0.0  ;;  %v1602_v35 = vsel %vm1597_vm3, %v6415_v58, 0.0  ;;  %v1629_v16 = vrot.slane %v1601_v37, 1 }
 0x207   : > { %8508 = vst [vmem:[#allocation44_spill] sm:$0xff] %v6687_v49  ;;  %3225 = vmatprep.mubr.f32.mxu0 %v6671_v45  ;;  %v8382_v31 = vrot.slane %v6687_v49, 7  ;;  %v6697_v41 = vrot.slane %v1599_v47, 1  ;;  %v1630_v53 = vrot.slane %v1602_v35, 1  ;;  %v1603_v49 = vsel %vm1597_vm3, %v6435_v40, 0.0 }
 0x208   : > { %v1631_v37 = vrot.slane %v1603_v49, 1 }
 0x209   : > { %v1062_v32 = vpop.f32.mrb[46].mxu0  ;;  %v6704_v62 = vsel %vm1500_vm0, %v1489_v63, %v8382_v31  ;;  %v6713_v47 = vsel %vm1654_vm4, %v6697_v41, %v1628_v42  ;;  %v6732_v31 = vsel %vm1654_vm4, %v1629_v16, %v1630_v53 }
 0x20a   : > { %8509 = vst [vmem:[#allocation45_spill] sm:$0xff] %v6704_v62  ;;  %v6707_v21 = vadd.f32 %v6240_v30, %v1062_v32  ;;  %v1064_v1 = vpop.f32.mrb[47].mxu0  ;;  %3226 = vmatmul.mubr.f32.gmra.mrb[102].mxu0 %v6704_v62  ;;  %8510 = vst [vmem:[#allocation46_spill] sm:$0xff] %v6713_v47  ;;  %v1604_v30 = vsel %vm1597_vm3, %v6455_v6, 0.0  ;;  %v1799_v62 = vsel %vm1597_vm3, %v6479_v8, 0.0  ;;  %v1608_v8 = vsel %vm1597_vm3, %v6537_v7, 0.0 }
 0x20b   : > { %4572 = vmatprep.mubr.f32.mxu0 %v6713_v47  ;;  %v6724_v1 = vsel %vm1654_vm4, %v1628_v42, %v1629_v16  ;;  %8513 = vst [vmem:[#allocation49_spill] sm:$0xff] %v6732_v31  ;;  %v6734_v47 = vrot.slane %v1604_v30, 1  ;;  %v6744_v49 = vrot.slane %v1799_v62, 1  ;;  %v1606_v62 = vsel %vm1597_vm3, %v6511_v19, 0.0 }
 0x20c   : > { %8511 = vst [vmem:[#allocation47_spill] sm:$0xff] %v6724_v1 }
 0x20d   : > { %v1067_v63 = vpop.f32.mrb[48].mxu0  ;;  %8514 = vst [vmem:[#allocation50_spill] sm:$0xff] %v6734_v47  ;;  %8516 = vst [vmem:[#allocation52_spill] sm:$0xff] %v6744_v49  ;;  %v6753_v30 = vsel %vm1654_vm4, %v1631_v37, %v6734_v47 }
 0x20e   : > { %v6727_v32 = vadd.f32 %v6260_v60, %v1067_v63  ;;  %v1069_v35 = vpop.f32.mrb[49].mxu0  ;;  %4573 = vmatmul.mubr.f32.vlgmr.msra.gmra.mrb[104].mxu0 %v6724_v1  ;;  %v6742_v60 = vsel %vm1654_vm4, %v1630_v53, %v1631_v37  ;;  %8517 = vst [vmem:[#allocation53_spill] sm:$0xff] %v6753_v30  ;;  %v1607_v53 = vsel %vm1597_vm3, %v6525_v39, 0.0  ;;  %v1800_v1 = vsel %vm1597_vm3, %v6598_v50, 0.0 }
 0x20f   : > { %4575 = vmatprep.mubr.f32.mxu0 %v6732_v31  ;;  %8515 = vst [vmem:[#allocation51_spill] sm:$0xff] %v6742_v60 }
 0x210   : > { %8512 = vst [vmem:[#allocation48_spill] sm:$0xff] %v6727_v32 }
 0x211   : > { %v1072_v42 = vpop.f32.mrb[50].mxu0 }
 0x212   : > { %v6747_v63 = vadd.f32 %v6258_v56, %v1072_v42  ;;  %v1074_v16 = vpop.f32.mrb[51].mxu0  ;;  %4576 = vmatmul.mubr.f32.gmra.mrb[106].mxu0 %v6742_v60  ;;  %v6763_v56 = vsel %vm1654_vm4, %v6734_v47, %v6744_v49 }
 0x213   : > { %4578 = vmatprep.mubr.f32.mxu0 %v6753_v30  ;;  %8518 = vst [vmem:[#allocation54_spill] sm:$0xff] %v6763_v56  ;;  %v1635_v16 = vrot.slane %v1607_v53, 1 }
 0x215   : > { %v1077_v35 = vpop.f32.mrb[52].mxu0 }
 0x216   : > { %v1303_v37 = vadd.f32 %v6278_v22, %v1077_v35  ;;  %v1079_v42 = vpop.f32.mrb[53].mxu0  ;;  %4579 = vmatmul.mubr.f32.gmra.mrb[108].mxu0 %v6763_v56  ;;  %v1609_v22 = vsel %vm1597_vm3, %v6552_v38, 0.0  ;;  %v6785_v35 = vrot.slane %v1606_v62, 1  ;;  %v1610_v62 = vsel %vm1597_vm3, %v6566_v9, 0.0 }
 0x217   : > { %4581 = vmatprep.mubr.msk.f32.mxu0 %vm1654_vm4, %v6744_v49  ;;  %v1636_v42 = vrot.slane %v1608_v8, 1  ;;  %v1637_v60 = vrot.slane %v1609_v22, 1 }
 0x218   : > { %8521 = vst [vmem:[#allocation55_spill] sm:$0xff] %v6785_v35  ;;  %v6796_v49 = vsel %vm1654_vm4, %v6785_v35, %v1635_v16 }
 0x219   : > { %v1082_v53 = vpop.f32.mrb[54].mxu0  ;;  %8522 = vst [vmem:[#allocation56_spill] sm:$0xff] %v6796_v49  ;;  %v6813_v22 = vsel %vm1654_vm4, %v1636_v42, %v1637_v60 }
 0x21a   : > { %v6788_v56 = vadd.f32 %v6276_v15, %v1082_v53  ;;  %v1084_v30 = vpop.f32.mrb[55].mxu0  ;;  %4582 = vmatmul.mubr.msk.f32.gmra.mrb[110].mxu0 %vm6778_vm5, %v6785_v35  ;;  %v1611_v15 = vsel %vm1597_vm3, %v6580_v34, 0.0  ;;  %v1638_v53 = vrot.slane %v1610_v62, 1  ;;  %8524 = vst [vmem:[#allocation58_spill] sm:$0xff] %v6813_v22  ;;  %v1360_v62 = vmul.f32 %v6338_v20, %v6681_v17 }
 0x21b   : > { %4584 = vmatprep.mubr.f32.mxu0 %v6796_v49  ;;  %v6807_v30 = vsel %vm1654_vm4, %v1635_v16, %v1636_v42  ;;  %v6815_v49 = vrot.slane %v1611_v15, 1  ;;  %v1359_v16 = vmul.f32 %v6338_v20, %v6661_v24  ;;  %v6831_v15 = vrot.slane %v1800_v1, 1 }
 0x21c   : > { %8523 = vst [vmem:[#allocation57_spill] sm:$0xff] %v6807_v30  ;;  %v6829_v42 = vsel %vm1654_vm4, %v1637_v60, %v1638_v53  ;;  %v1361_v60 = vmul.f32 %v6338_v20, %v6707_v21 }
 0x21d   : > { %v1087_v8 = vpop.f32.mrb[56].mxu0  ;;  %8525 = vst [vmem:[#allocation59_spill] sm:$0xff] %v6815_v49  ;;  %8526 = vst [vmem:[#allocation60_spill] sm:$0xff] %v6829_v42  ;;  %v6838_v24 = vsel %vm1654_vm4, %v1638_v53, %v6815_v49  ;;  %v1398_v17 = vadd.f32 %v6344_v2, %v1359_v16  ;;  %v6853_v53 = vsel %vm1654_vm4, %v6815_v49, %v6831_v15  ;;  %v1613_v16 = vsel %vm1597_vm3, %v6624_v55, 0.0 }
 0x21e   : > { %v1313_v35 = vadd.f32 %v6296_v48, %v1087_v8  ;;  %v1089_v31 = vpop.f32.mrb[57].mxu0  ;;  %4585 = vmatmul.mubr.f32.gmra.mrb[112].mxu0 %v6807_v30  ;;  %v1338_v48 = vmul.f32 %v6338_v20, %v6331_v54  ;;  %8527 = vst [vmem:[#allocation61_spill] sm:$0xff] %v6831_v15  ;;  %8528 = vst [vmem:[#allocation62_spill] sm:$0xff] %v6838_v24  ;;  %v1399_v54 = vadd.f32 %v6344_v2, %v1360_v62 }
 0x21f   : > { %4587 = vmatprep.mubr.f32.mxu0 %v6813_v22  ;;  %8529 = vst [vmem:[#allocation63_spill] sm:$0xff] %v6853_v53  ;;  %v6866_v49 = vmax.f32 %v1398_v17, 0.0  ;;  %v1400_v22 = vadd.f32 %v6344_v2, %v1361_v60 }
 0x221   : > { %v1092_v31 = vpop.f32.mrb[58].mxu0  ;;  %8530 = vst [vmem:[#allocation64_spill] sm:$0xff] %v6866_v49 }
 0x222   : > { %v1318_v8 = vadd.f32 %v6294_v36, %v1092_v31  ;;  %v1094_v50 = vpop.f32.mrb[59].mxu0  ;;  %4588 = vmatmul.mubr.f32.gmra.mrb[114].mxu0 %v6829_v42  ;;  %v1614_v36 = vsel %vm1597_vm3, %v6638_v44, 0.0  ;;  %v6868_v42 = vmax.f32 %v1399_v54, 0.0  ;;  %v1363_v54 = vmul.f32 %v6338_v20, %v6747_v63  ;;  %v2280_v63 = vld [vmem:[%s8344_s5 + $0x108] sm:$0xff] }
 0x223   : > { %4590 = vmatprep.mubr.f32.mxu0 %v6838_v24  ;;  %v1377_v50 = vadd.f32 %v6344_v2, %v1338_v48  ;;  %v1642_v31 = vrot.slane %v1614_v36, 1  ;;  %v1615_v48 = vsel %vm1597_vm3, %v6650_v51, 0.0  ;;  %v1616_v24 = vsel %vm1597_vm3, %v6671_v45, 0.0 }
 0x224   : > { %8531 = vst [vmem:[#allocation65_spill] sm:$0xff] %v6868_v42  ;;  %v1643_v30 = vrot.slane %v1615_v48, 1  ;;  %v1644_v17 = vrot.slane %v1616_v24, 1  ;;  %v2279_v24 = vld [vmem:[%s8344_s5 + $0x100] sm:$0xff] }
 0x225   : > { %v1097_v1 = vpop.f32.mrb[60].mxu0 }
 0x226   : > { %v1323_v21 = vadd.f32 %v6314_v10, %v1097_v1  ;;  %v1099_v62 = vpop.f32.mrb[61].mxu0  ;;  %4591 = vmatmul.mubr.f32.gmra.mrb[116].mxu0 %v6853_v53  ;;  %v1364_v10 = vmul.f32 %v6338_v20, %v1303_v37  ;;  %v6876_v1 = vrot.slane %v1613_v16, 1 }
 0x227   : > { %4593 = vmatprep.mubr.msk.f32.mxu0 %vm1654_vm4, %v6831_v15  ;;  %v6878_v62 = vmax.f32 %v1377_v50, 0.0  ;;  %v6898_v50 = vmax.f32 %v1400_v22, 0.0  ;;  %v6915_v22 = vsel %vm1654_vm4, %v1642_v31, %v1643_v30 }
 0x228   : > { %v1368_v36 = vmul.f32 %v6338_v20, %v1323_v21  ;;  %8532 = vst [vmem:[#allocation66_spill] sm:$0xff] %v6876_v1  ;;  %v6890_v37 = vsel %vm1654_vm4, %v6876_v1, %v1642_v31  ;;  %v1403_v16 = vadd.f32 %v6344_v2, %v1364_v10  ;;  %v1366_v21 = vmul.f32 %v6338_v20, %v1313_v35 }
 0x229   : > { %v1102_v53 = vpop.f32.mrb[62].mxu0  ;;  %8533 = vst [vmem:[#allocation67_spill] sm:$0xff] %v6890_v37  ;;  %8534 = vst [vmem:[#allocation68_spill] sm:$0xff] %v6898_v50  ;;  %v1444_v15 = vsel %vm1443_vm1, %v6878_v62, 0.0 }
 0x22a   : > { %v1407_v60 = vadd.f32 %v6344_v2, %v1368_v36  ;;  %v1328_v32 = vadd.f32 %v6305_v0, %v1102_v53  ;;  %v1104_v45 = vpop.f32.mrb[63].mxu0  ;;  %4594 = vmatmul.mubr.msk.f32.gmra.mrb[118].mxu0 %vm6778_vm5, %v6876_v1  ;;  %v1365_v0 = vmul.f32 %v6338_v20, %v6788_v56  ;;  %v1618_v53 = vsel %vm1597_vm3, %v6868_v42, 0.0  ;;  %8536 = vst [vmem:[#allocation70_spill] sm:$0xff] %v6915_v22 }
 0x22b   : > { %4596 = vmatprep.mubr.f32.mxu0 %v6890_v37  ;;  %v1617_v45 = vsel %vm1597_vm3, %v6866_v49, 0.0  ;;  %v6919_v56 = vsel %vm1654_vm4, %v1643_v30, %v1644_v17  ;;  %v4861_v36 = vpack.c.bf16 %v2280_v63, %v2279_v24  ;;  %v1402_v37 = vadd.f32 %v6344_v2, %v1363_v54  ;;  %v2281_v63 = vld [vmem:[%s8344_s5 + $0x110] sm:$0xff] }
 0x22c   : > { %v6911_v48 = vmax.f32 %v1407_v60, 0.0  ;;  %8537 = vst [vmem:[#allocation71_spill] sm:$0xff] %v6919_v56  ;;  %v1645_v10 = vrot.slane %v1617_v45, 1  ;;  %v6929_v31 = vrot.slane %v1618_v53, 1  ;;  %v1404_v60 = vadd.f32 %v6344_v2, %v1365_v0  ;;  %v2282_v45 = vld [vmem:[%s8344_s5 + $0x118] sm:$0xff] }
 0x22d   : > { %v1367_v30 = vmul.f32 %v6338_v20, %v1318_v8  ;;  %v1801_v54 = vsel %vm1597_vm3, %v6898_v50, 0.0  ;;  %v6945_v53 = vmax.f32 %v1403_v16, 0.0  ;;  %v1405_v8 = vadd.f32 %v6344_v2, %v1366_v21 }
 0x22e   : > { %8535 = vst [vmem:[#allocation69_spill] sm:$0xff] %v6911_v48  ;;  %v1471_v35 = vsel %vm1443_vm1, %v6911_v48, 0.0  ;;  %4597 = vmatmul.mubr.f32.gmra.mrb[120].mxu0 %v6915_v22  ;;  %8538 = vst [vmem:[#allocation72_spill] sm:$0xff] %v6929_v31  ;;  %v6951_v0 = vrot.slane %v1444_v15, 7  ;;  %v6958_v50 = vsel %vm1654_vm4, %v1644_v17, %v1645_v10  ;;  %v4864_v16 = vpack.c.bf16 %v2282_v45, %v2281_v63  ;;  %v2283_v17 = vld [vmem:[%s8344_s5 + $0x120] sm:$0xff] }
 0x22f   : > { %4599 = vmatprep.mubr.f32.mxu0 %v6919_v56  ;;  %v6934_v24 = vrot.slane %v1471_v35, 7  ;;  %8539 = vst [vmem:[#allocation73_spill] sm:$0xff] %v6945_v53  ;;  %v6953_v35 = vmax.f32 %v1402_v37, 0.0  ;;  %v6960_v56 = vrot.slane %v1801_v54, 1  ;;  %v6962_v22 = vmax.f32 %v1404_v60, 0.0 }
 0x230   : > { %v1406_v21 = vadd.f32 %v6344_v2, %v1367_v30  ;;  %v1369_v1 = vmul.f32 %v6338_v20, %v1328_v32  ;;  %v6970_v15 = vsel %vm1654_vm4, %v1645_v10, %v6929_v31  ;;  %v8543_v37 = vmov 0.0|0.0  }
 0x231   : > { %4276 = vmatmul.mubr.msk.f32.vlgmr.msra.gmra.mrb[32].mxu1 %vm1500_vm0, %v6934_v24  ;;  %8540 = vst [vmem:[#allocation74_spill] sm:$0xff] %v6953_v35  ;;  %8541 = vst [vmem:[#allocation75_spill] sm:$0xff] %v6960_v56  ;;  %v6979_v60 = vmax.f32 %v1405_v8, 0.0  ;;  %v1621_v32 = vsel %vm1597_vm3, %v6945_v53, 0.0  ;;  %v6993_v10 = vsel %vm1654_vm4, %v6929_v31, %v6960_v56  ;;  %v1620_v30 = vsel %vm1597_vm3, %v6953_v35, 0.0 }
 0x232   : > { %2460 = vmatprep.mubr.f32.mxu1 %v6878_v62  ;;  %4862 = vmatpush1.bf16.msra.mxu1 %v4861_v36  ;;  %8542 = vst [vmem:[#allocation76_spill] sm:$0xff] %v6962_v22  ;;  %v2284_v36 = vld [vmem:[%s8344_s5 + $0x128] sm:$0xff]  ;;  %8545 = vst [vmem:[#allocation78_spill] sm:$0xff] %v6993_v10  ;;  %v6998_v63 = vmax.f32 %v1406_v21, 0.0  ;;  %v1408_v45 = vadd.f32 %v6344_v2, %v1369_v1  ;;  %v1649_v8 = vrot.slane %v1621_v32, 1  ;;  %v2286_v21 = vld [vmem:[%s8344_s5 + $0x138] sm:$0xff] }
 0x233   : > { %4600 = vmatmul.mubr.f32.gmra.mrb[122].mxu0 %v6958_v50  ;;  %4863 = vmatprep.subr.bf16.mxu1 %v8543_v37  ;;  %8544 = vst [vmem:[#allocation77_spill] sm:$0xff] %v6979_v60  ;;  %v4867_v54 = vpack.c.bf16 %v2284_v36, %v2283_v17  ;;  %v7019_v1 = vsel %vm1500_vm0, %v6951_v0, %v6373_v61  ;;  %v1623_v17 = vsel %vm1597_vm3, %v6979_v60, 0.0  ;;  %v7025_v36 = vrot.slane %v1620_v30, 1 }
 0x234   : > { %4602 = vmatprep.mubr.f32.mxu0 %v6970_v15  ;;  %8546 = vst [vmem:[#allocation79_spill] sm:$0xff] %v6998_v63  ;;  %v1651_v31 = vrot.slane %v1623_v17, 1  ;;  %v1624_v30 = vsel %vm1597_vm3, %v6998_v63, 0.0 }
 0x235   : > { %4278 = vmatmul.mubr.msk.f32.gmra.mrb[34].mxu1 %vm6369_vm2, %v6951_v0  ;;  %8547 = vst [vmem:[#allocation80_spill] sm:$0xff] %v7025_v36  ;;  %v7036_v61 = vsel %vm1654_vm4, %v7025_v36, %v1649_v8 }
 0x236   : > { %2465 = vmatprep.mubr.f32.mxu1 %v6351_v46  ;;  %4865 = vmatpush1.bf16.msra.mxu1 %v4864_v16  ;;  %v1622_v46 = vsel %vm1597_vm3, %v6962_v22, 0.0  ;;  %v2285_v16 = vld [vmem:[%s8344_s5 + $0x130] sm:$0xff]  ;;  %8549 = vst [vmem:[#allocation82_spill] sm:$0xff] %v7036_v61 }
 0x237   : > { %4603 = vmatmul.mubr.f32.gmra.mrb[124].mxu0 %v6993_v10  ;;  %4866 = vmatprep.subr.bf16.mxu1 %v8543_v37  ;;  %v1650_v32 = vrot.slane %v1622_v46, 1  ;;  %v4870_v10 = vpack.c.bf16 %v2286_v21, %v2285_v16  ;;  %v2287_v46 = vld [vmem:[%s8344_s5 + $0x140] sm:$0xff]  ;;  %v1652_v21 = vrot.slane %v1624_v30, 1 }
 0x238   : > { %4605 = vmatprep.mubr.msk.f32.mxu0 %vm1654_vm4, %v6960_v56  ;;  %v7028_v56 = vmax.f32 %v1408_v45, 0.0  ;;  %v1625_v45 = vsel %vm1597_vm3, %v6911_v48, 0.0 }
 0x239   : > { %2466 = vmatmul.mubr.f32.gmra.mrb[36].mxu1 %v7019_v1  ;;  %v7056_v16 = vsel %vm1654_vm4, %v1649_v8, %v1650_v32  ;;  %v2289_v8 = vld [vmem:[%s8344_s5 + $0x150] sm:$0xff] }
 0x23a   : > { %2470 = vmatprep.mubr.f32.mxu1 %v6375_v3  ;;  %4868 = vmatpush1.bf16.msra.mxu1 %v4867_v54  ;;  %8548 = vst [vmem:[#allocation81_spill] sm:$0xff] %v7028_v56  ;;  %v2288_v54 = vld [vmem:[%s8344_s5 + $0x148] sm:$0xff]  ;;  %v7061_v3 = vsel %vm1654_vm4, %v1650_v32, %v1651_v31  ;;  %v7080_v32 = vsel %vm1654_vm4, %v1651_v31, %v1652_v21 }
 0x23b   : > { %4606 = vmatmul.mubr.msk.f32.gmra.mrb[126].mxu0 %vm6778_vm5, %v7025_v36  ;;  %4869 = vmatprep.subr.bf16.mxu1 %v8543_v37  ;;  %v4873_v17 = vpack.c.bf16 %v2288_v54, %v2287_v46  ;;  %v1802_v36 = vsel %vm1597_vm3, %v7028_v56, 0.0  ;;  %v2292_v31 = vld [vmem:[%s8344_s5 + $0x168] sm:$0xff] }
 0x23c   : > { %4608 = vmatprep.mubr.f32.mxu0 %v7036_v61  ;;  %v7063_v61 = vrot.slane %v1625_v45, 1  ;;  %v7082_v30 = vrot.slane %v1802_v36, 1  ;;  %v2291_v45 = vld [vmem:[%s8344_s5 + $0x160] sm:$0xff]  ;;  %v1346_v36 = vmul.f32 %v6338_v20, %v6470_v5  ;;  %v2293_v20 = vld [vmem:[%s8344_s5 + $0x170] sm:$0xff]  ;;  %v2294_v5 = vld [vmem:[%s8344_s5 + $0x178] sm:$0xff] }
 0x23d   : > { %2471 = vmatmul.mubr.f32.gmra.mrb[38].mxu1 %v6400_v13 }
 0x23e   : > { %2475 = vmatprep.mubr.f32.mxu1 %v6394_v23  ;;  %4871 = vmatpush1.bf16.msra.mxu1 %v4870_v10  ;;  %v2290_v10 = vld [vmem:[%s8344_s5 + $0x158] sm:$0xff]  ;;  %8550 = vst [vmem:[#allocation83_spill] sm:$0xff] %v7082_v30  ;;  %v7088_v54 = vsel %vm1654_vm4, %v1652_v21, %v7063_v61  ;;  %v7106_v21 = vsel %vm1654_vm4, %v7063_v61, %v7082_v30 }
 0x23f   : > { %4609 = vmatmul.mubr.f32.gmra.mrb[128].mxu0 %v7056_v16  ;;  %4872 = vmatprep.subr.bf16.mxu1 %v8543_v37  ;;  %v4876_v46 = vpack.c.bf16 %v2290_v10, %v2289_v8  ;;  %8551 = vst [vmem:[#allocation84_spill] sm:$0xff] %v7106_v21  ;;  %v1385_v8 = vadd.f32 %v6344_v2, %v1346_v36  ;;  %v2295_v2 = vld [vmem:[%s8344_s5 + $0x180] sm:$0xff]  ;;  %v2297_v36 = vld [vmem:[%s8344_s5 + $0x190] sm:$0xff] }
 0x240   : > { %4611 = vmatprep.mubr.f32.mxu0 %v7061_v3  ;;  %v4882_v10 = vpack.c.bf16 %v2294_v5, %v2293_v20 }
 0x241   : > { %2476 = vmatmul.mubr.f32.gmra.mrb[40].mxu1 %v6420_v59 }
 0x242   : > { %2480 = vmatprep.mubr.f32.mxu1 %v6415_v58  ;;  %4874 = vmatpush1.bf16.msra.mxu1 %v4873_v17  ;;  %v4879_v17 = vpack.c.bf16 %v2292_v31, %v2291_v45  ;;  %v7132_v45 = vmax.f32 %v1385_v8, 0.0 }
 0x243   : > { %4612 = vmatmul.mubr.f32.gmra.mrb[130].mxu0 %v7080_v32  ;;  %4875 = vmatprep.subr.bf16.mxu1 %v8543_v37 }
 0x244   : > { %4614 = vmatprep.mubr.f32.mxu0 %v7088_v54  ;;  %v1451_v20 = vsel %vm1443_vm1, %v7132_v45, 0.0 }
 0x245   : > { %2481 = vmatmul.mubr.f32.gmra.mrb[42].mxu1 %v6440_v26  ;;  %v7150_v8 = vrot.slane %v1451_v20, 7  ;;  %v2303_v20 = vld [vmem:[%s8344_s5 + $0x1c0] sm:$0xff] }
 0x246   : > { %2485 = vmatprep.mubr.f32.mxu1 %v6435_v40  ;;  %4877 = vmatpush1.bf16.msra.mxu1 %v4876_v46  ;;  %v2296_v46 = vld [vmem:[%s8344_s5 + $0x188] sm:$0xff] }
 0x247   : > { %4615 = vmatmul.mubr.f32.gmra.mrb[132].mxu0 %v7106_v21  ;;  %4878 = vmatprep.subr.bf16.mxu1 %v8543_v37  ;;  %v4885_v31 = vpack.c.bf16 %v2296_v46, %v2295_v2  ;;  %v2300_v2 = vld [vmem:[%s8344_s5 + $0x1a8] sm:$0xff]  ;;  %v2301_v46 = vld [vmem:[%s8344_s5 + $0x1b0] sm:$0xff] }
 0x248   : > { %4617 = vmatprep.mubr.msk.f32.mxu0 %vm1654_vm4, %v7082_v30  ;;  %v8557_v30 = vld [vmem:[#allocation48_spill] sm:$0xff] }
 0x249   : > { %2486 = vmatmul.mubr.f32.gmra.mrb[44].mxu1 %v6460_v25 }
 0x24a   : > { %2490 = vmatprep.mubr.f32.mxu1 %v6455_v6  ;;  %4880 = vmatpush1.bf16.msra.mxu1 %v4879_v17  ;;  %v2298_v17 = vld [vmem:[%s8344_s5 + $0x198] sm:$0xff] }
 0x24b   : > { %4618 = vmatmul.mubr.msk.f32.gmra.mrb[134].mxu0 %vm6778_vm5, %v6697_v41  ;;  %4881 = vmatprep.subr.bf16.mxu1 %v8543_v37  ;;  %v4888_v5 = vpack.c.bf16 %v2298_v17, %v2297_v36  ;;  %v7174_v36 = vsel %vm1500_vm0, %v7150_v8, %v6523_v14 }
 0x24d   : > { %2491 = vmatmul.mubr.f32.gmra.mrb[46].mxu1 %v6484_v33 }
 0x24e   : > { %2495 = vmatprep.mubr.f32.mxu1 %v8492_v12  ;;  %4883 = vmatpush1.bf16.msra.mxu1 %v4882_v10  ;;  %v2299_v10 = vld [vmem:[%s8344_s5 + $0x1a0] sm:$0xff] }
 0x24f   : > { %4884 = vmatprep.subr.bf16.mxu1 %v8543_v37 }
 0x251   : > { %4279 = vmatmul.mubr.msk.f32.gmra.mrb[48].mxu1 %vm1500_vm0, %v6477_v28  ;;  %v4891_v28 = vpack.c.bf16 %v2300_v2, %v2299_v10  ;;  %v2305_v10 = vld [vmem:[%s8344_s5 + $0x1d0] sm:$0xff]  ;;  %v2306_v2 = vld [vmem:[%s8344_s5 + $0x1d8] sm:$0xff] }
 0x252   : > { %2500 = vmatprep.mubr.f32.mxu1 %v7132_v45  ;;  %4886 = vmatpush1.bf16.msra.mxu1 %v4885_v31  ;;  %v2302_v31 = vld [vmem:[%s8344_s5 + $0x1b8] sm:$0xff] }
 0x253   : > { %4887 = vmatprep.subr.bf16.mxu1 %v8543_v37  ;;  %v4894_v17 = vpack.c.bf16 %v2302_v31, %v2301_v46  ;;  %v2307_v46 = vld [vmem:[%s8344_s5 + $0x1e0] sm:$0xff]  ;;  %v2308_v31 = vld [vmem:[%s8344_s5 + $0x1e8] sm:$0xff] }
 0x255   : > { %4281 = vmatmul.mubr.msk.f32.gmra.mrb[50].mxu1 %vm6369_vm2, %v7150_v8 }
 0x256   : > { %2505 = vmatprep.mubr.f32.mxu1 %v6511_v19  ;;  %4889 = vmatpush1.bf16.msra.mxu1 %v4888_v5  ;;  %v2304_v5 = vld [vmem:[%s8344_s5 + $0x1c8] sm:$0xff] }
 0x257   : > { %4890 = vmatprep.subr.bf16.mxu1 %v8543_v37  ;;  %v4897_v14 = vpack.c.bf16 %v2304_v5, %v2303_v20  ;;  %v4903_v5 = vpack.c.bf16 %v2308_v31, %v2307_v46 }
 0x259   : > { %2506 = vmatmul.mubr.f32.gmra.mrb[52].mxu1 %v7174_v36 }
 0x25a   : > { %2510 = vmatprep.mubr.f32.mxu1 %v6525_v39  ;;  %4892 = vmatpush1.bf16.msra.mxu1 %v4891_v28  ;;  %v4900_v28 = vpack.c.bf16 %v2306_v2, %v2305_v10  ;;  %v2310_v10 = vld [vmem:[%s8344_s5 + $0x1f8] sm:$0xff] }
 0x25b   : > { %4893 = vmatprep.subr.bf16.mxu1 %v8543_v37 }
 0x25d   : > { %2511 = vmatmul.mubr.f32.gmra.mrb[54].mxu1 %v6543_v43 }
 0x25e   : > { %2515 = vmatprep.mubr.f32.mxu1 %v6537_v7  ;;  %4895 = vmatpush1.bf16.msra.mxu1 %v4894_v17  ;;  %v5364_v17 = vld [vmem:[%s8342_s3] ss:$0 sm:$0xff] }
 0x25f   : > { %4896 = vmatprep.subr.bf16.mxu1 %v8543_v37  ;;  %v1354_v20 = vmul.f32 %v5364_v17, %v6589_v18  ;;  %v5365_v18 = vld [vmem:[%s8343_s4] ss:$0 sm:$0xff]  ;;  %v1362_v21 = vmul.f32 %v5364_v17, %v8557_v30 }
 0x261   : > { %2516 = vmatmul.mubr.f32.gmra.mrb[56].mxu1 %v6557_v4  ;;  %v1393_v2 = vadd.f32 %v5365_v18, %v1354_v20  ;;  %v8552_v20 = vld [vmem:[#allocation33_spill] sm:$0xff] }
 0x262   : > { %2520 = vmatprep.mubr.f32.mxu1 %v6552_v38  ;;  %4898 = vmatpush1.bf16.msra.mxu1 %v4897_v14  ;;  %v2309_v14 = vld [vmem:[%s8344_s5 + $0x1f0] sm:$0xff] }
 0x263   : > { %4899 = vmatprep.subr.bf16.mxu1 %v8543_v37  ;;  %v7222_v46 = vmax.f32 %v1393_v2, 0.0  ;;  %v8554_v2 = vld [vmem:[#allocation41_spill] sm:$0xff] }
 0x265   : > { %2521 = vmatmul.mubr.f32.gmra.mrb[58].mxu1 %v6571_v11  ;;  %v1458_v31 = vsel %vm1443_vm1, %v7222_v46, 0.0 }
 0x266   : > { %2525 = vmatprep.mubr.f32.mxu1 %v6566_v9  ;;  %4901 = vmatpush1.bf16.msra.mxu1 %v4900_v28  ;;  %v4906_v28 = vpack.c.bf16 %v2310_v10, %v2309_v14  ;;  %v8553_v14 = vld [vmem:[#allocation38_spill] sm:$0xff] }
 0x267   : > { %4902 = vmatprep.subr.bf16.mxu1 %v8543_v37 }
 0x269   : > { %2526 = vmatmul.mubr.f32.gmra.mrb[60].mxu1 %v6585_v57 }
 0x26a   : > { %2530 = vmatprep.mubr.f32.mxu1 %v6580_v34  ;;  %4904 = vmatpush1.bf16.msra.mxu1 %v4903_v5  ;;  %v7234_v5 = vrot.slane %v1458_v31, 7  ;;  %v1463_v31 = vsel %vm1443_vm1, %v6866_v49, 0.0  ;;  %v8559_v34 = vld [vmem:[#allocation44_spill] sm:$0xff] }
 0x26b   : > { %4905 = vmatprep.subr.bf16.mxu1 %v8543_v37  ;;  %v8560_v9 = vrot.slane %v8559_v34, 7 }
 0x26c   : > { %v7244_v10 = vsel %vm1500_vm0, %v7234_v5, %v8553_v14  ;;  %v1491_v14 = vrot.slane %v1463_v31, 7 }
 0x26d   : > { %2531 = vmatmul.mubr.f32.gmra.mrb[62].mxu1 %v6603_v52 }
 0x26e   : > { %2535 = vmatprep.mubr.f32.mxu1 %v8492_v12  ;;  %4907 = vmatpush1.bf16.msra.mxu1 %v4906_v28  ;;  %v8555_v28 = vld [vmem:[#allocation43_spill] sm:$0xff]  ;;  %v7265_v38 = vsel %vm1500_vm0, %v8560_v9, %v1491_v14 }
 0x26f   : > { %4908 = vmatprep.subr.bf16.mxu1 %v8543_v37 }
 0x271   : > { %4282 = vmatmul.mubr.msk.f32.gmra.mrb[64].mxu1 %vm1500_vm0, %v8552_v20  ;;  %v8556_v20 = vld [vmem:[#allocation42_spill] sm:$0xff] }
 0x272   : > { %2540 = vmatprep.mubr.f32.mxu1 %v7222_v46 }
 0x275   : > { %4284 = vmatmul.mubr.msk.f32.gmra.mrb[66].mxu1 %vm6369_vm2, %v7234_v5 }
 0x276   : > { %2545 = vmatprep.mubr.f32.mxu1 %v6624_v55  ;;  %v8558_v55 = vld [vmem:[#allocation45_spill] sm:$0xff] }
 0x279   : > { %2546 = vmatmul.mubr.f32.gmra.mrb[68].mxu1 %v7244_v10 }
 0x27a   : > { %2550 = vmatprep.mubr.f32.mxu1 %v6638_v44  ;;  %v1464_v44 = vsel %vm1443_vm1, %v6868_v42, 0.0 }
 0x27b   : > { %v7267_v7 = vrot.slane %v1464_v44, 7 }
 0x27d   : > { %2551 = vmatmul.mubr.f32.gmra.mrb[70].mxu1 %v8554_v2  ;;  %v7276_v17 = vsel %vm1500_vm0, %v1491_v14, %v7267_v7  ;;  %v1467_v14 = vsel %vm1443_vm1, %v6945_v53, 0.0 }
 0x27e   : > { %2555 = vmatprep.mubr.f32.mxu1 %v6650_v51  ;;  %v1401_v51 = vadd.f32 %v5365_v18, %v1362_v21 }
 0x280   : > { %v7271_v30 = vmax.f32 %v1401_v51, 0.0  ;;  %v1466_v51 = vsel %vm1443_vm1, %v6953_v35, 0.0 }
 0x281   : > { %2556 = vmatmul.mubr.f32.gmra.mrb[72].mxu1 %v8555_v28  ;;  %v7294_v18 = vrot.slane %v1466_v51, 7  ;;  %v1495_v51 = vrot.slane %v1467_v14, 7 }
 0x282   : > { %2560 = vmatprep.mubr.f32.mxu1 %v8556_v20  ;;  %v1465_v9 = vsel %vm1443_vm1, %v7271_v30, 0.0 }
 0x283   : > { %v7292_v21 = vrot.slane %v1465_v9, 7  ;;  %8562 = vst [vmem:[#allocation38_spill] sm:$0xff] %v7294_v18 }
 0x285   : > { %2561 = vmatmul.mubr.f32.gmra.mrb[74].mxu1 %v8558_v55  ;;  %v7309_v9 = vsel %vm1500_vm0, %v7292_v21, %v7294_v18 }
 0x286   : > { %2565 = vmatprep.mubr.f32.mxu1 %v6866_v49  ;;  %v3628_v49 = vld [vmem:[%s8347_s8 + $0x10] sm:$0xff] }
 0x289   : > { %2566 = vmatmul.mubr.f32.gmra.mrb[76].mxu1 %v7265_v38 }
 0x28a   : > { %2570 = vmatprep.mubr.f32.mxu1 %v6868_v42 }
 0x28d   : > { %2571 = vmatmul.mubr.f32.gmra.mrb[78].mxu1 %v7276_v17 }
 0x28e   : > { %2575 = vmatprep.mubr.f32.mxu1 %v8492_v12 }
 0x290   : > { %v7280_v34 = vpop.f32.mrb[64].mxu0 }
 0x291   : > { %8561 = vst [vmem:[#allocation33_spill] sm:$0xff] %v7280_v34  ;;  %4285 = vmatmul.mubr.msk.f32.gmra.mrb[80].mxu1 %vm1500_vm0, %v7267_v7  ;;  %v3134_v44 = vpop.f32.mrb[65].mxu0 }
 0x292   : > { %2580 = vmatprep.mubr.f32.mxu1 %v7271_v30 }
 0x295   : > { %4287 = vmatmul.mubr.msk.f32.gmra.mrb[82].mxu1 %vm6369_vm2, %v7292_v21  ;;  %v7299_v31 = vpop.f32.mrb[66].mxu0 }
 0x296   : > { %8563 = vst [vmem:[#allocation41_spill] sm:$0xff] %v7299_v31  ;;  %2585 = vmatprep.mubr.f32.mxu1 %v6953_v35  ;;  %v3139_v44 = vpop.f32.mrb[67].mxu0  ;;  %v1468_v31 = vsel %vm1443_vm1, %v6962_v22, 0.0 }
 0x297   : > { %v7321_v44 = vsel %vm1500_vm0, %v7294_v18, %v1495_v51  ;;  %v1496_v12 = vrot.slane %v1468_v31, 7  ;;  %v1470_v31 = vsel %vm1443_vm1, %v6998_v63, 0.0 }
 0x299   : > { %2586 = vmatmul.mubr.f32.gmra.mrb[84].mxu1 %v7309_v9  ;;  %v7312_v34 = vpop.f32.mrb[68].mxu0 }
 0x29a   : > { %8564 = vst [vmem:[#allocation43_spill] sm:$0xff] %v7312_v34  ;;  %2590 = vmatprep.mubr.f32.mxu1 %v6945_v53  ;;  %v3144_v29 = vpop.f32.mrb[69].mxu0  ;;  %v1469_v34 = vsel %vm1443_vm1, %v6979_v60, 0.0 }
 0x29b   : > { %v7332_v29 = vsel %vm1500_vm0, %v1495_v51, %v1496_v12  ;;  %v1497_v53 = vrot.slane %v1469_v34, 7  ;;  %v3627_v51 = vld [vmem:[%s8347_s8 + $0x8] sm:$0xff] }
 0x29d   : > { %2591 = vmatmul.mubr.f32.gmra.mrb[86].mxu1 %v7321_v44  ;;  %v7324_v14 = vpop.f32.mrb[70].mxu0  ;;  %v7349_v34 = vsel %vm1500_vm0, %v1496_v12, %v1497_v53  ;;  %v3629_v12 = vld [vmem:[%s8347_s8 + $0x18] sm:$0xff] }
 0x29e   : > { %8565 = vst [vmem:[#allocation42_spill] sm:$0xff] %v7324_v14  ;;  %2595 = vmatprep.mubr.f32.mxu1 %v6962_v22  ;;  %v3149_v35 = vpop.f32.mrb[71].mxu0 }
 0x29f   : > { %v3626_v35 = vld [vmem:[%s8347_s8] sm:$0xff] }
 0x2a0   : > { %v5036_v22 = vpack.c.bf16 %v3627_v51, %v3626_v35 }
 0x2a1   : > { %2596 = vmatmul.mubr.f32.gmra.mrb[88].mxu1 %v7332_v29  ;;  %v7335_v18 = vpop.f32.mrb[72].mxu0 }
 0x2a2   : > { %8566 = vst [vmem:[#allocation48_spill] sm:$0xff] %v7335_v18  ;;  %2600 = vmatprep.mubr.f32.mxu1 %v6979_v60  ;;  %v3154_v14 = vpop.f32.mrb[73].mxu0  ;;  %v1498_v18 = vrot.slane %v1470_v31, 7  ;;  %v1722_v60 = vsel %vm1443_vm1, %v7028_v56, 0.0  ;;  %5037 = vmatprep.subr.bf16.mxu0 %v5036_v22  ;;  %v5040_v31 = vpack.c.bf16 %v3629_v12, %v3628_v49  ;;  %v3630_v56 = vld [vmem:[%s8347_s8 + $0x20] sm:$0xff] }
 0x2a3   : > { %5039 = vmatpush3.bf16.msra.mxu0 %v5036_v22  ;;  %v2311_v49 = vld [vmem:[%s8344_s5 + $0x200] sm:$0xff]  ;;  %v2312_v22 = vld [vmem:[%s8344_s5 + $0x208] sm:$0xff] }
 0x2a4   : > { %v7366_v35 = vsel %vm1500_vm0, %v1497_v53, %v1498_v18  ;;  %5041 = vmatprep.subr.bf16.mxu0 %v5040_v31  ;;  %v3631_v53 = vld [vmem:[%s8347_s8 + $0x28] sm:$0xff] }
 0x2a5   : > { %2601 = vmatmul.mubr.f32.gmra.mrb[90].mxu1 %v7349_v34  ;;  %v7352_v42 = vpop.f32.mrb[74].mxu0  ;;  %v5044_v12 = vpack.c.bf16 %v3631_v53, %v3630_v56  ;;  %v3633_v56 = vld [vmem:[%s8347_s8 + $0x38] sm:$0xff] }
 0x2a6   : > { %8567 = vst [vmem:[#allocation45_spill] sm:$0xff] %v7352_v42  ;;  %2605 = vmatprep.mubr.f32.mxu1 %v6998_v63  ;;  %v3159_v14 = vpop.f32.mrb[75].mxu0  ;;  %v4909_v63 = vpack.c.bf16 %v2312_v22, %v2311_v49 }
 0x2a7   : > { %v7371_v14 = vrot.slane %v1722_v60, 7  ;;  %5043 = vmatpush3.bf16.msra.mxu0 %v5040_v31  ;;  %v7392_v60 = vsel %vm1500_vm0, %v1498_v18, %v6934_v24  ;;  %v3632_v18 = vld [vmem:[%s8347_s8 + $0x30] sm:$0xff] }
 0x2a8   : > { %5045 = vmatprep.subr.bf16.mxu0 %v5044_v12 }
 0x2a9   : > { %2606 = vmatmul.mubr.f32.gmra.mrb[92].mxu1 %v7366_v35  ;;  %v7369_v51 = vpop.f32.mrb[76].mxu0  ;;  %v1734_v31 = vsel %vm1500_vm0, %v7371_v14, %v6951_v0  ;;  %v5048_v0 = vpack.c.bf16 %v3633_v56, %v3632_v18 }
 0x2aa   : > { %8568 = vst [vmem:[#allocation44_spill] sm:$0xff] %v7369_v51  ;;  %2610 = vmatprep.mubr.f32.mxu1 %v6911_v48  ;;  %v3164_v42 = vpop.f32.mrb[77].mxu0 }
 0x2ab   : > { %v1598_v42 = vsel %vm1597_vm3, %v6878_v62, 0.0  ;;  %5047 = vmatpush3.bf16.msra.mxu0 %v5044_v12  ;;  %v2315_v12 = vld [vmem:[%s8344_s5 + $0x220] sm:$0xff] }
 0x2ac   : > { %v7407_v53 = vrot.slane %v1598_v42, 1  ;;  %5049 = vmatprep.subr.bf16.mxu0 %v5048_v0 }
 0x2ad   : > { %2611 = vmatmul.mubr.f32.gmra.mrb[94].mxu1 %v7392_v60  ;;  %v7395_v51 = vpop.f32.mrb[78].mxu0 }
 0x2ae   : > { %8569 = vst [vmem:[#allocation85_spill] sm:$0xff] %v7395_v51  ;;  %2680 = vmatprep.mubr.f32.mxu1 %v1734_v31  ;;  %v3169_v48 = vpop.f32.mrb[79].mxu0  ;;  %v2313_v51 = vld [vmem:[%s8344_s5 + $0x210] sm:$0xff]  ;;  %v3595_v31 = vld [vmem:[%s7425_s25 + $0x8] sm:$0xff] }
 0x2af   : > { %v2314_v48 = vld [vmem:[%s8344_s5 + $0x218] sm:$0xff]  ;;  %5051 = vmatpush3.bf16.msra.mxu0 %v5048_v0 }
 0x2b0   : > { %v4912_v42 = vpack.c.bf16 %v2314_v48, %v2313_v51  ;;  %v7439_v51 = vsel %vm1654_vm4, %v7407_v53, %v6697_v41  ;;  %v2317_v41 = vld [vmem:[%s8344_s5 + $0x230] sm:$0xff]  ;;  %v2318_v0 = vld [vmem:[%s8344_s5 + $0x238] sm:$0xff] }
 0x2b1   : > { %4289 = vmatmul.mubr.msk.f32.vlgmr.msra.gmra.mrb[32].mxu1 %vm6778_vm5, %v7407_v53  ;;  %v7418_v49 = vpop.f32.mrb[80].mxu0 }
 0x2b2   : > { %8570 = vst [vmem:[#allocation86_spill] sm:$0xff] %v7418_v49  ;;  %2685 = vmatprep.mubr.f32.mxu1 %v7019_v1  ;;  %4910 = vmatpush1.bf16.msra.mxu1 %v4909_v63  ;;  %v3174_v22 = vpop.f32.mrb[81].mxu0  ;;  %v2316_v63 = vld [vmem:[%s8344_s5 + $0x228] sm:$0xff]  ;;  %v3594_v1 = vld [vmem:[%s7425_s25] sm:$0xff] }
 0x2b3   : > { %4911 = vmatprep.subr.bf16.mxu1 %v8543_v37  ;;  %4636 = vmatprep.mubr.msk.f32.mxu0 %vm3634_vm6, %v3594_v1  ;;  %v4915_v48 = vpack.c.bf16 %v2316_v63, %v2315_v12  ;;  %v8572_v22 = vld [vmem:[#allocation46_spill] sm:$0xff]  ;;  %v3596_v12 = vld [vmem:[%s7425_s25 + $0x10] sm:$0xff] }
 0x2b4   : > { %4637 = vmatmul.mubr.msk.f32.vlgmr.msra.gmra.mrb[136].mxu0 %vm3634_vm6, %v3595_v31  ;;  %v3597_v63 = vld [vmem:[%s7425_s25 + $0x18] sm:$0xff]  ;;  %v2320_v31 = vld [vmem:[%s8344_s5 + $0x248] sm:$0xff] }
 0x2b5   : > { %2686 = vmatmul.mubr.f32.gmra.mrb[34].mxu1 %v7439_v51  ;;  %v7444_v18 = vpop.f32.mrb[82].mxu0  ;;  %4639 = vmatprep.mubr.msk.f32.mxu0 %vm3634_vm6, %v3596_v12  ;;  %v2322_v12 = vld [vmem:[%s8344_s5 + $0x258] sm:$0xff] }
 0x2b6   : > { %8571 = vst [vmem:[#allocation87_spill] sm:$0xff] %v7444_v18  ;;  %2690 = vmatprep.mubr.f32.mxu1 %v6400_v13  ;;  %v3179_v56 = vpop.f32.mrb[83].mxu0  ;;  %4913 = vmatpush1.bf16.msra.mxu1 %v4912_v42  ;;  %v4918_v42 = vpack.c.bf16 %v2318_v0, %v2317_v41  ;;  %v2328_v18 = vld [vmem:[%s8344_s5 + $0x288] sm:$0xff] }
 0x2b7   : > { %4914 = vmatprep.subr.bf16.mxu1 %v8543_v37  ;;  %v2319_v56 = vld [vmem:[%s8344_s5 + $0x240] sm:$0xff] }
 0x2b8   : > { %4640 = vmatmul.mubr.msk.f32.gmra.mrb[138].mxu0 %vm3634_vm6, %v3597_v63  ;;  %v4921_v0 = vpack.c.bf16 %v2320_v31, %v2319_v56  ;;  %v8576_v63 = vld [vmem:[#allocation49_spill] sm:$0xff]  ;;  %v3598_v56 = vld [vmem:[%s7425_s25 + $0x20] sm:$0xff]  ;;  %v3599_v31 = vld [vmem:[%s7425_s25 + $0x28] sm:$0xff] }
 0x2b9   : > { %2691 = vmatmul.mubr.f32.gmra.mrb[36].mxu1 %v8572_v22  ;;  %v7456_v1 = vpop.f32.mrb[84].mxu0  ;;  %4642 = vmatprep.mubr.msk.f32.mxu0 %vm3634_vm6, %v3598_v56  ;;  %v2326_v56 = vld [vmem:[%s8344_s5 + $0x278] sm:$0xff] }
 0x2ba   : > { %8573 = vst [vmem:[#allocation46_spill] sm:$0xff] %v7456_v1  ;;  %2695 = vmatprep.mubr.f32.mxu1 %v6420_v59  ;;  %v3184_v13 = vpop.f32.mrb[85].mxu0  ;;  %4916 = vmatpush1.bf16.msra.mxu1 %v4915_v48  ;;  %v8574_v59 = vld [vmem:[#allocation47_spill] sm:$0xff] }
 0x2bb   : > { %4917 = vmatprep.subr.bf16.mxu1 %v8543_v37  ;;  %v2321_v13 = vld [vmem:[%s8344_s5 + $0x250] sm:$0xff] }
 0x2bc   : > { %4643 = vmatmul.mubr.msk.f32.gmra.mrb[140].mxu0 %vm3634_vm6, %v3599_v31  ;;  %v8580_v31 = vld [vmem:[#allocation53_spill] sm:$0xff] }
 0x2bd   : > { %2696 = vmatmul.mubr.f32.gmra.mrb[38].mxu1 %v8574_v59  ;;  %v7471_v48 = vpop.f32.mrb[86].mxu0 }
 0x2be   : > { %8575 = vst [vmem:[#allocation47_spill] sm:$0xff] %v7471_v48  ;;  %2700 = vmatprep.mubr.f32.mxu1 %v6440_v26  ;;  %v3189_v41 = vpop.f32.mrb[87].mxu0  ;;  %4919 = vmatpush1.bf16.msra.mxu1 %v4918_v42  ;;  %v4924_v42 = vpack.c.bf16 %v2322_v12, %v2321_v13  ;;  %v2324_v48 = vld [vmem:[%s8344_s5 + $0x268] sm:$0xff] }
 0x2bf   : > { %4920 = vmatprep.subr.bf16.mxu1 %v8543_v37  ;;  %v2323_v41 = vld [vmem:[%s8344_s5 + $0x260] sm:$0xff] }
 0x2c0   : > { %v4927_v12 = vpack.c.bf16 %v2324_v48, %v2323_v41  ;;  %v3600_v48 = vld [vmem:[%s7425_s25 + $0x30] sm:$0xff]  ;;  %v3601_v41 = vld [vmem:[%s7425_s25 + $0x38] sm:$0xff] }
 0x2c1   : > { %2701 = vmatmul.mubr.f32.gmra.mrb[40].mxu1 %v8576_v63  ;;  %v7482_v1 = vpop.f32.mrb[88].mxu0  ;;  %4645 = vmatprep.mubr.msk.f32.mxu0 %vm3634_vm6, %v3600_v48 }
 0x2c2   : > { %8577 = vst [vmem:[#allocation49_spill] sm:$0xff] %v7482_v1  ;;  %2705 = vmatprep.mubr.f32.mxu1 %v6460_v25  ;;  %v3194_v26 = vpop.f32.mrb[89].mxu0  ;;  %4922 = vmatpush1.bf16.msra.mxu1 %v4921_v0  ;;  %v8578_v25 = vld [vmem:[#allocation51_spill] sm:$0xff] }
 0x2c3   : > { %4923 = vmatprep.subr.bf16.mxu1 %v8543_v37  ;;  %v2325_v26 = vld [vmem:[%s8344_s5 + $0x270] sm:$0xff]  ;;  %4646 = vmatmul.mubr.msk.f32.gmra.mrb[142].mxu0 %vm3634_vm6, %v3601_v41 }
 0x2c4   : > { %v2329_v41 = vld [vmem:[%s8344_s5 + $0x290] sm:$0xff] }
 0x2c5   : > { %2706 = vmatmul.mubr.f32.gmra.mrb[42].mxu1 %v8578_v25  ;;  %v7497_v0 = vpop.f32.mrb[90].mxu0 }
 0x2c6   : > { %8579 = vst [vmem:[#allocation51_spill] sm:$0xff] %v7497_v0  ;;  %2710 = vmatprep.mubr.f32.mxu1 %v6484_v33  ;;  %v3199_v13 = vpop.f32.mrb[91].mxu0  ;;  %4925 = vmatpush1.bf16.msra.mxu1 %v4924_v42  ;;  %v8582_v0 = vld [vmem:[#allocation28_spill] sm:$0xff]  ;;  %v4930_v42 = vpack.c.bf16 %v2326_v56, %v2325_v26  ;;  %v8585_v56 = vld [vmem:[#allocation27_spill] sm:$0xff] }
 0x2c7   : > { %4926 = vmatprep.subr.bf16.mxu1 %v8543_v37  ;;  %v2327_v13 = vld [vmem:[%s8344_s5 + $0x280] sm:$0xff] }
 0x2c9   : > { %2711 = vmatmul.mubr.f32.gmra.mrb[44].mxu1 %v8580_v31  ;;  %v7508_v1 = vpop.f32.mrb[92].mxu0 }
 0x2ca   : > { %8581 = vst [vmem:[#allocation53_spill] sm:$0xff] %v7508_v1  ;;  %2715 = vmatprep.mubr.f32.mxu1 %v8582_v0  ;;  %v3204_v33 = vpop.f32.mrb[93].mxu0  ;;  %4928 = vmatpush1.bf16.msra.mxu1 %v4927_v12  ;;  %v1605_v0 = vsel %vm1597_vm3, %v7132_v45, 0.0  ;;  %v8583_v12 = vld [vmem:[#allocation50_spill] sm:$0xff]  ;;  %v4933_v1 = vpack.c.bf16 %v2328_v18, %v2327_v13  ;;  %v3602_v13 = vld [vmem:[%s7425_s25 + $0x40] sm:$0xff] }
 0x2cb   : > { %4929 = vmatprep.subr.bf16.mxu1 %v8543_v37  ;;  %v1732_v33 = vsel %vm1500_vm0, %v8585_v56, %v7150_v8  ;;  %v7534_v49 = vrot.slane %v1605_v0, 1  ;;  %v3603_v0 = vld [vmem:[%s7425_s25 + $0x48] sm:$0xff]  ;;  %v2331_v56 = vld [vmem:[%s8344_s5 + $0x2a0] sm:$0xff]  ;;  %4648 = vmatprep.mubr.msk.f32.mxu0 %vm3634_vm6, %v3602_v13  ;;  %v2334_v13 = vld [vmem:[%s8344_s5 + $0x2b8] sm:$0xff] }
 0x2cc   : > { %4649 = vmatmul.mubr.msk.f32.gmra.mrb[144].mxu0 %vm3634_vm6, %v3603_v0  ;;  %v8589_v0 = vld [vmem:[#allocation56_spill] sm:$0xff] }
 0x2cd   : > { %4290 = vmatmul.mubr.msk.f32.gmra.mrb[46].mxu1 %vm1654_vm4, %v8583_v12  ;;  %v7528_v26 = vpop.f32.mrb[94].mxu0  ;;  %v2330_v12 = vld [vmem:[%s8344_s5 + $0x298] sm:$0xff] }
 0x2ce   : > { %8584 = vst [vmem:[#allocation28_spill] sm:$0xff] %v7528_v26  ;;  %2720 = vmatprep.mubr.f32.mxu1 %v1732_v33  ;;  %v3209_v48 = vpop.f32.mrb[95].mxu0  ;;  %4931 = vmatpush1.bf16.msra.mxu1 %v4930_v42  ;;  %v4936_v42 = vpack.c.bf16 %v2330_v12, %v2329_v41  ;;  %v2332_v33 = vld [vmem:[%s8344_s5 + $0x2a8] sm:$0xff] }
 0x2cf   : > { %4932 = vmatprep.subr.bf16.mxu1 %v8543_v37  ;;  %v8587_v48 = vld [vmem:[#allocation55_spill] sm:$0xff]  ;;  %v4939_v12 = vpack.c.bf16 %v2332_v33, %v2331_v56  ;;  %v3604_v56 = vld [vmem:[%s7425_s25 + $0x50] sm:$0xff]  ;;  %v3605_v33 = vld [vmem:[%s7425_s25 + $0x58] sm:$0xff] }
 0x2d0   : > { %4651 = vmatprep.mubr.msk.f32.mxu0 %vm3634_vm6, %v3604_v56  ;;  %v2338_v56 = vld [vmem:[%s8344_s5 + $0x2d8] sm:$0xff] }
 0x2d1   : > { %4292 = vmatmul.mubr.msk.f32.gmra.mrb[48].mxu1 %vm6778_vm5, %v7534_v49  ;;  %v7546_v8 = vpop.f32.mrb[96].mxu0  ;;  %4652 = vmatmul.mubr.msk.f32.gmra.mrb[146].mxu0 %vm3634_vm6, %v3605_v33  ;;  %v8593_v33 = vld [vmem:[#allocation58_spill] sm:$0xff] }
 0x2d2   : > { %8586 = vst [vmem:[#allocation50_spill] sm:$0xff] %v7546_v8  ;;  %2725 = vmatprep.mubr.f32.mxu1 %v7174_v36  ;;  %v3214_v18 = vpop.f32.mrb[97].mxu0  ;;  %4934 = vmatpush1.bf16.msra.mxu1 %v4933_v1  ;;  %v7563_v36 = vsel %vm1654_vm4, %v7534_v49, %v8587_v48  ;;  %v8597_v8 = vld [vmem:[#allocation62_spill] sm:$0xff] }
 0x2d3   : > { %4935 = vmatprep.subr.bf16.mxu1 %v8543_v37  ;;  %v2333_v18 = vld [vmem:[%s8344_s5 + $0x2b0] sm:$0xff] }
 0x2d5   : > { %2726 = vmatmul.mubr.f32.gmra.mrb[50].mxu1 %v7563_v36  ;;  %v7567_v1 = vpop.f32.mrb[98].mxu0 }
 0x2d6   : > { %8588 = vst [vmem:[#allocation27_spill] sm:$0xff] %v7567_v1  ;;  %2730 = vmatprep.mubr.f32.mxu1 %v6543_v43  ;;  %v3219_v41 = vpop.f32.mrb[99].mxu0  ;;  %4937 = vmatpush1.bf16.msra.mxu1 %v4936_v42  ;;  %v4942_v42 = vpack.c.bf16 %v2334_v13, %v2333_v18  ;;  %v2336_v1 = vld [vmem:[%s8344_s5 + $0x2c8] sm:$0xff] }
 0x2d7   : > { %4938 = vmatprep.subr.bf16.mxu1 %v8543_v37  ;;  %v2335_v41 = vld [vmem:[%s8344_s5 + $0x2c0] sm:$0xff] }
 0x2d8   : > { %v4945_v13 = vpack.c.bf16 %v2336_v1, %v2335_v41  ;;  %v3607_v41 = vld [vmem:[%s7425_s25 + $0x68] sm:$0xff] }
 0x2d9   : > { %2731 = vmatmul.mubr.f32.gmra.mrb[52].mxu1 %v8589_v0  ;;  %v7578_v48 = vpop.f32.mrb[100].mxu0 }
 0x2da   : > { %8590 = vst [vmem:[#allocation55_spill] sm:$0xff] %v7578_v48  ;;  %2735 = vmatprep.mubr.f32.mxu1 %v6557_v4  ;;  %v3224_v43 = vpop.f32.mrb[101].mxu0  ;;  %4940 = vmatpush1.bf16.msra.mxu1 %v4939_v12  ;;  %v8591_v4 = vld [vmem:[#allocation57_spill] sm:$0xff] }
 0x2db   : > { %4941 = vmatprep.subr.bf16.mxu1 %v8543_v37  ;;  %v2337_v43 = vld [vmem:[%s8344_s5 + $0x2d0] sm:$0xff] }
 0x2dc   : > { %v4948_v1 = vpack.c.bf16 %v2338_v56, %v2337_v43 }
 0x2dd   : > { %2736 = vmatmul.mubr.f32.gmra.mrb[54].mxu1 %v8591_v4  ;;  %v7593_v12 = vpop.f32.mrb[102].mxu0 }
 0x2de   : > { %8592 = vst [vmem:[#allocation56_spill] sm:$0xff] %v7593_v12  ;;  %2740 = vmatprep.mubr.f32.mxu1 %v6571_v11  ;;  %v3229_v18 = vpop.f32.mrb[103].mxu0  ;;  %4943 = vmatpush1.bf16.msra.mxu1 %v4942_v42  ;;  %v3606_v42 = vld [vmem:[%s7425_s25 + $0x60] sm:$0xff]  ;;  %v2340_v12 = vld [vmem:[%s8344_s5 + $0x2e8] sm:$0xff] }
 0x2df   : > { %4944 = vmatprep.subr.bf16.mxu1 %v8543_v37  ;;  %v2339_v18 = vld [vmem:[%s8344_s5 + $0x2e0] sm:$0xff]  ;;  %4654 = vmatprep.mubr.msk.f32.mxu0 %vm3634_vm6, %v3606_v42  ;;  %v2341_v42 = vld [vmem:[%s8344_s5 + $0x2f0] sm:$0xff] }
 0x2e0   : > { %4655 = vmatmul.mubr.msk.f32.gmra.mrb[148].mxu0 %vm3634_vm6, %v3607_v41  ;;  %v4951_v56 = vpack.c.bf16 %v2340_v12, %v2339_v18  ;;  %v2342_v41 = vld [vmem:[%s8344_s5 + $0x2f8] sm:$0xff] }
 0x2e1   : > { %2741 = vmatmul.mubr.f32.gmra.mrb[56].mxu1 %v8593_v33  ;;  %v7604_v48 = vpop.f32.mrb[104].mxu0  ;;  %v4954_v12 = vpack.c.bf16 %v2342_v41, %v2341_v42  ;;  %v3609_v18 = vld [vmem:[%s7425_s25 + $0x78] sm:$0xff] }
 0x2e2   : > { %2745 = vmatprep.mubr.f32.mxu1 %v6585_v57  ;;  %v7607_v11 = vpop.f32.mrb[105].mxu0  ;;  %4946 = vmatpush1.bf16.msra.mxu1 %v4945_v13  ;;  %v8594_v57 = vld [vmem:[#allocation60_spill] sm:$0xff] }
 0x2e3   : > { %4947 = vmatprep.subr.bf16.mxu1 %v8543_v37 }
 0x2e5   : > { %2746 = vmatmul.mubr.f32.gmra.mrb[58].mxu1 %v8594_v57  ;;  %v7621_v13 = vpop.f32.mrb[106].mxu0 }
 0x2e6   : > { %8595 = vst [vmem:[#allocation57_spill] sm:$0xff] %v7621_v13  ;;  %2750 = vmatprep.mubr.f32.mxu1 %v6603_v52  ;;  %v7624_v43 = vpop.f32.mrb[107].mxu0  ;;  %4949 = vmatpush1.bf16.msra.mxu1 %v4948_v1  ;;  %v8599_v13 = vld [vmem:[#allocation36_spill] sm:$0xff]  ;;  %v3608_v1 = vld [vmem:[%s7425_s25 + $0x70] sm:$0xff] }
 0x2e7   : > { %8596 = vst [vmem:[#allocation58_spill] sm:$0xff] %v7624_v43  ;;  %4950 = vmatprep.subr.bf16.mxu1 %v8543_v37  ;;  %4657 = vmatprep.mubr.msk.f32.mxu0 %vm3634_vm6, %v3608_v1  ;;  %v1612_v43 = vsel %vm1597_vm3, %v7222_v46, 0.0 }
 0x2e8   : > { %4658 = vmatmul.mubr.msk.f32.gmra.mrb[150].mxu0 %vm3634_vm6, %v3609_v18  ;;  %v7658_v1 = vrot.slane %v1612_v43, 1  ;;  %v8607_v43 = vld [vmem:[#allocation66_spill] sm:$0xff] }
 0x2e9   : > { %2751 = vmatmul.mubr.f32.gmra.mrb[60].mxu1 %v8597_v8  ;;  %v7634_v26 = vpop.f32.mrb[108].mxu0 }
 0x2ea   : > { %8598 = vst [vmem:[#allocation60_spill] sm:$0xff] %v7634_v26  ;;  %2755 = vmatprep.mubr.f32.mxu1 %v8599_v13  ;;  %v7637_v52 = vpop.f32.mrb[109].mxu0  ;;  %4952 = vmatpush1.bf16.msra.mxu1 %v4951_v56  ;;  %v8601_v26 = vld [vmem:[#allocation59_spill] sm:$0xff] }
 0x2eb   : > { %8600 = vst [vmem:[#allocation62_spill] sm:$0xff] %v7637_v52  ;;  %4953 = vmatprep.subr.bf16.mxu1 %v8543_v37  ;;  %v8603_v56 = vld [vmem:[#allocation35_spill] sm:$0xff]  ;;  %v8626_v52 = vld [vmem:[#allocation80_spill] sm:$0xff] }
 0x2ec   : > { %v1730_v42 = vsel %vm1500_vm0, %v8603_v56, %v7234_v5  ;;  %v3610_v5 = vld [vmem:[%s7425_s25 + $0x80] sm:$0xff]  ;;  %v3611_v56 = vld [vmem:[%s7425_s25 + $0x88] sm:$0xff] }
 0x2ed   : > { %4293 = vmatmul.mubr.msk.f32.gmra.mrb[62].mxu1 %vm1654_vm4, %v8601_v26  ;;  %v7650_v13 = vpop.f32.mrb[110].mxu0  ;;  %4660 = vmatprep.mubr.msk.f32.mxu0 %vm3634_vm6, %v3610_v5 }
 0x2ee   : > { %8602 = vst [vmem:[#allocation36_spill] sm:$0xff] %v7650_v13  ;;  %2760 = vmatprep.mubr.f32.mxu1 %v1730_v42  ;;  %v7656_v41 = vpop.f32.mrb[111].mxu0  ;;  %4955 = vmatpush1.bf16.msra.mxu1 %v4954_v12  ;;  %v7676_v12 = vsel %vm1654_vm4, %v7658_v1, %v8607_v43  ;;  %v3612_v43 = vld [vmem:[%s7425_s25 + $0x90] sm:$0xff]  ;;  %v3613_v13 = vld [vmem:[%s7425_s25 + $0x98] sm:$0xff] }
 0x2ef   : > { %8604 = vst [vmem:[#allocation59_spill] sm:$0xff] %v7656_v41  ;;  %5052 = vmatprep.subr.bf16.mxu1 %v8543_v37  ;;  %4661 = vmatmul.mubr.msk.f32.gmra.mrb[152].mxu0 %vm3634_vm6, %v3611_v56  ;;  %v8613_v56 = vld [vmem:[#allocation70_spill] sm:$0xff] }
 0x2f0   : > { %4663 = vmatprep.mubr.msk.f32.mxu0 %vm3634_vm6, %v3612_v43 }
 0x2f1   : > { %4295 = vmatmul.mubr.msk.f32.gmra.mrb[64].mxu1 %vm6778_vm5, %v7658_v1  ;;  %v7664_v26 = vpop.f32.mrb[112].mxu0 }
 0x2f2   : > { %8605 = vst [vmem:[#allocation35_spill] sm:$0xff] %v7664_v26  ;;  %2765 = vmatprep.mubr.f32.mxu1 %v7244_v10  ;;  %v7667_v18 = vpop.f32.mrb[113].mxu0  ;;  %v8610_v26 = vld [vmem:[#allocation67_spill] sm:$0xff] }
 0x2f3   : > { %8606 = vst [vmem:[#allocation88_spill] sm:$0xff] %v7667_v18  ;;  %4664 = vmatmul.mubr.msk.f32.gmra.mrb[154].mxu0 %vm3634_vm6, %v3613_v13 }
 0x2f5   : > { %2766 = vmatmul.mubr.f32.gmra.mrb[66].mxu1 %v7676_v12  ;;  %v7680_v42 = vpop.f32.mrb[114].mxu0 }
 0x2f6   : > { %8608 = vst [vmem:[#allocation66_spill] sm:$0xff] %v7680_v42  ;;  %2770 = vmatprep.mubr.f32.mxu1 %v8554_v2  ;;  %v7683_v10 = vpop.f32.mrb[115].mxu0 }
 0x2f7   : > { %8609 = vst [vmem:[#allocation89_spill] sm:$0xff] %v7683_v10  ;;  %v8616_v10 = vld [vmem:[#allocation71_spill] sm:$0xff] }
 0x2f9   : > { %2771 = vmatmul.mubr.f32.gmra.mrb[68].mxu1 %v8610_v26  ;;  %v7686_v18 = vpop.f32.mrb[116].mxu0 }
 0x2fa   : > { %8611 = vst [vmem:[#allocation67_spill] sm:$0xff] %v7686_v18  ;;  %2775 = vmatprep.mubr.f32.mxu1 %v8555_v28  ;;  %v7689_v5 = vpop.f32.mrb[117].mxu0 }
 0x2fb   : > { %8612 = vst [vmem:[#allocation90_spill] sm:$0xff] %v7689_v5  ;;  %v8619_v5 = vld [vmem:[#allocation68_spill] sm:$0xff] }
 0x2fc   : > { %v1721_v13 = vsel %vm1443_vm1, %v8619_v5, 0.0 }
 0x2fd   : > { %2776 = vmatmul.mubr.f32.gmra.mrb[70].mxu1 %v8613_v56  ;;  %v7696_v42 = vpop.f32.mrb[118].mxu0  ;;  %v7711_v43 = vrot.slane %v1721_v13, 7 }
 0x2fe   : > { %8614 = vst [vmem:[#allocation70_spill] sm:$0xff] %v7696_v42  ;;  %2780 = vmatprep.mubr.f32.mxu1 %v8558_v55  ;;  %v7699_v2 = vpop.f32.mrb[119].mxu0 }
 0x2ff   : > { %8615 = vst [vmem:[#allocation91_spill] sm:$0xff] %v7699_v2  ;;  %v8624_v2 = vld [vmem:[#allocation72_spill] sm:$0xff] }
 0x301   : > { %2781 = vmatmul.mubr.f32.gmra.mrb[72].mxu1 %v8616_v10  ;;  %v7702_v18 = vpop.f32.mrb[120].mxu0 }
 0x302   : > { %8617 = vst [vmem:[#allocation71_spill] sm:$0xff] %v7702_v18  ;;  %2785 = vmatprep.mubr.f32.mxu1 %v7265_v38  ;;  %v7705_v28 = vpop.f32.mrb[121].mxu0  ;;  %v7723_v18 = vsel %vm1500_vm0, %v7267_v7, %v7711_v43  ;;  %v1728_v7 = vsel %vm1500_vm0, %v7711_v43, %v7292_v21 }
 0x303   : > { %8618 = vst [vmem:[#allocation92_spill] sm:$0xff] %v7705_v28 }
 0x305   : > { %2786 = vmatmul.mubr.f32.gmra.mrb[74].mxu1 %v6958_v50 }
 0x306   : > { %v7713_v42 = vpop.f32.mrb[122].mxu0  ;;  %2790 = vmatprep.mubr.f32.mxu1 %v7276_v17 }
 0x307   : > { %8620 = vst [vmem:[#allocation68_spill] sm:$0xff] %v7713_v42  ;;  %v7716_v55 = vpop.f32.mrb[123].mxu0  ;;  %v1619_v42 = vsel %vm1597_vm3, %v7271_v30, 0.0 }
 0x308   : > { %8621 = vst [vmem:[#allocation93_spill] sm:$0xff] %v7716_v55  ;;  %v7744_v41 = vrot.slane %v1619_v42, 1 }
 0x309   : > { %2791 = vmatmul.mubr.f32.gmra.mrb[76].mxu1 %v6970_v15 }
 0x30a   : > { %v7725_v28 = vpop.f32.mrb[124].mxu0  ;;  %2795 = vmatprep.mubr.f32.mxu1 %v7723_v18  ;;  %v7758_v21 = vsel %vm1654_vm4, %v7744_v41, %v8626_v52 }
 0x30b   : > { %8622 = vst [vmem:[#allocation94_spill] sm:$0xff] %v7725_v28  ;;  %v7728_v13 = vpop.f32.mrb[125].mxu0 }
 0x30c   : > { %8623 = vst [vmem:[#allocation95_spill] sm:$0xff] %v7728_v13 }
 0x30d   : > { %4296 = vmatmul.mubr.msk.f32.gmra.mrb[78].mxu1 %vm1654_vm4, %v8624_v2 }
 0x30e   : > { %v7740_v55 = vpop.f32.mrb[126].mxu0  ;;  %2800 = vmatprep.mubr.f32.mxu1 %v1728_v7  ;;  %v8628_v7 = vld [vmem:[#allocation82_spill] sm:$0xff] }
 0x30f   : > { %v7742_v28 = vpop.f32.mrb[127].mxu0 }
 0x311   : > { %4298 = vmatmul.mubr.msk.f32.gmra.mrb[80].mxu1 %vm6778_vm5, %v7744_v41 }
 0x312   : > { %v7749_v13 = vpop.f32.mrb[128].mxu0  ;;  %2805 = vmatprep.mubr.f32.mxu1 %v7309_v9 }
 0x313   : > { %8625 = vst [vmem:[#allocation72_spill] sm:$0xff] %v7749_v13  ;;  %v7752_v2 = vpop.f32.mrb[129].mxu0 }
 0x315   : > { %2806 = vmatmul.mubr.f32.gmra.mrb[82].mxu1 %v7758_v21 }
 0x316   : > { %v7761_v42 = vpop.f32.mrb[130].mxu0  ;;  %2810 = vmatprep.mubr.f32.mxu1 %v7321_v44 }
 0x317   : > { %8627 = vst [vmem:[#allocation80_spill] sm:$0xff] %v7761_v42  ;;  %v7764_v47 = vpop.f32.mrb[131].mxu0 }
 0x319   : > { %2811 = vmatmul.mubr.f32.gmra.mrb[84].mxu1 %v8628_v7 }
 0x31a   : > { %v7767_v13 = vpop.f32.mrb[132].mxu0  ;;  %2815 = vmatprep.mubr.f32.mxu1 %v7332_v29 }
 0x31b   : > { %8629 = vst [vmem:[#allocation82_spill] sm:$0xff] %v7767_v13  ;;  %v7770_v9 = vpop.f32.mrb[133].mxu0  ;;  %v8633_v13 = vld [vmem:[#allocation7_spill] sm:$0xff] }
 0x31c   : > { %8630 = vst [vmem:[#allocation96_spill] sm:$0xff] %v7770_v9  ;;  %v3615_v9 = vld [vmem:[%s7425_s25 + $0xa8] sm:$0xff] }
 0x31d   : > { %2816 = vmatmul.mubr.f32.gmra.mrb[86].mxu1 %v7056_v16 }
 0x31e   : > { %v7773_v52 = vpop.f32.mrb[134].mxu0  ;;  %2820 = vmatprep.mubr.f32.mxu1 %v7349_v34 }
 0x31f   : > { %8631 = vst [vmem:[#allocation97_spill] sm:$0xff] %v7773_v52  ;;  %v7776_v42 = vpop.f32.mrb[135].mxu0  ;;  %v7787_v52 = vsel %vm1500_vm0, %v6934_v24, %v7371_v14  ;;  %v8634_v24 = vld [vmem:[#allocation23_spill] sm:$0xff] }
 0x320   : > { %8632 = vst [vmem:[#allocation98_spill] sm:$0xff] %v7776_v42  ;;  %v3614_v42 = vld [vmem:[%s7425_s25 + $0xa0] sm:$0xff] }
 0x321   : > { %2821 = vmatmul.mubr.f32.gmra.mrb[88].mxu1 %v7061_v3  ;;  %4666 = vmatprep.mubr.msk.f32.mxu0 %vm3634_vm6, %v3614_v42  ;;  %v8639_v42 = vld [vmem:[#allocation11_spill] sm:$0xff] }
 0x322   : > { %2825 = vmatprep.mubr.f32.mxu1 %v7366_v35  ;;  %4667 = vmatmul.mubr.msk.f32.gmra.mrb[156].mxu0 %vm3634_vm6, %v3615_v9  ;;  %v3619_v9 = vld [vmem:[%s7425_s25 + $0xc8] sm:$0xff] }
 0x325   : > { %2826 = vmatmul.mubr.f32.gmra.mrb[90].mxu1 %v7080_v32 }
 0x326   : > { %2830 = vmatprep.mubr.f32.mxu1 %v7392_v60 }
 0x329   : > { %2831 = vmatmul.mubr.f32.gmra.mrb[92].mxu1 %v7088_v54 }
 0x32a   : > { %2835 = vmatprep.mubr.f32.mxu1 %v7787_v52 }
 0x32d   : > { %4299 = vmatmul.mubr.msk.f32.gmra.mrb[94].mxu1 %vm1654_vm4, %v7063_v61  ;;  %v8635_v61 = vld [vmem:[#allocation8_spill] sm:$0xff] }
 0x32e   : > { %2905 = vmatprep.mubr.f32.mxu1 %v7439_v51  ;;  %v3616_v51 = vld [vmem:[%s7425_s25 + $0xb0] sm:$0xff] }
 0x32f   : > { %4669 = vmatprep.mubr.msk.f32.mxu0 %vm3634_vm6, %v3616_v51  ;;  %v8646_v51 = vld [vmem:[#allocation15_spill] sm:$0xff] }
 0x331   : > { %2906 = vmatmul.mubr.f32.vlgmr.msra.gmra.mrb[32].mxu1 %v6878_v62  ;;  %v8636_v62 = vld [vmem:[#allocation25_spill] sm:$0xff] }
 0x332   : > { %2910 = vmatprep.mubr.f32.mxu1 %v8572_v22  ;;  %5068 = vmatpush1.bf16.msra.mxu1 %v8633_v13  ;;  %v3617_v22 = vld [vmem:[%s7425_s25 + $0xb8] sm:$0xff]  ;;  %v8637_v13 = vld [vmem:[#allocation9_spill] sm:$0xff] }
 0x333   : > { %5053 = vmatprep.subr.bf16.mxu1 %v8543_v37  ;;  %4670 = vmatmul.mubr.msk.f32.gmra.mrb[158].mxu0 %vm3634_vm6, %v3617_v22  ;;  %v3623_v22 = vld [vmem:[%s7425_s25 + $0xe8] sm:$0xff] }
 0x335   : > { %2911 = vmatmul.mubr.f32.gmra.mrb[34].mxu1 %v8634_v24  ;;  %v3620_v24 = vld [vmem:[%s7425_s25 + $0xd0] sm:$0xff] }
 0x336   : > { %2915 = vmatprep.mubr.f32.mxu1 %v8574_v59  ;;  %5069 = vmatpush1.bf16.msra.mxu1 %v8635_v61  ;;  %v8638_v59 = vld [vmem:[#allocation10_spill] sm:$0xff]  ;;  %v8643_v61 = vld [vmem:[#allocation13_spill] sm:$0xff] }
 0x337   : > { %5054 = vmatprep.subr.bf16.mxu1 %v8543_v37 }
 0x339   : > { %2916 = vmatmul.mubr.f32.gmra.mrb[36].mxu1 %v8636_v62  ;;  %v8644_v62 = vld [vmem:[#allocation26_spill] sm:$0xff] }
 0x33a   : > { %2920 = vmatprep.mubr.f32.mxu1 %v8576_v63  ;;  %5070 = vmatpush1.bf16.msra.mxu1 %v8637_v13  ;;  %v3618_v63 = vld [vmem:[%s7425_s25 + $0xc0] sm:$0xff]  ;;  %v8648_v13 = vld [vmem:[#allocation17_spill] sm:$0xff] }
 0x33b   : > { %5055 = vmatprep.subr.bf16.mxu1 %v8543_v37  ;;  %4672 = vmatprep.mubr.msk.f32.mxu0 %vm3634_vm6, %v3618_v63  ;;  %v8654_v63 = vld [vmem:[#allocation63_spill] sm:$0xff] }
 0x33c   : > { %4673 = vmatmul.mubr.msk.f32.gmra.mrb[160].mxu0 %vm3634_vm6, %v3619_v9  ;;  %v8657_v9 = vld [vmem:[#allocation61_spill] sm:$0xff] }
 0x33d   : > { %2921 = vmatmul.mubr.f32.gmra.mrb[38].mxu1 %v6394_v23  ;;  %v8640_v23 = vld [vmem:[#allocation54_spill] sm:$0xff]  ;;  %4675 = vmatprep.mubr.msk.f32.mxu0 %vm3634_vm6, %v3620_v24  ;;  %v8663_v24 = vld [vmem:[#allocation40_spill] sm:$0xff] }
 0x33e   : > { %2925 = vmatprep.mubr.f32.mxu1 %v8578_v25  ;;  %5071 = vmatpush1.bf16.msra.mxu1 %v8638_v59  ;;  %v8641_v25 = vld [vmem:[#allocation12_spill] sm:$0xff]  ;;  %v8653_v59 = vld [vmem:[#allocation31_spill] sm:$0xff] }
 0x33f   : > { %5056 = vmatprep.subr.bf16.mxu1 %v8543_v37 }
 0x341   : > { %2926 = vmatmul.mubr.f32.gmra.mrb[40].mxu1 %v6415_v58  ;;  %v8642_v58 = vld [vmem:[#allocation52_spill] sm:$0xff] }
 0x342   : > { %2930 = vmatprep.mubr.f32.mxu1 %v8580_v31  ;;  %5072 = vmatpush1.bf16.msra.mxu1 %v8639_v42  ;;  %v1812_v31 = vsel %vm1654_vm4, %v8642_v58, %v7534_v49  ;;  %v3622_v49 = vld [vmem:[%s7425_s25 + $0xe0] sm:$0xff]  ;;  %v8655_v42 = vld [vmem:[#allocation20_spill] sm:$0xff]  ;;  %v8660_v58 = vld [vmem:[#allocation22_spill] sm:$0xff] }
 0x343   : > { %5057 = vmatprep.subr.bf16.mxu1 %v8543_v37 }
 0x345   : > { %2931 = vmatmul.mubr.f32.gmra.mrb[42].mxu1 %v6435_v40  ;;  %v3621_v40 = vld [vmem:[%s7425_s25 + $0xd8] sm:$0xff] }
 0x346   : > { %2935 = vmatprep.mubr.f32.mxu1 %v8640_v23  ;;  %5073 = vmatpush1.bf16.msra.mxu1 %v8641_v25  ;;  %v1810_v23 = vsel %vm1654_vm4, %v8657_v9, %v7658_v1  ;;  %v8659_v25 = vld [vmem:[#allocation34_spill] sm:$0xff]  ;;  %v8662_v1 = vld [vmem:[#allocation39_spill] sm:$0xff] }
 0x347   : > { %5058 = vmatprep.subr.bf16.mxu1 %v8543_v37  ;;  %4676 = vmatmul.mubr.msk.f32.gmra.mrb[162].mxu0 %vm3634_vm6, %v3621_v40  ;;  %v8669_v40 = vld [vmem:[#allocation73_spill] sm:$0xff] }
 0x348   : > { %4678 = vmatprep.mubr.msk.f32.mxu0 %vm3634_vm6, %v3622_v49  ;;  %v8673_v49 = vld [vmem:[#allocation84_spill] sm:$0xff] }
 0x349   : > { %2936 = vmatmul.mubr.f32.gmra.mrb[44].mxu1 %v6455_v6  ;;  %v8645_v6 = vld [vmem:[#allocation14_spill] sm:$0xff] }
 0x34a   : > { %2940 = vmatprep.mubr.f32.mxu1 %v1812_v31  ;;  %5074 = vmatpush1.bf16.msra.mxu1 %v8643_v61  ;;  %v8661_v31 = vld [vmem:[#allocation37_spill] sm:$0xff] }
 0x34b   : > { %5059 = vmatprep.subr.bf16.mxu1 %v8543_v37  ;;  %4679 = vmatmul.mubr.msk.f32.gmra.mrb[164].mxu0 %vm3634_vm6, %v3623_v22  ;;  %v8674_v22 = vld [vmem:[#allocation69_spill] sm:$0xff] }
 0x34d   : > { %2941 = vmatmul.mubr.f32.gmra.mrb[46].mxu1 %v8644_v62 }
 0x34e   : > { %2945 = vmatprep.mubr.f32.mxu1 %v7563_v36  ;;  %5075 = vmatpush1.bf16.msra.mxu1 %v8645_v6  ;;  %v8647_v36 = vld [vmem:[#allocation16_spill] sm:$0xff]  ;;  %v8671_v6 = vld [vmem:[#allocation77_spill] sm:$0xff] }
 0x34f   : > { %5060 = vmatprep.subr.bf16.mxu1 %v8543_v37 }
 0x351   : > { %2946 = vmatmul.mubr.f32.gmra.mrb[48].mxu1 %v7132_v45  ;;  %v3624_v45 = vld [vmem:[%s7425_s25 + $0xf0] sm:$0xff] }
 0x352   : > { %2950 = vmatprep.mubr.f32.mxu1 %v8589_v0  ;;  %5076 = vmatpush1.bf16.msra.mxu1 %v8646_v51  ;;  %v3625_v0 = vld [vmem:[%s7425_s25 + $0xf8] sm:$0xff]  ;;  %s4145_s25 = sshll.u32 %s8044_s24, 4  ;;  %s8293_s25 = int_to_ptr.vmem [resolvable:$true] %s4145_s25 }
 0x353   : > { %5061 = vmatprep.subr.bf16.mxu1 %v8543_v37  ;;  %4681 = vmatprep.mubr.msk.f32.mxu0 %vm3634_vm6, %v3624_v45  ;;  %v8676_v45 = vld [vmem:[#allocation81_spill] sm:$0xff]  ;;  %s5366_s22 = scalar_lea.vmem %s8293_s25, 4096  ;;  %p5373_p0 = scmp.lt.s32.totalorder %s8293_s25, %s5371_s14 }
 0x354   : > { %4682 = vmatmul.mubr.msk.f32.gmra.mrb[166].mxu0 %vm3634_vm6, %v3625_v0  ;;  %p5367_p11 = scmp.ne.s32.totalorder %s8293_s25, %s5366_s22  ;;  %p5374_p1 = scmp.lt.s32.totalorder %s5372_s26, %s5366_s22 }
 0x355   : > { %2951 = vmatmul.mubr.f32.gmra.mrb[50].mxu1 %v6511_v19  ;;  %v8649_v19 = vld [vmem:[#allocation29_spill] sm:$0xff] }
 0x356   : > { %2955 = vmatprep.mubr.f32.mxu1 %v8591_v4  ;;  %5077 = vmatpush1.bf16.msra.mxu1 %v8647_v36  ;;  %v8650_v4 = vld [vmem:[#allocation18_spill] sm:$0xff]  ;;  %p5368_p12 = pnand %p5367_p11, %p5533_p5  ;;  %p5375_p2 = por %p5374_p1, %p5373_p0 }
 0x357   : > { %5062 = vmatprep.subr.bf16.mxu1 %v8543_v37 }
 0x358   : > { %p5369_p13 = pneg %p5368_p12 }
 0x359   : > { %2956 = vmatmul.mubr.f32.gmra.mrb[52].mxu1 %v6525_v39  ;;  %v8651_v39 = vld [vmem:[#allocation30_spill] sm:$0xff] }
 0x35a   : > { %2960 = vmatprep.mubr.f32.mxu1 %v8593_v33  ;;  %5078 = vmatpush1.bf16.msra.mxu1 %v8648_v13  ;;  %v8652_v33 = vld [vmem:[#allocation19_spill] sm:$0xff]  ;;  %p5376_p3 = pnand %p5375_p2, %p5369_p13 }
 0x35b   : > { %5063 = vmatprep.subr.bf16.mxu1 %v8543_v37 }
 0x35d   : > { %2961 = vmatmul.mubr.f32.gmra.mrb[54].mxu1 %v8649_v19  ;;  %v8677_v19 = vmov 0.0  }
 0x35e   : > { %2965 = vmatprep.mubr.f32.mxu1 %v8594_v57  ;;  %5079 = vmatpush1.bf16.msra.mxu1 %v8650_v4  ;;  %v8656_v57 = vld [vmem:[#allocation32_spill] sm:$0xff]  ;;  %v8678_v4 = vld [vmem:[#allocation38_spill] sm:$0xff] }
 0x35f   : > { %5064 = vmatprep.subr.bf16.mxu1 %v8543_v37 }
 0x361   : > { %2966 = vmatmul.mubr.f32.gmra.mrb[56].mxu1 %v8651_v39 }
 0x362   : > { %2970 = vmatprep.mubr.f32.mxu1 %v8597_v8  ;;  %5080 = vmatpush1.bf16.msra.mxu1 %v8652_v33  ;;  %v8658_v8 = vld [vmem:[#allocation21_spill] sm:$0xff] }
 0x363   : > { %5065 = vmatprep.subr.bf16.mxu1 %v8543_v37 }
 0x365   : > { %2971 = vmatmul.mubr.f32.gmra.mrb[58].mxu1 %v8653_v59 }
 0x366   : > { %2975 = vmatprep.mubr.f32.mxu1 %v8654_v63  ;;  %5081 = vmatpush1.bf16.msra.mxu1 %v8655_v42 }
 0x367   : > { %5066 = vmatprep.subr.bf16.mxu1 %v8543_v37 }
 0x369   : > { %2976 = vmatmul.mubr.f32.gmra.mrb[60].mxu1 %v8656_v57  ;;  %v8019_v57 = vld [vmem:[%s8346_s7] ss:$0 sm:$0xff] }
 0x36a   : > { %2980 = vmatprep.mubr.f32.mxu1 %v1810_v23  ;;  %5082 = vmatpush1.bf16.msra.mxu1 %v8658_v8 }
 0x36b   : > { %5067 = vmatprep.subr.bf16.mxu1 %v8543_v37  ;;  %v8664_v37 = vld [vmem:[#allocation64_spill] sm:$0xff] }
 0x36d   : > { %2981 = vmatmul.mubr.f32.gmra.mrb[62].mxu1 %v8659_v25  ;;  %v8681_v25 = vld [vmem:[#allocation41_spill] sm:$0xff] }
 0x36e   : > { %2985 = vmatprep.mubr.f32.mxu1 %v7676_v12  ;;  %5083 = vmatpush1.bf16.msra.mxu1 %v8660_v58  ;;  %v8667_v12 = vld [vmem:[#allocation75_spill] sm:$0xff] }
 0x371   : > { %2986 = vmatmul.mubr.f32.gmra.mrb[64].mxu1 %v7222_v46  ;;  %v8665_v46 = vld [vmem:[#allocation78_spill] sm:$0xff] }
 0x372   : > { %2990 = vmatprep.mubr.f32.mxu1 %v8610_v26  ;;  %v8666_v26 = vld [vmem:[#allocation65_spill] sm:$0xff] }
 0x375   : > { %2991 = vmatmul.mubr.f32.gmra.mrb[66].mxu1 %v8661_v31 }
 0x376   : > { %2995 = vmatprep.mubr.f32.mxu1 %v8613_v56  ;;  %v1808_v56 = vsel %vm1654_vm4, %v8667_v12, %v7744_v41 }
 0x379   : > { %2996 = vmatmul.mubr.f32.gmra.mrb[68].mxu1 %v8662_v1 }
 0x37a   : > { %3000 = vmatprep.mubr.f32.mxu1 %v8616_v10 }
 0x37d   : > { %3001 = vmatmul.mubr.f32.gmra.mrb[70].mxu1 %v8663_v24 }
 0x37e   : > { %3005 = vmatprep.mubr.f32.mxu1 %v6958_v50 }
 0x381   : > { %3006 = vmatmul.mubr.f32.gmra.mrb[72].mxu1 %v8556_v20  ;;  %v8668_v20 = vld [vmem:[#allocation74_spill] sm:$0xff] }
 0x382   : > { %3010 = vmatprep.mubr.f32.mxu1 %v6970_v15 }
 0x385   : > { %3011 = vmatmul.mubr.f32.gmra.mrb[74].mxu1 %v8664_v37 }
 0x386   : > { %3015 = vmatprep.mubr.f32.mxu1 %v8665_v46 }
 0x387   : > { %v7904_v10 = vpop.f32.mrb[136].mxu0 }
 0x388   : > { %v7906_v61 = vpop.f32.mrb[137].mxu0 }
 0x389   : > { %3016 = vmatmul.mubr.f32.gmra.mrb[76].mxu1 %v8666_v26 }
 0x38a   : > { %3020 = vmatprep.mubr.f32.mxu1 %v1808_v56 }
 0x38b   : > { %v7910_v50 = vpop.f32.mrb[138].mxu0 }
 0x38c   : > { %v7913_v15 = vpop.f32.mrb[139].mxu0 }
 0x38d   : > { %3021 = vmatmul.mubr.f32.gmra.mrb[78].mxu1 %v8619_v5 }
 0x38e   : > { %3025 = vmatprep.mubr.f32.mxu1 %v7758_v21  ;;  %v8670_v21 = vld [vmem:[#allocation76_spill] sm:$0xff] }
 0x38f   : > { %v7918_v41 = vpop.f32.mrb[140].mxu0 }
 0x390   : > { %v7921_v62 = vpop.f32.mrb[141].mxu0 }
 0x391   : > { %3026 = vmatmul.mubr.f32.gmra.mrb[80].mxu1 %v7271_v30 }
 0x392   : > { %3030 = vmatprep.mubr.f32.mxu1 %v8628_v7 }
 0x395   : > { %3031 = vmatmul.mubr.f32.gmra.mrb[82].mxu1 %v8668_v20 }
 0x396   : > { %3035 = vmatprep.mubr.f32.mxu1 %v7056_v16  ;;  %v7926_v30 = vpop.f32.mrb[142].mxu0  ;;  %v8672_v16 = vld [vmem:[#allocation79_spill] sm:$0xff] }
 0x397   : > { %v7929_v7 = vpop.f32.mrb[143].mxu0 }
 0x399   : > { %3036 = vmatmul.mubr.f32.gmra.mrb[84].mxu1 %v8669_v40 }
 0x39a   : > { %3040 = vmatprep.mubr.f32.mxu1 %v7061_v3  ;;  %v8675_v3 = vld [vmem:[#allocation83_spill] sm:$0xff] }
 0x39d   : > { %3041 = vmatmul.mubr.f32.gmra.mrb[86].mxu1 %v8670_v21 }
 0x39e   : > { %3045 = vmatprep.mubr.f32.mxu1 %v7080_v32  ;;  %v1814_v32 = vsel %vm1654_vm4, %v8675_v3, %v7407_v53 }
 0x39f   : > { %v7934_v51 = vpop.f32.mrb[144].mxu0 }
 0x3a0   : > { %v7941_v36 = vpop.f32.mrb[145].mxu0 }
 0x3a1   : > { %3046 = vmatmul.mubr.f32.gmra.mrb[88].mxu1 %v8671_v6 }
 0x3a2   : > { %3050 = vmatprep.mubr.f32.mxu1 %v7088_v54 }
 0x3a4   : > { %v7945_v54 = vpop.f32.mrb[146].mxu0 }
 0x3a5   : > { %3051 = vmatmul.mubr.f32.gmra.mrb[90].mxu1 %v8672_v16  ;;  %v7948_v0 = vpop.f32.mrb[147].mxu0 }
 0x3a6   : > { %3055 = vmatprep.mubr.f32.mxu1 %v8673_v49 }
 0x3a9   : > { %3056 = vmatmul.mubr.f32.gmra.mrb[92].mxu1 %v8674_v22 }
 0x3aa   : > { %3060 = vmatprep.mubr.f32.mxu1 %v1814_v32 }
 0x3ad   : > { %3061 = vmatmul.mubr.f32.gmra.mrb[94].mxu1 %v8676_v45 }
 0x3ae   : > { %3230 = vmatprep.mubr.f32.mxu1 %v8664_v37 }
 0x3b1   : > { %3231 = vmatmul.mubr.f32.vlgmr.msra.gmra.mrb[72].mxu1 %v7265_v38 }
 0x3b2   : > { %3235 = vmatprep.mubr.f32.mxu1 %v8666_v26 }
 0x3b3   : > { %v7953_v53 = vpop.f32.mrb[148].mxu0 }
 0x3b4   : > { %v7956_v13 = vpop.f32.mrb[149].mxu0 }
 0x3b5   : > { %3236 = vmatmul.mubr.f32.gmra.mrb[74].mxu1 %v7276_v17 }
 0x3b6   : > { %3240 = vmatprep.mubr.f32.mxu1 %v8619_v5 }
 0x3b9   : > { %3241 = vmatmul.mubr.f32.gmra.mrb[76].mxu1 %v7723_v18 }
 0x3ba   : > { %3245 = vmatprep.mubr.f32.mxu1 %v8677_v19 }
 0x3bb   : > { %v7963_v38 = vpop.f32.mrb[150].mxu0 }
 0x3bc   : > { %v7968_v5 = vpop.f32.mrb[151].mxu0 }
 0x3bd   : > { %4308 = vmatmul.mubr.msk.f32.gmra.mrb[78].mxu1 %vm1500_vm0, %v7711_v43 }
 0x3be   : > { %3250 = vmatprep.mubr.f32.mxu1 %v8668_v20 }
 0x3c1   : > { %4310 = vmatmul.mubr.msk.f32.gmra.mrb[80].mxu1 %vm6369_vm2, %v8678_v4 }
 0x3c2   : > { %3255 = vmatprep.mubr.f32.mxu1 %v8669_v40  ;;  %v7973_v18 = vpop.f32.mrb[152].mxu0 }
 0x3c3   : > { %v7976_v43 = vpop.f32.mrb[153].mxu0 }
 0x3c5   : > { %3256 = vmatmul.mubr.f32.gmra.mrb[82].mxu1 %v7321_v44  ;;  %v7997_v44 = vld [vmem:[%s8348_s9] ss:$0 sm:$0xff] }
 0x3c6   : > { %3260 = vmatprep.mubr.f32.mxu1 %v8670_v21  ;;  %v7981_v39 = vpop.f32.mrb[154].mxu0  ;;  %v3963_v59 = vmul.f32 %v7997_v44, %v7906_v61  ;;  %v3964_v8 = vmul.f32 %v7904_v10, %v7997_v44  ;;  %v3965_v46 = vmul.f32 %v7997_v44, %v7913_v15  ;;  %v8682_v10 = vld [vmem:[#allocation43_spill] sm:$0xff] }
 0x3c7   : > { %v7984_v33 = vpop.f32.mrb[155].mxu0 }
 0x3c8   : > { %v4003_v26 = vadd.f32 %v8010_v27, %v3964_v8 }
 0x3c9   : > { %3261 = vmatmul.mubr.f32.gmra.mrb[84].mxu1 %v7332_v29 }
 0x3ca   : > { %3265 = vmatprep.mubr.f32.mxu1 %v8671_v6  ;;  %v8683_v6 = vld [vmem:[#allocation58_spill] sm:$0xff] }
 0x3cd   : > { %3266 = vmatmul.mubr.f32.gmra.mrb[86].mxu1 %v7349_v34  ;;  %v8680_v34 = vld [vmem:[#allocation33_spill] sm:$0xff] }
 0x3ce   : > { %3270 = vmatprep.mubr.f32.mxu1 %v8672_v16 }
 0x3d1   : > { %3271 = vmatmul.mubr.f32.gmra.mrb[88].mxu1 %v7366_v35 }
 0x3d2   : > { %3275 = vmatprep.mubr.f32.mxu1 %v8674_v22  ;;  %v4004_v22 = vadd.f32 %v8010_v27, %v3965_v46 }
 0x3d5   : > { %3276 = vmatmul.mubr.f32.gmra.mrb[90].mxu1 %v7392_v60 }
 0x3d6   : > { %3280 = vmatprep.mubr.f32.mxu1 %v8676_v45  ;;  %v3966_v45 = vmul.f32 %v7910_v50, %v7997_v44  ;;  %v8686_v50 = vld [vmem:[#allocation48_spill] sm:$0xff] }
 0x3d9   : > { %3281 = vmatmul.mubr.f32.gmra.mrb[92].mxu1 %v7787_v52  ;;  %v8005_v52 = vld [vmem:[%s8345_s6] ss:$0 sm:$0xff] }
 0x3da   : > { %3285 = vmatprep.mubr.f32.mxu1 %v8677_v19  ;;  %v8684_v19 = vld [vmem:[#allocation42_spill] sm:$0xff] }
 0x3dd   : > { %4311 = vmatmul.mubr.msk.f32.gmra.mrb[94].mxu1 %vm1500_vm0, %v7371_v14 }
 0x3f5   : > { %v8013_v63 = vpop.f32.mrb[156].mxu0 }
 0x3f6   : > { %v8021_v9 = vpop.f32.mrb[157].mxu0 }
 0x404   : > { %v2907_v29 = vpop.f32.mrb[32].mxu1 }
 0x405   : > { %v5084_v35 = vadd.f32 %v8680_v34, %v2907_v29  ;;  %v2909_v60 = vpop.f32.mrb[33].mxu1  ;;  %v8685_v34 = vld [vmem:[#allocation57_spill] sm:$0xff] }
 0x407   : > { %v3358_v14 = vadd.f32 %v5084_v35, %v7607_v11  ;;  %v4002_v11 = vadd.f32 %v8010_v27, %v3963_v59 }
 0x408   : > { %v2912_v42 = vpop.f32.mrb[34].mxu1 }
 0x409   : > { %v3523_v23 = vmul.f32 %v8005_v52, %v3358_v14  ;;  %v5085_v58 = vadd.f32 %v8681_v25, %v2912_v42  ;;  %v2914_v31 = vpop.f32.mrb[35].mxu1  ;;  %v3967_v14 = vmul.f32 %v7997_v44, %v7921_v62  ;;  %v4005_v42 = vadd.f32 %v8010_v27, %v3966_v45 }
 0x40b   : > { %v3363_v1 = vadd.f32 %v5085_v58, %v7604_v48  ;;  %v3562_v24 = vadd.f32 %v8019_v57, %v3523_v23  ;;  %v8039_v48 = vpop.f32.mrb[158].mxu0  ;;  %v4006_v62 = vadd.f32 %v8010_v27, %v3967_v14 }
 0x40c   : > { %v2917_v37 = vpop.f32.mrb[36].mxu1  ;;  %v8042_v3 = vpop.f32.mrb[159].mxu0 }
 0x40d   : > { %v3524_v12 = vmul.f32 %v8005_v52, %v3363_v1  ;;  %v4034_v56 = vadd.f32 %v4002_v11, %v3562_v24  ;;  %v5086_v61 = vadd.f32 %v8682_v10, %v2917_v37  ;;  %v2919_v20 = vpop.f32.mrb[37].mxu1  ;;  %v8687_v1 = vld [vmem:[#allocation62_spill] sm:$0xff]  ;;  %v3968_v10 = vmul.f32 %v7918_v41, %v7997_v44  ;;  %v8690_v41 = vld [vmem:[#allocation44_spill] sm:$0xff] }
 0x40f   : > { %v3563_v40 = vadd.f32 %v8019_v57, %v3524_v12  ;;  %v4066_v21 = vmax.f32 %v4034_v56, 0.0  ;;  %v3368_v16 = vadd.f32 %v5086_v61, %v8683_v6  ;;  %v8061_v37 = vpop.f32.mrb[160].mxu0  ;;  %v8688_v61 = vld [vmem:[#allocation45_spill] sm:$0xff]  ;;  %v8689_v6 = vld [vmem:[#allocation60_spill] sm:$0xff] }
 0x410   : > { %v2922_v49 = vpop.f32.mrb[38].mxu1 }
 0x411   : > { %v4035_v15 = vadd.f32 %v4003_v26, %v3563_v40  ;;  %4098 = vst [vmem:[%s8044_s24] sm:$0xff] %v4066_v21  ;;  %v3525_v32 = vmul.f32 %v8005_v52, %v3368_v16  ;;  %v5087_v4 = vadd.f32 %v8684_v19, %v2922_v49  ;;  %v2924_v17 = vpop.f32.mrb[39].mxu1  ;;  %v8064_v26 = vpop.f32.mrb[161].mxu0 }
 0x413   : > { %v4067_v29 = vmax.f32 %v4035_v15, 0.0  ;;  %v3373_v35 = vadd.f32 %v5087_v4, %v8685_v34  ;;  %v3564_v60 = vadd.f32 %v8019_v57, %v3525_v32  ;;  %v3969_v15 = vmul.f32 %v7997_v44, %v7929_v7 }
 0x414   : > { %v2927_v59 = vpop.f32.mrb[40].mxu1  ;;  %v4007_v32 = vadd.f32 %v8010_v27, %v3968_v10 }
 0x415   : > { %4099 = vst [vmem:[%s8044_s24 + $0x8] sm:$0xff] %v4067_v29  ;;  %v3526_v23 = vmul.f32 %v8005_v52, %v3373_v35  ;;  %v4036_v8 = vadd.f32 %v4004_v22, %v3564_v60  ;;  %v5088_v25 = vadd.f32 %v8686_v50, %v2927_v59  ;;  %v2929_v58 = vpop.f32.mrb[41].mxu1  ;;  %v8691_v35 = vld [vmem:[#allocation59_spill] sm:$0xff]  ;;  %v4008_v7 = vadd.f32 %v8010_v27, %v3969_v15 }
 0x416   : > { %v3970_v50 = vmul.f32 %v7926_v30, %v7997_v44  ;;  %v8694_v30 = vld [vmem:[#allocation86_spill] sm:$0xff] }
 0x417   : > { %v3565_v11 = vadd.f32 %v8019_v57, %v3526_v23  ;;  %v4068_v31 = vmax.f32 %v4036_v8, 0.0  ;;  %v3378_v24 = vadd.f32 %v5088_v25, %v8687_v1  ;;  %v8692_v25 = vld [vmem:[#allocation85_spill] sm:$0xff]  ;;  %v8693_v1 = vld [vmem:[#allocation36_spill] sm:$0xff] }
 0x418   : > { %v2932_v46 = vpop.f32.mrb[42].mxu1 }
 0x419   : > { %v4037_v12 = vadd.f32 %v4005_v42, %v3565_v11  ;;  %4100 = vst [vmem:[%s8044_s24 + $0x10] sm:$0xff] %v4068_v31  ;;  %v3527_v56 = vmul.f32 %v8005_v52, %v3378_v24  ;;  %v5089_v20 = vadd.f32 %v8688_v61, %v2932_v46  ;;  %v2934_v40 = vpop.f32.mrb[43].mxu1 }
 0x41a   : > { %v8081_v59 = vpop.f32.mrb[162].mxu0 }
 0x41b   : > { %v4069_v21 = vmax.f32 %v4037_v12, 0.0  ;;  %v3383_v16 = vadd.f32 %v5089_v20, %v8689_v6  ;;  %v3566_v49 = vadd.f32 %v8019_v57, %v3527_v56  ;;  %v8084_v42 = vpop.f32.mrb[163].mxu0  ;;  %v3971_v12 = vmul.f32 %v7997_v44, %v7941_v36 }
 0x41c   : > { %v2937_v22 = vpop.f32.mrb[44].mxu1  ;;  %v4009_v56 = vadd.f32 %v8010_v27, %v3970_v50 }
 0x41d   : > { %4101 = vst [vmem:[%s8044_s24 + $0x18] sm:$0xff] %v4069_v21  ;;  %v3528_v45 = vmul.f32 %v8005_v52, %v3383_v16  ;;  %v4038_v19 = vadd.f32 %v4006_v62, %v3566_v49  ;;  %v5090_v4 = vadd.f32 %v8690_v41, %v2937_v22  ;;  %v2939_v17 = vpop.f32.mrb[45].mxu1  ;;  %v8695_v16 = vld [vmem:[#allocation88_spill] sm:$0xff]  ;;  %v4010_v36 = vadd.f32 %v8010_v27, %v3971_v12 }
 0x41e   : > { %v8101_v22 = vpop.f32.mrb[164].mxu0  ;;  %v3972_v41 = vmul.f32 %v7934_v51, %v7997_v44  ;;  %v8698_v51 = vld [vmem:[#allocation46_spill] sm:$0xff] }
 0x41f   : > { %v3567_v29 = vadd.f32 %v8019_v57, %v3528_v45  ;;  %v4070_v34 = vmax.f32 %v4038_v19, 0.0  ;;  %v3388_v60 = vadd.f32 %v5090_v4, %v8691_v35  ;;  %v8696_v4 = vld [vmem:[#allocation87_spill] sm:$0xff] }
 0x420   : > { %v2942_v14 = vpop.f32.mrb[46].mxu1  ;;  %v8697_v35 = vld [vmem:[#allocation35_spill] sm:$0xff] }
 0x421   : > { %v4039_v23 = vadd.f32 %v4007_v32, %v3567_v29  ;;  %4102 = vst [vmem:[%s8044_s24 + $0x20] sm:$0xff] %v4070_v34  ;;  %v3529_v8 = vmul.f32 %v8005_v52, %v3388_v60  ;;  %v5091_v58 = vadd.f32 %v8692_v25, %v2942_v14  ;;  %v2944_v11 = vpop.f32.mrb[47].mxu1  ;;  %v8104_v32 = vpop.f32.mrb[165].mxu0 }
 0x423   : > { %v4071_v31 = vmax.f32 %v4039_v23, 0.0  ;;  %v3393_v24 = vadd.f32 %v5091_v58, %v8693_v1  ;;  %v3568_v46 = vadd.f32 %v8019_v57, %v3529_v8  ;;  %v3973_v23 = vmul.f32 %v7997_v44, %v7948_v0 }
 0x424   : > { %v2947_v62 = vpop.f32.mrb[48].mxu1  ;;  %v4011_v8 = vadd.f32 %v8010_v27, %v3972_v41 }
 0x425   : > { %4103 = vst [vmem:[%s8044_s24 + $0x28] sm:$0xff] %v4071_v31  ;;  %v3530_v10 = vmul.f32 %v8005_v52, %v3393_v24  ;;  %v4040_v61 = vadd.f32 %v4008_v7, %v3568_v46  ;;  %v5092_v20 = vadd.f32 %v8694_v30, %v2947_v62  ;;  %v2949_v40 = vpop.f32.mrb[49].mxu1  ;;  %v8699_v24 = vld [vmem:[#allocation89_spill] sm:$0xff]  ;;  %v4012_v0 = vadd.f32 %v8010_v27, %v3973_v23 }
 0x426   : > { %v3974_v30 = vmul.f32 %v7945_v54, %v7997_v44  ;;  %v8702_v54 = vld [vmem:[#allocation49_spill] sm:$0xff] }
 0x427   : > { %v3569_v21 = vadd.f32 %v8019_v57, %v3530_v10  ;;  %v4072_v6 = vmax.f32 %v4040_v61, 0.0  ;;  %v3398_v49 = vadd.f32 %v5092_v20, %v8695_v16  ;;  %v8121_v62 = vpop.f32.mrb[166].mxu0  ;;  %v8700_v20 = vld [vmem:[#allocation47_spill] sm:$0xff]  ;;  %v8701_v16 = vld [vmem:[#allocation66_spill] sm:$0xff] }
 0x428   : > { %v2952_v15 = vpop.f32.mrb[50].mxu1 }
 0x429   : > { %v4041_v45 = vadd.f32 %v4009_v56, %v3569_v21  ;;  %4104 = vst [vmem:[%s8044_s24 + $0x30] sm:$0xff] %v4072_v6  ;;  %v3531_v19 = vmul.f32 %v8005_v52, %v3398_v49  ;;  %v5093_v17 = vadd.f32 %v8696_v4, %v2952_v15  ;;  %v2954_v29 = vpop.f32.mrb[51].mxu1  ;;  %v8124_v56 = vpop.f32.mrb[167].mxu0 }
 0x42b   : > { %v4073_v34 = vmax.f32 %v4041_v45, 0.0  ;;  %v3403_v60 = vadd.f32 %v5093_v17, %v8697_v35  ;;  %v3570_v14 = vadd.f32 %v8019_v57, %v3531_v19  ;;  %v3975_v45 = vmul.f32 %v7997_v44, %v7956_v13 }
 0x42c   : > { %v2957_v7 = vpop.f32.mrb[52].mxu1  ;;  %v4013_v19 = vadd.f32 %v8010_v27, %v3974_v30 }
 0x42d   : > { %4105 = vst [vmem:[%s8044_s24 + $0x38] sm:$0xff] %v4073_v34  ;;  %v3532_v50 = vmul.f32 %v8005_v52, %v3403_v60  ;;  %v4042_v25 = vadd.f32 %v4010_v36, %v3570_v14  ;;  %v5094_v58 = vadd.f32 %v8698_v51, %v2957_v7  ;;  %v2959_v11 = vpop.f32.mrb[53].mxu1  ;;  %v8703_v60 = vld [vmem:[#allocation90_spill] sm:$0xff]  ;;  %v4014_v23 = vadd.f32 %v8010_v27, %v3975_v45 }
 0x42e   : > { %v3978_v45 = vmul.f32 %v7963_v38, %v7997_v44  ;;  %v8710_v38 = vld [vmem:[#allocation50_spill] sm:$0xff] }
 0x42f   : > { %v3571_v31 = vadd.f32 %v8019_v57, %v3532_v50  ;;  %v4074_v1 = vmax.f32 %v4042_v25, 0.0  ;;  %v3408_v46 = vadd.f32 %v5094_v58, %v8699_v24  ;;  %v3976_v50 = vmul.f32 %v7953_v53, %v7997_v44  ;;  %v8704_v25 = vld [vmem:[#allocation51_spill] sm:$0xff]  ;;  %v8706_v53 = vld [vmem:[#allocation53_spill] sm:$0xff] }
 0x430   : > { %v2962_v12 = vpop.f32.mrb[54].mxu1 }
 0x431   : > { %v4043_v10 = vadd.f32 %v4011_v8, %v3571_v31  ;;  %4106 = vst [vmem:[%s8044_s24 + $0x40] sm:$0xff] %v4074_v1  ;;  %v3533_v61 = vmul.f32 %v8005_v52, %v3408_v46  ;;  %v5095_v40 = vadd.f32 %v8700_v20, %v2962_v12  ;;  %v2964_v21 = vpop.f32.mrb[55].mxu1  ;;  %v8705_v31 = vld [vmem:[#allocation67_spill] sm:$0xff]  ;;  %v3977_v12 = vmul.f32 %v7997_v44, %v7968_v5 }
 0x433   : > { %v4075_v6 = vmax.f32 %v4043_v10, 0.0  ;;  %v3413_v49 = vadd.f32 %v5095_v40, %v8701_v16  ;;  %v3572_v15 = vadd.f32 %v8019_v57, %v3533_v61 }
 0x434   : > { %v2967_v36 = vpop.f32.mrb[56].mxu1 }
 0x435   : > { %4107 = vst [vmem:[%s8044_s24 + $0x48] sm:$0xff] %v4075_v6  ;;  %v3534_v41 = vmul.f32 %v8005_v52, %v3413_v49  ;;  %v4044_v4 = vadd.f32 %v4012_v0, %v3572_v15  ;;  %v5096_v17 = vadd.f32 %v8702_v54, %v2967_v36  ;;  %v2969_v29 = vpop.f32.mrb[57].mxu1  ;;  %v4015_v0 = vadd.f32 %v8010_v27, %v3976_v50  ;;  %v8707_v6 = vld [vmem:[#allocation91_spill] sm:$0xff] }
 0x436   : > { %v4016_v15 = vadd.f32 %v8010_v27, %v3977_v12 }
 0x437   : > { %v3573_v34 = vadd.f32 %v8019_v57, %v3534_v41  ;;  %v4076_v35 = vmax.f32 %v4044_v4, 0.0  ;;  %v3418_v14 = vadd.f32 %v5096_v17, %v8703_v60  ;;  %v8709_v17 = vld [vmem:[#allocation70_spill] sm:$0xff]  ;;  %v3979_v60 = vmul.f32 %v7997_v44, %v7976_v43 }
 0x438   : > { %v2972_v7 = vpop.f32.mrb[58].mxu1 }
 0x439   : > { %v4045_v8 = vadd.f32 %v4013_v19, %v3573_v34  ;;  %4108 = vst [vmem:[%s8044_s24 + $0x50] sm:$0xff] %v4076_v35  ;;  %v3535_v13 = vmul.f32 %v8005_v52, %v3418_v14  ;;  %v5097_v51 = vadd.f32 %v8704_v25, %v2972_v7  ;;  %v2974_v58 = vpop.f32.mrb[59].mxu1  ;;  %v8708_v19 = vld [vmem:[#allocation28_spill] sm:$0xff]  ;;  %v4017_v14 = vadd.f32 %v8010_v27, %v3978_v45  ;;  %v8715_v45 = vld [vmem:[#allocation93_spill] sm:$0xff] }
 0x43b   : > { %v4077_v11 = vmax.f32 %v4045_v8, 0.0  ;;  %v3423_v1 = vadd.f32 %v5097_v51, %v8705_v31  ;;  %v3574_v24 = vadd.f32 %v8019_v57, %v3535_v13  ;;  %v8711_v51 = vld [vmem:[#allocation92_spill] sm:$0xff]  ;;  %v4018_v31 = vadd.f32 %v8010_v27, %v3979_v60 }
 0x43c   : > { %v2977_v46 = vpop.f32.mrb[60].mxu1 }
 0x43d   : > { %4109 = vst [vmem:[%s8044_s24 + $0x58] sm:$0xff] %v4077_v11  ;;  %v3536_v10 = vmul.f32 %v8005_v52, %v3423_v1  ;;  %v4046_v61 = vadd.f32 %v4014_v23, %v3574_v24  ;;  %v5098_v30 = vadd.f32 %v8706_v53, %v2977_v46  ;;  %v2979_v20 = vpop.f32.mrb[61].mxu1  ;;  %v3980_v24 = vmul.f32 %v7973_v18, %v7997_v44  ;;  %v8712_v46 = vld [vmem:[#allocation27_spill] sm:$0xff] }
 0x43e   : > { %v8714_v18 = vld [vmem:[#allocation55_spill] sm:$0xff] }
 0x43f   : > { %v3575_v40 = vadd.f32 %v8019_v57, %v3536_v10  ;;  %v4078_v21 = vmax.f32 %v4046_v61, 0.0  ;;  %v3428_v16 = vadd.f32 %v5098_v30, %v8707_v6  ;;  %v8713_v61 = vld [vmem:[#allocation71_spill] sm:$0xff] }
 0x440   : > { %v2982_v49 = vpop.f32.mrb[62].mxu1 }
 0x441   : > { %v4047_v36 = vadd.f32 %v4015_v0, %v3575_v40  ;;  %4110 = vst [vmem:[%s8044_s24 + $0x60] sm:$0xff] %v4078_v21  ;;  %v3537_v5 = vmul.f32 %v8005_v52, %v3428_v16  ;;  %v5099_v41 = vadd.f32 %v8708_v19, %v2982_v49  ;;  %v2984_v4 = vpop.f32.mrb[63].mxu1  ;;  %v3981_v40 = vmul.f32 %v7997_v44, %v7984_v33 }
 0x442   : > { %v4019_v21 = vadd.f32 %v8010_v27, %v3980_v24 }
 0x443   : > { %v4079_v54 = vmax.f32 %v4047_v36, 0.0  ;;  %v3433_v29 = vadd.f32 %v5099_v41, %v8709_v17  ;;  %v3576_v34 = vadd.f32 %v8019_v57, %v3537_v5  ;;  %v4020_v4 = vadd.f32 %v8010_v27, %v3981_v40 }
 0x444   : > { %v2987_v35 = vpop.f32.mrb[64].mxu1  ;;  %v3982_v17 = vmul.f32 %v7981_v39, %v7997_v44 }
 0x445   : > { %4111 = vst [vmem:[%s8044_s24 + $0x68] sm:$0xff] %v4079_v54  ;;  %v3538_v7 = vmul.f32 %v8005_v52, %v3433_v29  ;;  %v4048_v23 = vadd.f32 %v4016_v15, %v3576_v34  ;;  %v5100_v8 = vadd.f32 %v8710_v38, %v2987_v35  ;;  %v2989_v13 = vpop.f32.mrb[65].mxu1  ;;  %v8716_v29 = vld [vmem:[#allocation56_spill] sm:$0xff] }
 0x446   : > { %v4021_v38 = vadd.f32 %v8010_v27, %v3982_v17 }
 0x447   : > { %v3577_v50 = vadd.f32 %v8019_v57, %v3538_v7  ;;  %v4080_v25 = vmax.f32 %v4048_v23, 0.0  ;;  %v3438_v58 = vadd.f32 %v5100_v8, %v8711_v51 }
 0x448   : > { %v2992_v11 = vpop.f32.mrb[66].mxu1 }
 0x449   : > { %v4049_v1 = vadd.f32 %v4017_v14, %v3577_v50  ;;  %4112 = vst [vmem:[%s8044_s24 + $0x70] sm:$0xff] %v4080_v25  ;;  %v3539_v43 = vmul.f32 %v8005_v52, %v3438_v58  ;;  %v5101_v12 = vadd.f32 %v8712_v46, %v2992_v11  ;;  %v2994_v0 = vpop.f32.mrb[67].mxu1  ;;  %v8717_v14 = vld [vmem:[#allocation68_spill] sm:$0xff]  ;;  %v3983_v58 = vmul.f32 %v7997_v44, %v8021_v9 }
 0x44a   : > { %v3984_v46 = vmul.f32 %v8013_v63, %v7997_v44 }
 0x44b   : > { %v4081_v10 = vmax.f32 %v4049_v1, 0.0  ;;  %v3443_v53 = vadd.f32 %v5101_v12, %v8713_v61  ;;  %v3578_v30 = vadd.f32 %v8019_v57, %v3539_v43  ;;  %v4022_v12 = vadd.f32 %v8010_v27, %v3983_v58  ;;  %v8719_v61 = vld [vmem:[#allocation94_spill] sm:$0xff] }
 0x44c   : > { %v2997_v20 = vpop.f32.mrb[68].mxu1  ;;  %v4023_v9 = vadd.f32 %v8010_v27, %v3984_v46 }
 0x44d   : > { %4113 = vst [vmem:[%s8044_s24 + $0x78] sm:$0xff] %v4081_v10  ;;  %v3540_v6 = vmul.f32 %v8005_v52, %v3443_v53  ;;  %v4050_v16 = vadd.f32 %v4018_v31, %v3578_v30  ;;  %v5102_v49 = vadd.f32 %v8714_v18, %v2997_v20  ;;  %v2999_v15 = vpop.f32.mrb[69].mxu1  ;;  %v8718_v31 = vld [vmem:[#allocation95_spill] sm:$0xff] }
 0x44f   : > { %v3579_v36 = vadd.f32 %v8019_v57, %v3540_v6  ;;  %v4082_v5 = vmax.f32 %v4050_v16, 0.0  ;;  %v3448_v19 = vadd.f32 %v5102_v49, %v8715_v45 }
 0x450   : > { %v3002_v41 = vpop.f32.mrb[70].mxu1 }
 0x451   : > { %v4051_v54 = vadd.f32 %v4019_v21, %v3579_v36  ;;  %4114 = vst [vmem:[%s8044_s24 + $0x80] sm:$0xff] %v4082_v5  ;;  %v3541_v33 = vmul.f32 %v8005_v52, %v3448_v19  ;;  %v5103_v34 = vadd.f32 %v8716_v29, %v3002_v41  ;;  %v3004_v35 = vpop.f32.mrb[71].mxu1  ;;  %v3985_v21 = vmul.f32 %v7997_v44, %v8042_v3 }
 0x452   : > { %v3986_v5 = vmul.f32 %v8039_v48, %v7997_v44  ;;  %v3987_v29 = vmul.f32 %v7997_v44, %v8064_v26 }
 0x453   : > { %v4083_v60 = vmax.f32 %v4051_v54, 0.0  ;;  %v3453_v7 = vadd.f32 %v5103_v34, %v8717_v14  ;;  %v3580_v23 = vadd.f32 %v8019_v57, %v3541_v33  ;;  %v4024_v45 = vadd.f32 %v8010_v27, %v3985_v21 }
 0x455   : > { %4115 = vst [vmem:[%s8044_s24 + $0x88] sm:$0xff] %v4083_v60  ;;  %v3542_v8 = vmul.f32 %v8005_v52, %v3453_v7  ;;  %v4052_v13 = vadd.f32 %v4020_v4, %v3580_v23  ;;  %v3988_v23 = vmul.f32 %v8061_v37, %v7997_v44 }
 0x457   : > { %v3581_v50 = vadd.f32 %v8019_v57, %v3542_v8  ;;  %v4084_v25 = vmax.f32 %v4052_v13, 0.0 }
 0x459   : > { %v4053_v51 = vadd.f32 %v4021_v38, %v3581_v50  ;;  %4116 = vst [vmem:[%s8044_s24 + $0x90] sm:$0xff] %v4084_v25  ;;  %v4026_v38 = vadd.f32 %v8010_v27, %v3987_v29  ;;  %v8720_v50 = vld [vmem:[#allocation72_spill] sm:$0xff] }
 0x45b   : > { %v4085_v39 = vmax.f32 %v4053_v51, 0.0 }
 0x45d   : > { %4117 = vst [vmem:[%s8044_s24 + $0x98] sm:$0xff] %v4085_v39 }
 0x484   : > { %v3232_v11 = vpop.f32.mrb[72].mxu1 }
 0x485   : > { %v3458_v1 = vadd.f32 %v8718_v31, %v3232_v11  ;;  %v3234_v43 = vpop.f32.mrb[73].mxu1  ;;  %v3989_v11 = vmul.f32 %v7997_v44, %v8084_v42 }
 0x487   : > { %v3543_v24 = vmul.f32 %v8005_v52, %v3458_v1 }
 0x488   : > { %v3237_v0 = vpop.f32.mrb[74].mxu1 }
 0x489   : > { %v3582_v10 = vadd.f32 %v8019_v57, %v3543_v24  ;;  %v3463_v53 = vadd.f32 %v8719_v61, %v3237_v0  ;;  %v3239_v30 = vpop.f32.mrb[75].mxu1  ;;  %v3990_v0 = vmul.f32 %v8081_v59, %v7997_v44 }
 0x48a   : > { %v8721_v30 = vld [vmem:[#allocation80_spill] sm:$0xff] }
 0x48b   : > { %v4054_v20 = vadd.f32 %v4022_v12, %v3582_v10  ;;  %v3544_v40 = vmul.f32 %v8005_v52, %v3463_v53  ;;  %v4028_v10 = vadd.f32 %v8010_v27, %v3989_v11 }
 0x48c   : > { %v3242_v6 = vpop.f32.mrb[76].mxu1 }
 0x48d   : > { %v4086_v16 = vmax.f32 %v4054_v20, 0.0  ;;  %v3583_v63 = vadd.f32 %v8019_v57, %v3544_v40  ;;  %v3468_v18 = vadd.f32 %v7742_v28, %v3242_v6  ;;  %v3244_v49 = vpop.f32.mrb[77].mxu1  ;;  %v4025_v28 = vadd.f32 %v8010_v27, %v3986_v5 }
 0x48e   : > { %v3991_v6 = vmul.f32 %v7997_v44, %v8104_v32 }
 0x48f   : > { %4118 = vst [vmem:[%s8044_s24 + $0xa0] sm:$0xff] %v4086_v16  ;;  %v4055_v15 = vadd.f32 %v4023_v9, %v3583_v63  ;;  %v3545_v36 = vmul.f32 %v8005_v52, %v3468_v18  ;;  %v8722_v18 = vld [vmem:[#allocation96_spill] sm:$0xff] }
 0x490   : > { %v3247_v19 = vpop.f32.mrb[78].mxu1 }
 0x491   : > { %v4087_v3 = vmax.f32 %v4055_v15, 0.0  ;;  %v3584_v41 = vadd.f32 %v8019_v57, %v3545_v36  ;;  %v3473_v4 = vadd.f32 %v7740_v55, %v3247_v19  ;;  %v3249_v54 = vpop.f32.mrb[79].mxu1  ;;  %v4030_v19 = vadd.f32 %v8010_v27, %v3991_v6 }
 0x493   : > { %4119 = vst [vmem:[%s8044_s24 + $0xa8] sm:$0xff] %v4087_v3  ;;  %v4056_v33 = vadd.f32 %v4024_v45, %v3584_v41  ;;  %v3546_v17 = vmul.f32 %v8005_v52, %v3473_v4  ;;  %v3992_v45 = vmul.f32 %v8101_v22, %v7997_v44  ;;  %v8723_v4 = vld [vmem:[#allocation82_spill] sm:$0xff] }
 0x494   : > { %v3252_v48 = vpop.f32.mrb[80].mxu1 }
 0x495   : > { %v4088_v34 = vmax.f32 %v4056_v33, 0.0  ;;  %v3585_v35 = vadd.f32 %v8019_v57, %v3546_v17  ;;  %v3478_v60 = vadd.f32 %v7752_v2, %v3252_v48  ;;  %v3254_v14 = vpop.f32.mrb[81].mxu1  ;;  %v4027_v2 = vadd.f32 %v8010_v27, %v3988_v23 }
 0x496   : > { %v4031_v33 = vadd.f32 %v8010_v27, %v3992_v45  ;;  %v3993_v48 = vmul.f32 %v7997_v44, %v8124_v56 }
 0x497   : > { %4120 = vst [vmem:[%s8044_s24 + $0xb0] sm:$0xff] %v4088_v34  ;;  %v4057_v55 = vadd.f32 %v4025_v28, %v3585_v35  ;;  %v3547_v7 = vmul.f32 %v8005_v52, %v3478_v60  ;;  %v8724_v60 = vld [vmem:[#allocation98_spill] sm:$0xff] }
 0x498   : > { %v3257_v8 = vpop.f32.mrb[82].mxu1  ;;  %v4032_v56 = vadd.f32 %v8010_v27, %v3993_v48 }
 0x499   : > { %v4089_v26 = vmax.f32 %v4057_v55, 0.0  ;;  %v3586_v13 = vadd.f32 %v8019_v57, %v3547_v7  ;;  %v3483_v25 = vadd.f32 %v8720_v50, %v3257_v8  ;;  %v3259_v51 = vpop.f32.mrb[83].mxu1  ;;  %v8725_v50 = vld [vmem:[#allocation97_spill] sm:$0xff] }
 0x49b   : > { %4121 = vst [vmem:[%s8044_s24 + $0xb8] sm:$0xff] %v4089_v26  ;;  %v4058_v39 = vadd.f32 %v4026_v38, %v3586_v13  ;;  %v3548_v58 = vmul.f32 %v8005_v52, %v3483_v25  ;;  %v3994_v38 = vmul.f32 %v8121_v62, %v7997_v44 }
 0x49c   : > { %v3262_v37 = vpop.f32.mrb[84].mxu1 }
 0x49d   : > { %v4090_v31 = vmax.f32 %v4058_v39, 0.0  ;;  %v3587_v1 = vadd.f32 %v8019_v57, %v3548_v58  ;;  %v3488_v43 = vadd.f32 %v7764_v47, %v3262_v37  ;;  %v3264_v24 = vpop.f32.mrb[85].mxu1  ;;  %v4029_v47 = vadd.f32 %v8010_v27, %v3990_v0 }
 0x49f   : > { %4122 = vst [vmem:[%s8044_s24 + $0xc0] sm:$0xff] %v4090_v31  ;;  %v4059_v46 = vadd.f32 %v4027_v2, %v3587_v1  ;;  %v3549_v12 = vmul.f32 %v8005_v52, %v3488_v43  ;;  %v4033_v2 = vadd.f32 %v8010_v27, %v3994_v38 }
 0x4a0   : > { %v3267_v61 = vpop.f32.mrb[86].mxu1 }
 0x4a1   : > { %v4091_v42 = vmax.f32 %v4059_v46, 0.0  ;;  %v3588_v53 = vadd.f32 %v8019_v57, %v3549_v12  ;;  %v3493_v9 = vadd.f32 %v8721_v30, %v3267_v61  ;;  %v3269_v20 = vpop.f32.mrb[87].mxu1 }
 0x4a3   : > { %4123 = vst [vmem:[%s8044_s24 + $0xc8] sm:$0xff] %v4091_v42  ;;  %v4060_v40 = vadd.f32 %v4028_v10, %v3588_v53  ;;  %v3550_v21 = vmul.f32 %v8005_v52, %v3493_v9 }
 0x4a4   : > { %v3272_v59 = vpop.f32.mrb[88].mxu1 }
 0x4a5   : > { %v4092_v16 = vmax.f32 %v4060_v40, 0.0  ;;  %v3589_v63 = vadd.f32 %v8019_v57, %v3550_v21  ;;  %v3498_v49 = vadd.f32 %v8722_v18, %v3272_v59  ;;  %v3274_v15 = vpop.f32.mrb[89].mxu1 }
 0x4a7   : > { %4124 = vst [vmem:[%s8044_s24 + $0xd0] sm:$0xff] %v4092_v16  ;;  %v4061_v36 = vadd.f32 %v4029_v47, %v3589_v63  ;;  %v3551_v5 = vmul.f32 %v8005_v52, %v3498_v49 }
 0x4a8   : > { %v3277_v3 = vpop.f32.mrb[90].mxu1 }
 0x4a9   : > { %v4093_v32 = vmax.f32 %v4061_v36, 0.0  ;;  %v3590_v41 = vadd.f32 %v8019_v57, %v3551_v5  ;;  %v3503_v54 = vadd.f32 %v8723_v4, %v3277_v3  ;;  %v3279_v28 = vpop.f32.mrb[91].mxu1 }
 0x4ab   : > { %4125 = vst [vmem:[%s8044_s24 + $0xd8] sm:$0xff] %v4093_v32  ;;  %v4062_v17 = vadd.f32 %v4030_v19, %v3590_v41  ;;  %v3552_v29 = vmul.f32 %v8005_v52, %v3503_v54 }
 0x4ac   : > { %v3282_v22 = vpop.f32.mrb[92].mxu1 }
 0x4ad   : > { %v4094_v34 = vmax.f32 %v4062_v17, 0.0  ;;  %v3591_v35 = vadd.f32 %v8019_v57, %v3552_v29  ;;  %v3508_v14 = vadd.f32 %v8724_v60, %v3282_v22  ;;  %v3284_v55 = vpop.f32.mrb[93].mxu1 }
 0x4af   : > { %4126 = vst [vmem:[%s8044_s24 + $0xe0] sm:$0xff] %v4094_v34  ;;  %v4063_v7 = vadd.f32 %v4031_v33, %v3591_v35  ;;  %v3553_v23 = vmul.f32 %v8005_v52, %v3508_v14 }
 0x4b0   : > { %v3287_v8 = vpop.f32.mrb[94].mxu1 }
 0x4b1   : > { %v4095_v26 = vmax.f32 %v4063_v7, 0.0  ;;  %v3592_v13 = vadd.f32 %v8019_v57, %v3553_v23  ;;  %v3513_v25 = vadd.f32 %v8725_v50, %v3287_v8  ;;  %v3289_v51 = vpop.f32.mrb[95].mxu1 }
 0x4b3   : > { %4127 = vst [vmem:[%s8044_s24 + $0xe8] sm:$0xff] %v4095_v26  ;;  %v4064_v39 = vadd.f32 %v4032_v56, %v3592_v13  ;;  %v3554_v58 = vmul.f32 %v8005_v52, %v3513_v25 }
 0x4b5   : > { %v4096_v11 = vmax.f32 %v4064_v39, 0.0  ;;  %v3593_v44 = vadd.f32 %v8019_v57, %v3554_v58 }
 0x4b7   : > { %4128 = vst [vmem:[%s8044_s24 + $0xf0] sm:$0xff] %v4096_v11  ;;  %v4065_v62 = vadd.f32 %v4033_v2, %v3593_v44 }
 0x4b9   : > { %v4097_v27 = vmax.f32 %v4065_v62, 0.0 }
 0x4bb   : > { %4129 = vst [vmem:[%s8044_s24 + $0xf8] sm:$0xff] %v4097_v27 }
 0x4bc   : > { %5379 = shalt.err (!%p5376_p3)
}
 0x4bd   : > { %s5380_s13 = scalar_lea.hbm %s8291_s0, 4096  ;;  %s5384_s29 = scalar_lea.hbm %s8350_s11, 8192 }
 0x4be   : > { %p5381_p4 = scmp.ne.s32.totalorder %s8291_s0, %s5380_s13  ;;  %p5385_p9 = scmp.lt.u32.totalorder %s8291_s0, %s8350_s11 }
 0x4bf   : > { %p5386_p10 = scmp.lt.u32.totalorder %s5384_s29, %s5380_s13  ;;  %p5388_p12 = scmp.lt.u32.totalorder %s5380_s13, %s8291_s0 }
 0x4c0   : > { %p5382_p7 = pnand %p5381_p4, %p5533_p5 }
 0x4c1   : > { %p5387_p11 = por %p5386_p10, %p5385_p9 }
 0x4c2   : > { %p5383_p8 = pneg %p5382_p7 }
 0x4c3   : > { %p5389_p13 = por %p5388_p12, %p5387_p11 }
 0x4c5   : > { %p5390_p0 = pnand %p5389_p13, %p5383_p8 }
 0x4c7   : > { %5393 = shalt.err (!%p5390_p0)
}
 0x4c8   : > { %s5433_s22 = smov 128   ;;  %s5434_s21 = smov 8  }
 0x4c9   : > { %5321 = dma.vmem_to_hbm [thread:$0]  (%p5533_p5), %s8293_s25, 4096, %s8291_s0, %s8298_s12, %s5433_s22, %s5433_s22, %s5434_s21  }
 0x4ca PF: > { %p5327_p1 = scmp.ge.s32.totalorder %s5428_s20, 2  ;;  %s4160_s14 = sand.u32 1, %s5416_s17  }
 0x4cb   : > { %s4161_s26 = scalar_lea.sflag [#allocation4], %s4160_s14 }
 0x4cc   : > { %p5324_p2 = pnand %p5327_p1, %p5537_p6 }
 0x4ce   : > { %5411 = dma.done.wait (!%p5324_p2), %s4161_s26, 4096  }
 0x4cf   : > { %5413 = vsyncadd (!%p5324_p2), %s4161_s26, 4294963200  ;;  %s8726_s13 = sld [smem:[#allocation6_spill]]  ;;  %p21_p3 = scmp.ge.s32.totalorder %s5520_s23, 4  }
 0x4d0   : > { %s8727_s17 = smov %s5420_s18  ;;  %s8728_s18 = smov %s5424_s19 }
 0x4d1   : > { %s8730_s20 = smov %s5520_s23  ;;  %23 = sbr.rel (!%p21_p3) target bundleno = 5 (0x5), region = 102 }
 0x4d5   : > { %s8729_s19 = smov %s8726_s13 }
 0x4d8   :  { %4166 = vsyncpa [#allocation4], 1 }
 0x4d9   :  { %4168 = vsyncpa [#allocation4 + $0x1], 1 }

</bundles_post_ra>
